<compile_context>
chip_gen: v5e
topology: v5e:2x2
jax: 0.10.0
libtpu: 0.0.40
codegen_flags: <defaults>
</compile_context>

<pallas_src>
import jax
import jax.numpy as jnp
from jax.experimental import pallas as pl
from jax.experimental.pallas import tpu as pltpu

LANE = 128
NEG_BIG = -1e30  # bias for padded logit columns -> exp() underflows to exactly 0


def _round_up(n: int, m: int) -> int:
    return ((n + m - 1) // m) * m


def _num_tensorcores() -> int:
    """TensorCores addressable by one pallas_call (for the megacore batch split)."""
    try:
        dev = jax.devices()[0]
        for attr in ("num_cores", "core_count"):
            n = getattr(dev, attr, None)
            if n:
                return max(1, int(n))
    except Exception:
        pass
    return 1  # v5e / v6e: one TC per chip


def policy_net_kernel(x_ref, w1_ref, b1_ref, w2_ref, b2_ref, out_ref):
    # fc1: cast activation to bf16 in-kernel (a few VPU pack ops, hidden under the
    # MXU); bf16 x bf16 matmul with f32 accumulation; bias + ReLU in f32.
    xb = x_ref[...].astype(w1_ref.dtype)
    h = jnp.dot(xb, w1_ref[...], preferred_element_type=jnp.float32)
    h = jnp.maximum(h + b1_ref[...], 0.0)                       # [TB,H] + [1,H]

    # fc2: cast activation to bf16 to match the bf16 weights on the MXU.
    logits = jnp.dot(h.astype(w2_ref.dtype), w2_ref[...],
                     preferred_element_type=jnp.float32)
    logits = logits + b2_ref[...]      # padded columns carry -1e30 bias (masked)

    # Numerically-stable softmax along the (lane-dense, padded) last dim.
    m = jnp.max(logits, axis=-1, keepdims=True)                 # XLU slot
    e = jnp.exp(logits - m)                                     # EUP; padded cols -> 0
    denom = jnp.sum(e, axis=-1, keepdims=True)
    inv = pl.reciprocal(denom, approx=True)                     # EUP slot (free)
    inv = inv * (2.0 - denom * inv)                             # Newton step -> ~exact 1/denom
    out_ref[...] = (e * inv).astype(out_ref.dtype)


def prepare_params(w1, b1, w2, b2):
    """One-time: pad feature dims to 128 lanes and cast MXU operands to bf16.

    w1:[K,H], b1:[1,H] (or [H]), w2:[H,O], b2:[1,O] (or [O]).
    Returns pre-padded device arrays ready to pass straight into pallas_call.
    """
    K, H = w1.shape
    Hw, O = w2.shape
    assert H == Hw
    H_pad = _round_up(H, LANE)
    O_pad = _round_up(O, LANE)

    w1_p = jnp.pad(w1, ((0, 0), (0, H_pad - H))).astype(jnp.bfloat16)
    b1_p = jnp.pad(b1.reshape(1, H).astype(jnp.float32), ((0, 0), (0, H_pad - H)))
    w2_p = jnp.pad(w2, ((0, H_pad - H), (0, O_pad - O))).astype(jnp.bfloat16)
    b2_p = jnp.pad(b2.reshape(1, O).astype(jnp.float32),
                   ((0, 0), (0, O_pad - O)), constant_values=NEG_BIG)
    return (w1_p, b1_p, w2_p, b2_p, O)


def policy_network_forward(x, params, *, block_batch=None):
    """x:[B,K] f32, params from prepare_params() -> softmax probs [B,O] f32."""
    w1_p, b1_p, w2_p, b2_p, O = params
    B, K = x.shape
    Kw, H_pad = w1_p.shape
    _, O_pad = w2_p.shape
    assert K == Kw

    # Adaptive batch tile: 1 grid step per TensorCore for small batches (cuts the
    # ~0.35us/step overhead on single-TC v5e/v6e, 2-way split on v7x); 256-row
    # tiles for big batches to fill the 256-wide MXU on v6e/v7x.
    if block_batch is None:
        n_tc = _num_tensorcores()
        if B <= 512:
            TB = _round_up(pl.cdiv(max(B, 1), n_tc), 8)
        else:
            TB = 256
    else:
        TB = block_batch
    B_pad = _round_up(max(B, 1), TB)

    # Only the batch dim is padded on the per-call path (no-op when TB | B);
    # x stays f32 with its native K (== full array dim, so the BlockSpec is legal)
    # and is cast to bf16 inside the kernel.
    x_p = x if B_pad == B else jnp.pad(x, ((0, B_pad - B), (0, 0)))

    grid = (B_pad // TB,)
    flops = 2 * B_pad * (K * H_pad + H_pad * O_pad)
    bytes_accessed = (x_p.size * 4 + w1_p.size * 2 + w2_p.size * 2
                      + b1_p.size * 4 + b2_p.size * 4 + B_pad * O_pad * 4)

    # TODO(synk): if hidden_size scales to 8k+ (v7x's 64 MiB VMEM), add a reduction
    # grid axis over H with an accumulator scratch + pl.when init/finalize, and use
    # pipeline_mode=pl.Buffered(1) on the constant weight specs.
    out_pad = pl.pallas_call(
        policy_net_kernel,
        out_shape=jax.ShapeDtypeStruct((B_pad, O_pad), jnp.float32),
        grid=grid,
        in_specs=[
            pl.BlockSpec((TB, K), lambda i: (i, 0)),         # x: batch-tiled, pipelined
            pl.BlockSpec((K, H_pad), lambda i: (0, 0)),      # w1: VMEM-resident
            pl.BlockSpec((1, H_pad), lambda i: (0, 0)),      # b1
            pl.BlockSpec((H_pad, O_pad), lambda i: (0, 0)),  # w2: VMEM-resident
            pl.BlockSpec((1, O_pad), lambda i: (0, 0)),      # b2 (padded cols = -1e30)
        ],
        out_specs=pl.BlockSpec((TB, O_pad), lambda i: (i, 0)),  # lane-dense output
        compiler_params=pltpu.CompilerParams(
            dimension_semantics=("parallel",),   # megacore split on v7x; harmless elsewhere
            vmem_limit_bytes=32 * 1024 * 1024,
        ),
        cost_estimate=pl.CostEstimate(
            flops=flops,
            transcendentals=B_pad * O_pad + B_pad,
            bytes_accessed=bytes_accessed,
        ),
    )(x_p, w1_p, b1_p, w2_p, b2_p)

    return out_pad[:B, :O]


def init_params(key, input_size, hidden_size, output_size):
    # Deterministic init mimicking nn.Linear's uniform(-1/sqrt(fan_in), 1/sqrt(fan_in)).
    k1, k2, k3, k4 = jax.random.split(key, 4)
    bound1 = 1.0 / jnp.sqrt(jnp.float32(input_size))
    bound2 = 1.0 / jnp.sqrt(jnp.float32(hidden_size))
    w1 = jax.random.uniform(k1, (input_size, hidden_size), jnp.float32, -bound1, bound1)
    b1 = jax.random.uniform(k2, (1, hidden_size), jnp.float32, -bound1, bound1)
    w2 = jax.random.uniform(k3, (hidden_size, output_size), jnp.float32, -bound2, bound2)
    b2 = jax.random.uniform(k4, (1, output_size), jnp.float32, -bound2, bound2)
    return w1, b1, w2, b2


if __name__ == "__main__":
    # Shapes consistent with the module: input_size == output_size (== len(test_cases)),
    # hidden_size = 1024 as in the spec.
    batch = 256
    input_size = 16
    hidden_size = 1024
    output_size = 16

    key = jax.random.PRNGKey(0)
    kx, kp = jax.random.split(key)
    x = jax.random.normal(kx, (batch, input_size), jnp.float32)
    w1, b1, w2, b2 = init_params(kp, input_size, hidden_size, output_size)

    params = prepare_params(w1, b1, w2, b2)          # one-time pad + bf16 cast
    forward = jax.jit(lambda xx: policy_network_forward(xx, params))

    out = jax.block_until_ready(forward(x))

    # Reference with identical numerics (bf16 MXU operands, f32 accumulation/elementwise).
    xb, w1b, w2b = (a.astype(jnp.bfloat16) for a in (x, w1, w2))
    h_ref = jnp.maximum(jnp.dot(xb, w1b, preferred_element_type=jnp.float32) + b1, 0.0)
    logits_ref = jnp.dot(h_ref.astype(jnp.bfloat16), w2b,
                         preferred_element_type=jnp.float32) + b2
    ref = jax.nn.softmax(logits_ref, axis=-1)

    assert out.shape == (batch, output_size)
    assert jnp.allclose(out, ref, atol=1e-4, rtol=1e-4)
    assert jnp.allclose(jnp.sum(out, axis=-1), 1.0, atol=1e-4)

    # Sanity vs. the full-f32 PyTorch-equivalent path (looser tolerance for bf16 MXU).
    h32 = jnp.maximum(x @ w1 + b1, 0.0)
    ref32 = jax.nn.softmax(h32 @ w2 + b2, axis=-1)
    assert jnp.allclose(out, ref32, atol=5e-3, rtol=5e-3)

    print("KERNEL_OK")
</pallas_src>

<mosaic_0001>
module attributes {stable_mosaic.version = 11 : i64} {
  func.func @policy_net_kernel(%arg0: i32, %arg1: memref<256x16xf32, #tpu.memory_space<vmem>>, %arg2: memref<16x1024xbf16, #tpu.memory_space<vmem>>, %arg3: memref<1x1024xf32, #tpu.memory_space<vmem>>, %arg4: memref<1024x128xbf16, #tpu.memory_space<vmem>>, %arg5: memref<1x128xf32, #tpu.memory_space<vmem>>, %arg6: memref<256x128xf32, #tpu.memory_space<vmem>>) attributes {dimension_semantics = [#tpu.dimension_semantics<parallel>], iteration_bounds = array<i64: 1>, scalar_prefetch = 0 : i64, scratch_operands = 0 : i64, tpu.core_type = #tpu.core_type<tc>, window_params = [{transform_indices = @transform_0, window_bounds = array<i64: 256, 16>}, {pipeline_mode = #tpu.pipeline_mode<synchronous>, transform_indices = @transform_1, window_bounds = array<i64: 16, 1024>}, {pipeline_mode = #tpu.pipeline_mode<synchronous>, transform_indices = @transform_2, window_bounds = array<i64: 1, 1024>}, {pipeline_mode = #tpu.pipeline_mode<synchronous>, transform_indices = @transform_3, window_bounds = array<i64: 1024, 128>}, {pipeline_mode = #tpu.pipeline_mode<synchronous>, transform_indices = @transform_4, window_bounds = array<i64: 1, 128>}, {transform_indices = @transform_5, window_bounds = array<i64: 256, 128>}]} {
    %c0 = arith.constant 0 : index
    %c0_0 = arith.constant 0 : index
    %0 = vector.load %arg1[%c0, %c0_0] : memref<256x16xf32, #tpu.memory_space<vmem>>, vector<256x16xf32>
    %1 = arith.truncf %0 : vector<256x16xf32> to vector<256x16xbf16>
    %c0_1 = arith.constant 0 : index
    %c0_2 = arith.constant 0 : index
    %2 = vector.load %arg2[%c0_1, %c0_2] : memref<16x1024xbf16, #tpu.memory_space<vmem>>, vector<16x1024xbf16>
    %cst = arith.constant dense<0.000000e+00> : vector<256x1024xf32>
    %3 = tpu.matmul %1, %2, %cst {dimension_numbers = #tpu.dot_dimension_numbers<[1], [0], [0], [1], [0, 0, 1, 1], [], []>} : vector<256x16xbf16>, vector<16x1024xbf16>, vector<256x1024xf32> -> vector<256x1024xf32>
    %c0_3 = arith.constant 0 : index
    %c0_4 = arith.constant 0 : index
    %4 = vector.load %arg3[%c0_3, %c0_4] : memref<1x1024xf32, #tpu.memory_space<vmem>>, vector<1x1024xf32>
    %5 = vector.broadcast %4 : vector<1x1024xf32> to vector<256x1024xf32>
    %6 = arith.addf %3, %5 : vector<256x1024xf32>
    %cst_5 = arith.constant 0.000000e+00 : f32
    %7 = vector.broadcast %cst_5 : f32 to vector<256x1024xf32>
    %8 = arith.maximumf %6, %7 : vector<256x1024xf32>
    %9 = arith.truncf %8 : vector<256x1024xf32> to vector<256x1024xbf16>
    %c0_6 = arith.constant 0 : index
    %c0_7 = arith.constant 0 : index
    %10 = vector.load %arg4[%c0_6, %c0_7] : memref<1024x128xbf16, #tpu.memory_space<vmem>>, vector<1024x128xbf16>
    %cst_8 = arith.constant dense<0.000000e+00> : vector<256x128xf32>
    %11 = tpu.matmul %9, %10, %cst_8 {dimension_numbers = #tpu.dot_dimension_numbers<[1], [0], [0], [1], [0, 0, 1, 1], [], []>} : vector<256x1024xbf16>, vector<1024x128xbf16>, vector<256x128xf32> -> vector<256x128xf32>
    %c0_9 = arith.constant 0 : index
    %c0_10 = arith.constant 0 : index
    %12 = vector.load %arg5[%c0_9, %c0_10] : memref<1x128xf32, #tpu.memory_space<vmem>>, vector<1x128xf32>
    %13 = vector.broadcast %12 : vector<1x128xf32> to vector<256x128xf32>
    %14 = arith.addf %11, %13 : vector<256x128xf32>
    %cst_11 = arith.constant dense<0xFF800000> : vector<256xf32>
    %15 = vector.multi_reduction <maximumf>, %14, %cst_11 [1] : vector<256x128xf32> to vector<256xf32>
    %16 = vector.shape_cast %15 : vector<256xf32> to vector<256x1xf32>
    %17 = vector.broadcast %16 : vector<256x1xf32> to vector<256x128xf32>
    %18 = arith.subf %14, %17 : vector<256x128xf32>
    %19 = math.exp %18 : vector<256x128xf32>
    %cst_12 = arith.constant dense<0.000000e+00> : vector<256xf32>
    %20 = vector.multi_reduction <add>, %19, %cst_12 [1] : vector<256x128xf32> to vector<256xf32>
    %21 = vector.shape_cast %20 : vector<256xf32> to vector<256x1xf32>
    %22 = tpu.reciprocal %21 {approx = true} : vector<256x1xf32> -> vector<256x1xf32>
    %23 = arith.mulf %21, %22 : vector<256x1xf32>
    %cst_13 = arith.constant 2.000000e+00 : f32
    %24 = vector.broadcast %cst_13 : f32 to vector<256x1xf32>
    %25 = arith.subf %24, %23 : vector<256x1xf32>
    %26 = arith.mulf %22, %25 : vector<256x1xf32>
    %27 = vector.broadcast %26 : vector<256x1xf32> to vector<256x128xf32>
    %28 = arith.mulf %19, %27 : vector<256x128xf32>
    %c0_14 = arith.constant 0 : index
    %c0_15 = arith.constant 0 : index
    %29 = vector.load %arg6[%c0_14, %c0_15] : memref<256x128xf32, #tpu.memory_space<vmem>>, vector<256x128xf32>
    tpu.vector_store %arg6[%c0_14, %c0_15], %28 {strides = array<i32>} : memref<256x128xf32, #tpu.memory_space<vmem>>, vector<256x128xf32>,
    return
  }
  func.func @transform_0(%arg0: i32) -> (i32, i32) {
    %c0_i32 = arith.constant 0 : i32
    %c0_i32_0 = arith.constant 0 : i32
    return %arg0, %c0_i32 : i32, i32
  }
  func.func @transform_1(%arg0: i32) -> (i32, i32) {
    %c0_i32 = arith.constant 0 : i32
    %c0_i32_0 = arith.constant 0 : i32
    %c0_i32_1 = arith.constant 0 : i32
    return %c0_i32, %c0_i32_0 : i32, i32
  }
  func.func @transform_2(%arg0: i32) -> (i32, i32) {
    %c0_i32 = arith.constant 0 : i32
    %c0_i32_0 = arith.constant 0 : i32
    %c0_i32_1 = arith.constant 0 : i32
    return %c0_i32, %c0_i32_0 : i32, i32
  }
  func.func @transform_3(%arg0: i32) -> (i32, i32) {
    %c0_i32 = arith.constant 0 : i32
    %c0_i32_0 = arith.constant 0 : i32
    %c0_i32_1 = arith.constant 0 : i32
    return %c0_i32, %c0_i32_0 : i32, i32
  }
  func.func @transform_4(%arg0: i32) -> (i32, i32) {
    %c0_i32 = arith.constant 0 : i32
    %c0_i32_0 = arith.constant 0 : i32
    %c0_i32_1 = arith.constant 0 : i32
    return %c0_i32, %c0_i32_0 : i32, i32
  }
  func.func @transform_5(%arg0: i32) -> (i32, i32) {
    %c0_i32 = arith.constant 0 : i32
    %c0_i32_0 = arith.constant 0 : i32
    return %arg0, %c0_i32 : i32, i32
  }
}

</mosaic_0001>

<bundles_post_ra>
// kernel: _lambda_.1
= control target key start
LH: loop header
LB: loop body
LE: loop exit
PB: predicated region body
PF: predicated region fallthrough
CT: control target
= control target key end

     0   :  { %10 = vsyncpa [#allocation3], 0  ;;  %s3592_s21 = smov [#allocation2]   ;;  %s3593_s23 = smov 64   ;;  %s5207_s0 = inlined_call_operand.vmem [shape: f32[256,16], index: 0, kind: input, shape index: {}]   ;;  %s5208_s1 = inlined_call_operand.vmem [shape: bf16[16,1024], index: 1, kind: input, shape index: {}]   ;;  %s5209_s2 = inlined_call_operand.vmem [shape: f32[1,1024], index: 2, kind: input, shape index: {}]   ;;  %s5210_s3 = inlined_call_operand.hbm [shape: bf16[1024,128], index: 3, kind: input, shape index: {}]   ;;  %s5211_s4 = inlined_call_operand.vmem [shape: f32[1,128], index: 4, kind: input, shape index: {}]   ;;  %s5212_s5 = inlined_call_operand.vmem [shape: f32[256,128], index: 5, kind: output, shape index: {}]  }
   0x1   :  { %s21_s20 = sshll.u32 %s5210_s3, 4  ;;  %s23_s22 = sshll.u32 %s3592_s21, 4  ;;  %s22_s20 = int_to_ptr.hbm [resolvable:$true] %s21_s20  ;;  %s24_s22 = int_to_ptr.vmem [resolvable:$true] %s23_s22 }
   0x2   :  { %s3594_s24 = smov 4  }
   0x3   :  { %29 = dma.hbm_to_vmem [thread:$0]  %s22_s20, 8192, %s24_s22, [#allocation3], %s3593_s23, %s3593_s23, %s3594_s24  }
   0x4   :  { %3590 = dma.done.wait [#allocation3], 8192  }
   0x5   :  { %3591 = vsyncadd [#allocation3], 4294959104  ;;  %v2947_v0 = vld [vmem:[%s5208_s1] sm:$0xf]  ;;  %v3361_v2 = vld [vmem:[%s5208_s1 + $0x4] sm:$0xf] }
   0x6   :  { %v3365_v1 = vld [vmem:[%s5208_s1 + $0x1c] sm:$0xf0]  ;;  %v2949_v4 = vld [vmem:[%s5208_s1 + $0x20] sm:$0xf0]  ;;  %v2955_v5 = vld [vmem:[%s5208_s1 + $0x8] sm:$0xf] }
   0x7   :  { %v2948_v3 = vor.u32 %v3365_v1, %v2947_v0  ;;  %v3366_v6 = vld [vmem:[%s5208_s1 + $0x24] sm:$0xf0]  ;;  %v2952_v7 = vor.u32 %v3361_v2, %v2949_v4  ;;  %v3362_v9 = vld [vmem:[%s5208_s1 + $0xc] sm:$0xf]  ;;  %v37_v11 = vld [vmem:[%s5207_s0] sm:$0xff]  ;;  %vm151_vm0 = vcmask 130048  }
   0x8   :  { %v2956_v8 = vor.u32 %v3366_v6, %v2955_v5  ;;  %v2957_v10 = vld [vmem:[%s5208_s1 + $0x28] sm:$0xf0]  ;;  %v2971_v14 = vld [vmem:[%s5208_s1 + $0x18] sm:$0xf]  ;;  %v2963_v18 = vld [vmem:[%s5208_s1 + $0x10] sm:$0xf] }
   0x9   :  { %207 = vmatpush.bf16.msra.mxu0 %v2948_v3  ;;  %v2960_v12 = vor.u32 %v3362_v9, %v2957_v10  ;;  %v38_v13 = vld [vmem:[%s5207_s0 + $0x8] sm:$0xff]  ;;  %v3368_v15 = vld [vmem:[%s5208_s1 + $0x34] sm:$0xf0]  ;;  %296 = vmatpush.bf16.msra.mxu1 %v2952_v7  ;;  %v3367_v19 = vld [vmem:[%s5208_s1 + $0x2c] sm:$0xf0] }
   0xa   :  { %385 = vmatpush.bf16.msra.mxu2 %v2956_v8  ;;  %v3664_v16 = vpack.c.bf16 %v38_v13, %v37_v11  ;;  %v2972_v17 = vor.u32 %v3368_v15, %v2971_v14  ;;  %v3364_v20 = vld [vmem:[%s5208_s1 + $0x1c] sm:$0xf]  ;;  %v2964_v21 = vor.u32 %v3367_v19, %v2963_v18  ;;  %v3363_v23 = vld [vmem:[%s5208_s1 + $0x14] sm:$0xf]  ;;  %v41_v30 = vld [vmem:[%s5207_s0 + $0x20] sm:$0xff] }
   0xb   :  { %474 = vmatpush.bf16.msra.mxu3 %v2960_v12  ;;  %v2973_v22 = vld [vmem:[%s5208_s1 + $0x38] sm:$0xf0]  ;;  %v2965_v24 = vld [vmem:[%s5208_s1 + $0x30] sm:$0xf0]  ;;  %v42_v31 = vld [vmem:[%s5207_s0 + $0x28] sm:$0xff] }
   0xc   :  { %2977 = vmatmul.msk.bf16.vlgmr.msra.gmra.mxu0 %vm151_vm0, %v3664_v16  ;;  %v2976_v25 = vor.u32 %v3364_v20, %v2973_v22  ;;  %v2968_v26 = vor.u32 %v3363_v23, %v2965_v24  ;;  %2993 = vmatmul.msk.bf16.vlgmr.msra.gmra.mxu1 %vm151_vm0, %v3664_v16  ;;  %v39_v27 = vld [vmem:[%s5207_s0 + $0x10] sm:$0xff]  ;;  %v40_v28 = vld [vmem:[%s5207_s0 + $0x18] sm:$0xff]  ;;  %v3714_v32 = vpack.c.bf16 %v42_v31, %v41_v30  ;;  %v45_v36 = vld [vmem:[%s5207_s0 + $0x40] sm:$0xff] }
   0xd   :  { %3009 = vmatmul.msk.bf16.vlgmr.msra.gmra.mxu2 %vm151_vm0, %v3664_v16  ;;  %563 = vmatpush.bf16.msrb.mxu0 %v2964_v21  ;;  %v3698_v29 = vpack.c.bf16 %v40_v28, %v39_v27  ;;  %v43_v33 = vld [vmem:[%s5207_s0 + $0x30] sm:$0xff]  ;;  %v44_v34 = vld [vmem:[%s5207_s0 + $0x38] sm:$0xff]  ;;  %v46_v37 = vld [vmem:[%s5207_s0 + $0x48] sm:$0xff] }
   0xe   :  { %741 = vmatpush.bf16.msrb.mxu2 %v2972_v17  ;;  %3025 = vmatmul.msk.bf16.vlgmr.msra.gmra.mxu3 %vm151_vm0, %v3664_v16  ;;  %v3730_v35 = vpack.c.bf16 %v44_v34, %v43_v33  ;;  %v3746_v38 = vpack.c.bf16 %v46_v37, %v45_v36  ;;  %v47_v39 = vld [vmem:[%s5207_s0 + $0x50] sm:$0xff]  ;;  %v48_v40 = vld [vmem:[%s5207_s0 + $0x58] sm:$0xff]  ;;  %v49_v42 = vld [vmem:[%s5207_s0 + $0x60] sm:$0xff] }
   0xf   :  { %830 = vmatpush.bf16.msrb.mxu3 %v2976_v25  ;;  %652 = vmatpush.bf16.msrb.mxu1 %v2968_v26  ;;  %v3762_v41 = vpack.c.bf16 %v48_v40, %v47_v39  ;;  %v50_v43 = vld [vmem:[%s5207_s0 + $0x68] sm:$0xff]  ;;  %v51_v45 = vld [vmem:[%s5207_s0 + $0x70] sm:$0xff]  ;;  %v52_v46 = vld [vmem:[%s5207_s0 + $0x78] sm:$0xff] }
  0x10   :  { %v3778_v44 = vpack.c.bf16 %v50_v43, %v49_v42  ;;  %v3794_v47 = vpack.c.bf16 %v52_v46, %v51_v45  ;;  %v53_v48 = vld [vmem:[%s5207_s0 + $0x80] sm:$0xff]  ;;  %v54_v49 = vld [vmem:[%s5207_s0 + $0x88] sm:$0xff]  ;;  %v55_v6 = vld [vmem:[%s5207_s0 + $0x90] sm:$0xff] }
  0x11   :  { %v3810_v50 = vpack.c.bf16 %v54_v49, %v53_v48  ;;  %v93_v51 = vld [vmem:[%s5209_s2] sm:$0xff]  ;;  %v56_v7 = vld [vmem:[%s5207_s0 + $0x98] sm:$0xff]  ;;  %v58_v45 = vld [vmem:[%s5207_s0 + $0xa8] sm:$0xff] }
  0x12   :  { %v3815_v54 = vperm.slane %v93_v51, 0  ;;  %v3819_v55 = vperm.slane %v93_v51, 1  ;;  %v3830_v63 = vperm.slane %v93_v51, 2  ;;  %v3833_v2 = vperm.slane %v93_v51, 3  ;;  %v57_v43 = vld [vmem:[%s5207_s0 + $0xa0] sm:$0xff] }
  0x13   :  { %v3847_v13 = vpack.c.bf16 %v56_v7, %v55_v6 }
  0x1c   :  { %2978 = vmatmul.msk.bf16.gmra.mxu0 %vm151_vm0, %v3698_v29  ;;  %2994 = vmatmul.msk.bf16.gmra.mxu1 %vm151_vm0, %v3698_v29 }
  0x1d   :  { %3010 = vmatmul.msk.bf16.gmra.mxu2 %vm151_vm0, %v3698_v29 }
  0x1e   :  { %3026 = vmatmul.msk.bf16.gmra.mxu3 %vm151_vm0, %v3698_v29 }
  0x2c   :  { %2979 = vmatmul.msk.bf16.gmra.mxu0 %vm151_vm0, %v3714_v32  ;;  %2995 = vmatmul.msk.bf16.gmra.mxu1 %vm151_vm0, %v3714_v32 }
  0x2d   :  { %3011 = vmatmul.msk.bf16.gmra.mxu2 %vm151_vm0, %v3714_v32 }
  0x2e   :  { %3027 = vmatmul.msk.bf16.gmra.mxu3 %vm151_vm0, %v3714_v32 }
  0x3c   :  { %2980 = vmatmul.msk.bf16.gmra.mxu0 %vm151_vm0, %v3730_v35  ;;  %2996 = vmatmul.msk.bf16.gmra.mxu1 %vm151_vm0, %v3730_v35 }
  0x3d   :  { %3012 = vmatmul.msk.bf16.gmra.mxu2 %vm151_vm0, %v3730_v35 }
  0x3e   :  { %3028 = vmatmul.msk.bf16.gmra.mxu3 %vm151_vm0, %v3730_v35 }
  0x4c   :  { %2981 = vmatmul.msk.bf16.gmra.mxu0 %vm151_vm0, %v3746_v38  ;;  %2997 = vmatmul.msk.bf16.gmra.mxu1 %vm151_vm0, %v3746_v38 }
  0x4d   :  { %3013 = vmatmul.msk.bf16.gmra.mxu2 %vm151_vm0, %v3746_v38 }
  0x4e   :  { %3029 = vmatmul.msk.bf16.gmra.mxu3 %vm151_vm0, %v3746_v38 }
  0x5c   :  { %2982 = vmatmul.msk.bf16.gmra.mxu0 %vm151_vm0, %v3762_v41  ;;  %2998 = vmatmul.msk.bf16.gmra.mxu1 %vm151_vm0, %v3762_v41 }
  0x5d   :  { %3014 = vmatmul.msk.bf16.gmra.mxu2 %vm151_vm0, %v3762_v41 }
  0x5e   :  { %3030 = vmatmul.msk.bf16.gmra.mxu3 %vm151_vm0, %v3762_v41 }
  0x6c   :  { %2983 = vmatmul.msk.bf16.gmra.mxu0 %vm151_vm0, %v3778_v44  ;;  %2999 = vmatmul.msk.bf16.gmra.mxu1 %vm151_vm0, %v3778_v44 }
  0x6d   :  { %3015 = vmatmul.msk.bf16.gmra.mxu2 %vm151_vm0, %v3778_v44 }
  0x6e   :  { %3031 = vmatmul.msk.bf16.gmra.mxu3 %vm151_vm0, %v3778_v44 }
  0x7c   :  { %2984 = vmatmul.msk.bf16.gmra.mxu0 %vm151_vm0, %v3794_v47  ;;  %3000 = vmatmul.msk.bf16.gmra.mxu1 %vm151_vm0, %v3794_v47 }
  0x7d   :  { %3016 = vmatmul.msk.bf16.gmra.mxu2 %vm151_vm0, %v3794_v47 }
  0x7e   :  { %3032 = vmatmul.msk.bf16.gmra.mxu3 %vm151_vm0, %v3794_v47 }
  0x89   :  { %v209_v52 = vpop.f32.mrf.mxu0  ;;  %v298_v53 = vpop.f32.mrf.mxu1 }
  0x8a   :  { %v210_v56 = vadd.f32 %v209_v52, %v3815_v54  ;;  %v299_v58 = vadd.f32 %v298_v53, %v3819_v55  ;;  %v3879_v53 = vpack.c.bf16 %v58_v45, %v57_v43 }
  0x8c   :  { %2985 = vmatmul.msk.bf16.gmra.mxu0 %vm151_vm0, %v3810_v50  ;;  %3001 = vmatmul.msk.bf16.gmra.mxu1 %vm151_vm0, %v3810_v50  ;;  %v912_v1 = vmax.f32 %v210_v56, 0.0  ;;  %v913_v4 = vmax.f32 %v299_v58, 0.0 }
  0x8d   :  { %3017 = vmatmul.msk.bf16.gmra.mxu2 %vm151_vm0, %v3810_v50 }
  0x8e   :  { %3033 = vmatmul.msk.bf16.gmra.mxu3 %vm151_vm0, %v3810_v50 }
  0x90   :  { %v387_v57 = vpop.f32.mrf.mxu2 }
  0x91   :  { %v476_v59 = vpop.f32.mrf.mxu3  ;;  %v211_v60 = vpop.f32.mrf.mxu0  ;;  %v388_v9 = vadd.f32 %v387_v57, %v3830_v63 }
  0x92   :  { %v212_v61 = vadd.f32 %v211_v60, %v3815_v54  ;;  %v300_v62 = vpop.f32.mrf.mxu1  ;;  %v477_v11 = vadd.f32 %v476_v59, %v3833_v2 }
  0x93   :  { %v301_v0 = vadd.f32 %v300_v62, %v3819_v55  ;;  %v914_v20 = vmax.f32 %v388_v9, 0.0 }
  0x94   :  { %v920_v3 = vmax.f32 %v212_v61, 0.0  ;;  %v915_v22 = vmax.f32 %v477_v11, 0.0 }
  0x95   :  { %v921_v5 = vmax.f32 %v301_v0, 0.0 }
  0x96   :  { %v3841_v8 = vpack.c.bf16 %v920_v3, %v912_v1 }
  0x97   :  { %v3844_v10 = vpack.c.bf16 %v921_v5, %v913_v4 }
  0x98   :  { %v389_v12 = vpop.f32.mrf.mxu2 }
  0x99   :  { %v390_v14 = vadd.f32 %v389_v12, %v3830_v63  ;;  %v478_v15 = vpop.f32.mrf.mxu3  ;;  %v214_v17 = vpop.f32.mrf.mxu0 }
  0x9a   :  { %v479_v18 = vadd.f32 %v478_v15, %v3833_v2  ;;  %v303_v19 = vpop.f32.mrf.mxu1  ;;  %v215_v26 = vadd.f32 %v214_v17, %v3815_v54 }
  0x9b   :  { %v922_v21 = vmax.f32 %v390_v14, 0.0  ;;  %v304_v28 = vadd.f32 %v303_v19, %v3819_v55 }
  0x9c   :  { %v923_v23 = vmax.f32 %v479_v18, 0.0  ;;  %2986 = vmatmul.msk.bf16.gmra.mxu0 %vm151_vm0, %v3847_v13  ;;  %3002 = vmatmul.msk.bf16.gmra.mxu1 %vm151_vm0, %v3847_v13  ;;  %v928_v37 = vmax.f32 %v215_v26, 0.0 }
  0x9d   :  { %v3853_v24 = vpack.c.bf16 %v922_v21, %v914_v20  ;;  %3018 = vmatmul.msk.bf16.gmra.mxu2 %vm151_vm0, %v3847_v13  ;;  %v929_v40 = vmax.f32 %v304_v28, 0.0  ;;  %v59_v21 = vld [vmem:[%s5207_s0 + $0xb0] sm:$0xff] }
  0x9e   :  { %v3859_v25 = vpack.c.bf16 %v923_v23, %v915_v22  ;;  %3034 = vmatmul.msk.bf16.gmra.mxu3 %vm151_vm0, %v3847_v13  ;;  %v60_v22 = vld [vmem:[%s5207_s0 + $0xb8] sm:$0xff] }
  0xa0   :  { %v392_v27 = vpop.f32.mrf.mxu2 }
  0xa1   :  { %v481_v30 = vpop.f32.mrf.mxu3  ;;  %v216_v31 = vpop.f32.mrf.mxu0  ;;  %v393_v48 = vadd.f32 %v392_v27, %v3830_v63 }
  0xa2   :  { %v217_v33 = vadd.f32 %v216_v31, %v3815_v54  ;;  %v305_v34 = vpop.f32.mrf.mxu1  ;;  %v482_v51 = vadd.f32 %v481_v30, %v3833_v2  ;;  %v3911_v31 = vpack.c.bf16 %v60_v22, %v59_v21 }
  0xa3   :  { %v306_v36 = vadd.f32 %v305_v34, %v3819_v55  ;;  %v930_v61 = vmax.f32 %v393_v48, 0.0 }
  0xa4   :  { %v936_v39 = vmax.f32 %v217_v33, 0.0  ;;  %v931_v0 = vmax.f32 %v482_v51, 0.0 }
  0xa5   :  { %v937_v42 = vmax.f32 %v306_v36, 0.0 }
  0xa6   :  { %v3873_v46 = vpack.c.bf16 %v936_v39, %v928_v37 }
  0xa7   :  { %v3876_v49 = vpack.c.bf16 %v937_v42, %v929_v40 }
  0xa8   :  { %v394_v52 = vpop.f32.mrf.mxu2 }
  0xa9   :  { %v395_v56 = vadd.f32 %v394_v52, %v3830_v63  ;;  %v483_v57 = vpop.f32.mrf.mxu3  ;;  %v219_v58 = vpop.f32.mrf.mxu0 }
  0xaa   :  { %v484_v59 = vadd.f32 %v483_v57, %v3833_v2  ;;  %v308_v60 = vpop.f32.mrf.mxu1  ;;  %v220_v5 = vadd.f32 %v219_v58, %v3815_v54 }
  0xab   :  { %v938_v62 = vmax.f32 %v395_v56, 0.0  ;;  %v309_v7 = vadd.f32 %v308_v60, %v3819_v55 }
  0xac   :  { %v939_v1 = vmax.f32 %v484_v59, 0.0  ;;  %2987 = vmatmul.msk.bf16.gmra.mxu0 %vm151_vm0, %v3879_v53  ;;  %3003 = vmatmul.msk.bf16.gmra.mxu1 %vm151_vm0, %v3879_v53  ;;  %v944_v17 = vmax.f32 %v220_v5, 0.0 }
  0xad   :  { %3019 = vmatmul.msk.bf16.gmra.mxu2 %vm151_vm0, %v3879_v53  ;;  %v3889_v3 = vpack.c.bf16 %v938_v62, %v930_v61  ;;  %v945_v19 = vmax.f32 %v309_v7, 0.0  ;;  %v61_v7 = vld [vmem:[%s5207_s0 + $0xc0] sm:$0xff] }
  0xae   :  { %3035 = vmatmul.msk.bf16.gmra.mxu3 %vm151_vm0, %v3879_v53  ;;  %v3893_v4 = vpack.c.bf16 %v939_v1, %v931_v0 }
  0xb0   :  { %v397_v6 = vpop.f32.mrf.mxu2 }
  0xb1   :  { %v486_v9 = vpop.f32.mrf.mxu3  ;;  %v221_v11 = vpop.f32.mrf.mxu0  ;;  %v398_v26 = vadd.f32 %v397_v6, %v3830_v63 }
  0xb2   :  { %v222_v12 = vadd.f32 %v221_v11, %v3815_v54  ;;  %v310_v14 = vpop.f32.mrf.mxu1  ;;  %v487_v28 = vadd.f32 %v486_v9, %v3833_v2  ;;  %v62_v9 = vld [vmem:[%s5207_s0 + $0xc8] sm:$0xff] }
  0xb3   :  { %v311_v15 = vadd.f32 %v310_v14, %v3819_v55  ;;  %v946_v40 = vmax.f32 %v398_v26, 0.0 }
  0xb4   :  { %v952_v18 = vmax.f32 %v222_v12, 0.0  ;;  %v947_v43 = vmax.f32 %v487_v28, 0.0 }
  0xb5   :  { %v953_v20 = vmax.f32 %v311_v15, 0.0 }
  0xb6   :  { %v3905_v23 = vpack.c.bf16 %v952_v18, %v944_v17  ;;  %v3943_v18 = vpack.c.bf16 %v62_v9, %v61_v7 }
  0xb7   :  { %v3908_v27 = vpack.c.bf16 %v953_v20, %v945_v19 }
  0xb8   :  { %v399_v30 = vpop.f32.mrf.mxu2 }
  0xb9   :  { %v400_v33 = vadd.f32 %v399_v30, %v3830_v63  ;;  %v488_v34 = vpop.f32.mrf.mxu3  ;;  %v224_v36 = vpop.f32.mrf.mxu0 }
  0xba   :  { %v489_v37 = vadd.f32 %v488_v34, %v3833_v2  ;;  %v313_v39 = vpop.f32.mrf.mxu1  ;;  %v225_v52 = vadd.f32 %v224_v36, %v3815_v54 }
  0xbb   :  { %v954_v42 = vmax.f32 %v400_v33, 0.0  ;;  %v314_v57 = vadd.f32 %v313_v39, %v3819_v55 }
  0xbc   :  { %v955_v45 = vmax.f32 %v489_v37, 0.0  ;;  %2988 = vmatmul.msk.bf16.gmra.mxu0 %vm151_vm0, %v3911_v31  ;;  %3004 = vmatmul.msk.bf16.gmra.mxu1 %vm151_vm0, %v3911_v31  ;;  %v960_v0 = vmax.f32 %v225_v52, 0.0 }
  0xbd   :  { %3020 = vmatmul.msk.bf16.gmra.mxu2 %vm151_vm0, %v3911_v31  ;;  %v3921_v48 = vpack.c.bf16 %v954_v42, %v946_v40  ;;  %v961_v5 = vmax.f32 %v314_v57, 0.0 }
  0xbe   :  { %3036 = vmatmul.msk.bf16.gmra.mxu3 %vm151_vm0, %v3911_v31  ;;  %v3925_v51 = vpack.c.bf16 %v955_v45, %v947_v43 }
  0xc0   :  { %v402_v56 = vpop.f32.mrf.mxu2 }
  0xc1   :  { %v491_v58 = vpop.f32.mrf.mxu3  ;;  %v226_v59 = vpop.f32.mrf.mxu0  ;;  %v403_v12 = vadd.f32 %v402_v56, %v3830_v63 }
  0xc2   :  { %v227_v60 = vadd.f32 %v226_v59, %v3815_v54  ;;  %v315_v61 = vpop.f32.mrf.mxu1  ;;  %v492_v15 = vadd.f32 %v491_v58, %v3833_v2 }
  0xc3   :  { %v316_v62 = vadd.f32 %v315_v61, %v3819_v55  ;;  %v962_v28 = vmax.f32 %v403_v12, 0.0 }
  0xc4   :  { %v968_v1 = vmax.f32 %v227_v60, 0.0  ;;  %v963_v33 = vmax.f32 %v492_v15, 0.0 }
  0xc5   :  { %v969_v6 = vmax.f32 %v316_v62, 0.0  ;;  %v63_v62 = vld [vmem:[%s5207_s0 + $0xd0] sm:$0xff] }
  0xc6   :  { %v3937_v11 = vpack.c.bf16 %v968_v1, %v960_v0  ;;  %v64_v0 = vld [vmem:[%s5207_s0 + $0xd8] sm:$0xff] }
  0xc7   :  { %v3940_v14 = vpack.c.bf16 %v969_v6, %v961_v5  ;;  %v3975_v12 = vpack.c.bf16 %v64_v0, %v63_v62  ;;  %v65_v62 = vld [vmem:[%s5207_s0 + $0xe0] sm:$0xff]  ;;  %v66_v0 = vld [vmem:[%s5207_s0 + $0xe8] sm:$0xff] }
  0xc8   :  { %v404_v17 = vpop.f32.mrf.mxu2 }
  0xc9   :  { %v405_v19 = vadd.f32 %v404_v17, %v3830_v63  ;;  %v493_v20 = vpop.f32.mrf.mxu3  ;;  %v229_v21 = vpop.f32.mrf.mxu0 }
  0xca   :  { %v494_v22 = vadd.f32 %v493_v20, %v3833_v2  ;;  %v318_v26 = vpop.f32.mrf.mxu1  ;;  %v230_v39 = vadd.f32 %v229_v21, %v3815_v54 }
  0xcb   :  { %v970_v30 = vmax.f32 %v405_v19, 0.0  ;;  %v319_v42 = vadd.f32 %v318_v26, %v3819_v55 }
  0xcc   :  { %v971_v34 = vmax.f32 %v494_v22, 0.0  ;;  %2989 = vmatmul.msk.bf16.gmra.mxu0 %vm151_vm0, %v3943_v18  ;;  %3005 = vmatmul.msk.bf16.gmra.mxu1 %vm151_vm0, %v3943_v18  ;;  %v976_v58 = vmax.f32 %v230_v39, 0.0 }
  0xcd   :  { %3021 = vmatmul.msk.bf16.gmra.mxu2 %vm151_vm0, %v3943_v18  ;;  %v3953_v36 = vpack.c.bf16 %v970_v30, %v962_v28  ;;  %v977_v60 = vmax.f32 %v319_v42, 0.0 }
  0xce   :  { %3037 = vmatmul.msk.bf16.gmra.mxu3 %vm151_vm0, %v3943_v18  ;;  %v3957_v37 = vpack.c.bf16 %v971_v34, %v963_v33 }
  0xd0   :  { %v407_v40 = vpop.f32.mrf.mxu2 }
  0xd1   :  { %v496_v43 = vpop.f32.mrf.mxu3  ;;  %v231_v45 = vpop.f32.mrf.mxu0  ;;  %v408_v5 = vadd.f32 %v407_v40, %v3830_v63 }
  0xd2   :  { %v232_v52 = vadd.f32 %v231_v45, %v3815_v54  ;;  %v320_v56 = vpop.f32.mrf.mxu1  ;;  %v497_v7 = vadd.f32 %v496_v43, %v3833_v2 }
  0xd3   :  { %v321_v57 = vadd.f32 %v320_v56, %v3819_v55  ;;  %v978_v22 = vmax.f32 %v408_v5, 0.0 }
  0xd4   :  { %v984_v59 = vmax.f32 %v232_v52, 0.0  ;;  %v979_v28 = vmax.f32 %v497_v7, 0.0 }
  0xd5   :  { %v985_v61 = vmax.f32 %v321_v57, 0.0 }
  0xd6   :  { %v3969_v1 = vpack.c.bf16 %v984_v59, %v976_v58 }
  0xd7   :  { %v3972_v6 = vpack.c.bf16 %v985_v61, %v977_v60 }
  0xd8   :  { %v409_v9 = vpop.f32.mrf.mxu2 }
  0xd9   :  { %v410_v15 = vadd.f32 %v409_v9, %v3830_v63  ;;  %v498_v17 = vpop.f32.mrf.mxu3  ;;  %v234_v19 = vpop.f32.mrf.mxu0 }
  0xda   :  { %v499_v20 = vadd.f32 %v498_v17, %v3833_v2  ;;  %v323_v21 = vpop.f32.mrf.mxu1  ;;  %v235_v39 = vadd.f32 %v234_v19, %v3815_v54  ;;  %v4007_v19 = vpack.c.bf16 %v66_v0, %v65_v62 }
  0xdb   :  { %v986_v26 = vmax.f32 %v410_v15, 0.0  ;;  %v324_v42 = vadd.f32 %v323_v21, %v3819_v55 }
  0xdc   :  { %v987_v30 = vmax.f32 %v499_v20, 0.0  ;;  %2990 = vmatmul.msk.bf16.gmra.mxu0 %vm151_vm0, %v3975_v12  ;;  %3006 = vmatmul.msk.bf16.gmra.mxu1 %vm151_vm0, %v3975_v12  ;;  %v992_v58 = vmax.f32 %v235_v39, 0.0 }
  0xdd   :  { %3022 = vmatmul.msk.bf16.gmra.mxu2 %vm151_vm0, %v3975_v12  ;;  %v3985_v33 = vpack.c.bf16 %v986_v26, %v978_v22  ;;  %v993_v60 = vmax.f32 %v324_v42, 0.0 }
  0xde   :  { %3038 = vmatmul.msk.bf16.gmra.mxu3 %vm151_vm0, %v3975_v12  ;;  %v3989_v34 = vpack.c.bf16 %v987_v30, %v979_v28 }
  0xe0   :  { %v412_v40 = vpop.f32.mrf.mxu2 }
  0xe1   :  { %v501_v43 = vpop.f32.mrf.mxu3  ;;  %v236_v45 = vpop.f32.mrf.mxu0  ;;  %v413_v7 = vadd.f32 %v412_v40, %v3830_v63 }
  0xe2   :  { %v237_v52 = vadd.f32 %v236_v45, %v3815_v54  ;;  %v325_v56 = vpop.f32.mrf.mxu1  ;;  %v502_v15 = vadd.f32 %v501_v43, %v3833_v2  ;;  %v3392_v43 = vld [vmem:[#allocation2 + $0xb8] sm:$0xff] }
  0xe3   :  { %v326_v57 = vadd.f32 %v325_v56, %v3819_v55  ;;  %v994_v30 = vmax.f32 %v413_v7, 0.0  ;;  %v3400_v56 = vld [vmem:[#allocation2 + $0xf8] sm:$0xff]  ;;  %1990 = vmatpush.bf16.msra.mxu2 %v3392_v43 }
  0xe4   :  { %v1000_v59 = vmax.f32 %v237_v52, 0.0  ;;  %v995_v42 = vmax.f32 %v502_v15, 0.0  ;;  %v3376_v52 = vld [vmem:[#allocation2 + $0x38] sm:$0xff]  ;;  %2079 = vmatpush.bf16.msra.mxu3 %v3400_v56 }
  0xe5   :  { %v1001_v61 = vmax.f32 %v326_v57, 0.0  ;;  %1812 = vmatpush.bf16.msra.mxu0 %v3376_v52 }
  0xe6   :  { %v4001_v5 = vpack.c.bf16 %v1000_v59, %v992_v58 }
  0xe7   :  { %v4004_v9 = vpack.c.bf16 %v1001_v61, %v993_v60 }
  0xe8   :  { %v414_v17 = vpop.f32.mrf.mxu2 }
  0xe9   :  { %v415_v20 = vadd.f32 %v414_v17, %v3830_v63  ;;  %v503_v21 = vpop.f32.mrf.mxu3  ;;  %v239_v22 = vpop.f32.mrf.mxu0 }
  0xea   :  { %v504_v26 = vadd.f32 %v503_v21, %v3833_v2  ;;  %v328_v28 = vpop.f32.mrf.mxu1  ;;  %v240_v58 = vadd.f32 %v239_v22, %v3815_v54  ;;  %v3384_v21 = vld [vmem:[#allocation2 + $0x78] sm:$0xff]  ;;  %v67_v22 = vld [vmem:[%s5207_s0 + $0xf0] sm:$0xff] }
  0xeb   :  { %v1002_v39 = vmax.f32 %v415_v20, 0.0  ;;  %v329_v60 = vadd.f32 %v328_v28, %v3819_v55  ;;  %v68_v28 = vld [vmem:[%s5207_s0 + $0xf8] sm:$0xff]  ;;  %1901 = vmatpush.bf16.msra.mxu1 %v3384_v21 }
  0xec   :  { %v1003_v45 = vmax.f32 %v504_v26, 0.0  ;;  %2991 = vmatmul.msk.bf16.gmra.mxu0 %vm151_vm0, %v4007_v19  ;;  %3007 = vmatmul.msk.bf16.gmra.mxu1 %vm151_vm0, %v4007_v19  ;;  %v1008_v17 = vmax.f32 %v240_v58, 0.0  ;;  %v4039_v56 = vpack.c.bf16 %v68_v28, %v67_v22 }
  0xed   :  { %3023 = vmatmul.msk.bf16.gmra.mxu2 %vm151_vm0, %v4007_v19  ;;  %v4017_v40 = vpack.c.bf16 %v1002_v39, %v994_v30  ;;  %v1009_v26 = vmax.f32 %v329_v60, 0.0 }
  0xee   :  { %3039 = vmatmul.msk.bf16.gmra.mxu3 %vm151_vm0, %v4007_v19  ;;  %v4021_v57 = vpack.c.bf16 %v1003_v45, %v995_v42 }
  0xf0   :  { %v417_v59 = vpop.f32.mrf.mxu2 }
  0xf1   :  { %v506_v61 = vpop.f32.mrf.mxu3  ;;  %v241_v62 = vpop.f32.mrf.mxu0  ;;  %v418_v42 = vadd.f32 %v417_v59, %v3830_v63 }
  0xf2   :  { %v242_v0 = vadd.f32 %v241_v62, %v3815_v54  ;;  %v330_v7 = vpop.f32.mrf.mxu1  ;;  %v507_v43 = vadd.f32 %v506_v61, %v3833_v2 }
  0xf3   :  { %v331_v15 = vadd.f32 %v330_v7, %v3819_v55 }
  0xf4   :  { %v1016_v20 = vmax.f32 %v242_v0, 0.0 }
  0xf5   :  { %v1017_v30 = vmax.f32 %v331_v15, 0.0  ;;  %v1010_v15 = vmax.f32 %v418_v42, 0.0 }
  0xf6   :  { %v4033_v39 = vpack.c.bf16 %v1016_v20, %v1008_v17  ;;  %v1011_v17 = vmax.f32 %v507_v43, 0.0 }
  0xf7   :  { %v4036_v45 = vpack.c.bf16 %v1017_v30, %v1009_v26 }
  0xf8   :  { %5213 = vst [vmem:[#allocation5_spill] sm:$0xff] %v4033_v39  ;;  %v419_v52 = vpop.f32.mrf.mxu2 }
  0xf9   :  { %5214 = vst [vmem:[#allocation6_spill] sm:$0xff] %v4036_v45  ;;  %v420_v58 = vadd.f32 %v419_v52, %v3830_v63  ;;  %v508_v60 = vpop.f32.mrf.mxu3  ;;  %v244_v62 = vpop.f32.mrf.mxu0 }
  0xfa   :  { %v509_v0 = vadd.f32 %v508_v60, %v3833_v2  ;;  %v333_v7 = vpop.f32.mrf.mxu1  ;;  %v245_v26 = vadd.f32 %v244_v62, %v3815_v54 }
  0xfb   :  { %v1018_v21 = vmax.f32 %v420_v58, 0.0  ;;  %v334_v22 = vadd.f32 %v333_v7, %v3819_v55 }
  0xfc   :  { %v1019_v20 = vmax.f32 %v509_v0, 0.0  ;;  %2992 = vmatmul.msk.bf16.gmra.mxu0 %vm151_vm0, %v4039_v56  ;;  %3008 = vmatmul.msk.bf16.gmra.mxu1 %vm151_vm0, %v4039_v56  ;;  %v1024_v60 = vmax.f32 %v245_v26, 0.0 }
  0xfd   :  { %3024 = vmatmul.msk.bf16.gmra.mxu2 %vm151_vm0, %v4039_v56  ;;  %v4049_v59 = vpack.c.bf16 %v1018_v21, %v1010_v15  ;;  %v1025_v15 = vmax.f32 %v334_v22, 0.0 }
  0xfe   :  { %3040 = vmatmul.msk.bf16.gmra.mxu3 %vm151_vm0, %v4039_v56  ;;  %v4053_v61 = vpack.c.bf16 %v1019_v20, %v1011_v17 }
  0xff   :  { %5215 = vst [vmem:[#allocation7_spill] sm:$0xff] %v4049_v59 }
 0x100   :  { %5216 = vst [vmem:[#allocation8_spill] sm:$0xff] %v4053_v61  ;;  %v422_v30 = vpop.f32.mrf.mxu2 }
 0x101   :  { %v511_v28 = vpop.f32.mrf.mxu3  ;;  %v246_v42 = vpop.f32.mrf.mxu0  ;;  %v423_v17 = vadd.f32 %v422_v30, %v3830_v63 }
 0x102   :  { %v247_v43 = vadd.f32 %v246_v42, %v3815_v54  ;;  %v335_v52 = vpop.f32.mrf.mxu1  ;;  %v512_v62 = vadd.f32 %v511_v28, %v3833_v2  ;;  %v3375_v28 = vld [vmem:[#allocation2 + $0x30] sm:$0xff] }
 0x103   :  { %v336_v58 = vadd.f32 %v335_v52, %v3819_v55  ;;  %v1026_v26 = vmax.f32 %v423_v17, 0.0  ;;  %1813 = vmatpush.bf16.msra.mxu0 %v3375_v28 }
 0x104   :  { %v1032_v0 = vmax.f32 %v247_v43, 0.0  ;;  %v1027_v22 = vmax.f32 %v512_v62, 0.0 }
 0x105   :  { %v1033_v21 = vmax.f32 %v336_v58, 0.0 }
 0x106   :  { %v4059_v59 = vpack.c.bf16 %v1032_v0, %v1024_v60  ;;  %v3399_v60 = vld [vmem:[#allocation2 + $0xf0] sm:$0xff] }
 0x107   :  { %v4062_v20 = vpack.c.bf16 %v1033_v21, %v1025_v15  ;;  %2080 = vmatpush.bf16.msra.mxu3 %v3399_v60 }
 0x108   :  { %v424_v7 = vpop.f32.mrf.mxu2 }
 0x109   :  { %5217 = vst [vmem:[#allocation9_spill] sm:$0xff] %v4062_v20  ;;  %v425_v61 = vadd.f32 %v424_v7, %v3830_v63  ;;  %v513_v45 = vpop.f32.mrf.mxu3  ;;  %v249_v42 = vpop.f32.mrf.mxu0 }
 0x10a   :  { %v514_v39 = vadd.f32 %v513_v45, %v3833_v2  ;;  %v338_v52 = vpop.f32.mrf.mxu1  ;;  %v3391_v45 = vld [vmem:[#allocation2 + $0xb0] sm:$0xff] }
 0x10b   :  { %v1034_v43 = vmax.f32 %v425_v61, 0.0  ;;  %1991 = vmatpush.bf16.msra.mxu2 %v3391_v45  ;;  %v339_v15 = vadd.f32 %v338_v52, %v3819_v55 }
 0x10c   :  { %v1035_v58 = vmax.f32 %v514_v39, 0.0  ;;  %3041 = vmatmul.msk.bf16.vlgmr.msrb.gmra.mxu0 %vm151_vm0, %v3664_v16  ;;  %3057 = vmatmul.msk.bf16.vlgmr.msrb.gmra.mxu1 %vm151_vm0, %v3664_v16  ;;  %v250_v39 = vadd.f32 %v249_v42, %v3815_v54 }
 0x10d   :  { %3073 = vmatmul.msk.bf16.vlgmr.msrb.gmra.mxu2 %vm151_vm0, %v3664_v16  ;;  %v4073_v30 = vpack.c.bf16 %v1034_v43, %v1026_v26 }
 0x10e   :  { %3089 = vmatmul.msk.bf16.vlgmr.msrb.gmra.mxu3 %vm151_vm0, %v3664_v16  ;;  %v4077_v61 = vpack.c.bf16 %v1035_v58, %v1027_v22  ;;  %v1040_v26 = vmax.f32 %v250_v39, 0.0  ;;  %v1041_v22 = vmax.f32 %v339_v15, 0.0 }
 0x10f   :  { %5218 = vst [vmem:[#allocation10_spill] sm:$0xff] %v4073_v30  ;;  %v3383_v30 = vld [vmem:[#allocation2 + $0x70] sm:$0xff] }
 0x110   :  { %5219 = vst [vmem:[#allocation11_spill] sm:$0xff] %v4077_v61  ;;  %v427_v0 = vpop.f32.mrf.mxu2  ;;  %1902 = vmatpush.bf16.msra.mxu1 %v3383_v30 }
 0x111   :  { %v516_v21 = vpop.f32.mrf.mxu3  ;;  %v251_v17 = vpop.f32.mrf.mxu0  ;;  %v428_v45 = vadd.f32 %v427_v0, %v3830_v63 }
 0x112   :  { %v252_v62 = vadd.f32 %v251_v17, %v3815_v54  ;;  %v340_v7 = vpop.f32.mrf.mxu1  ;;  %v517_v52 = vadd.f32 %v516_v21, %v3833_v2 }
 0x113   :  { %v341_v16 = vadd.f32 %v340_v7, %v3819_v55  ;;  %v1042_v7 = vmax.f32 %v428_v45, 0.0 }
 0x114   :  { %v1048_v43 = vmax.f32 %v252_v62, 0.0 }
 0x115   :  { %v1049_v58 = vmax.f32 %v341_v16, 0.0  ;;  %v1043_v16 = vmax.f32 %v517_v52, 0.0 }
 0x116   :  { %v4083_v42 = vpack.c.bf16 %v1048_v43, %v1040_v26 }
 0x117   :  { %v4086_v28 = vpack.c.bf16 %v1049_v58, %v1041_v22 }
 0x118   :  { %v429_v60 = vpop.f32.mrf.mxu2 }
 0x119   :  { %5220 = vst [vmem:[#allocation12_spill] sm:$0xff] %v4086_v28  ;;  %v430_v17 = vadd.f32 %v429_v60, %v3830_v63  ;;  %v518_v61 = vpop.f32.mrf.mxu3  ;;  %v254_v20 = vpop.f32.mrf.mxu0 }
 0x11a   :  { %v519_v39 = vadd.f32 %v518_v61, %v3833_v2  ;;  %v343_v62 = vpop.f32.mrf.mxu1  ;;  %v255_v21 = vadd.f32 %v254_v20, %v3815_v54 }
 0x11b   :  { %v1050_v15 = vmax.f32 %v430_v17, 0.0  ;;  %v344_v43 = vadd.f32 %v343_v62, %v3819_v55 }
 0x11c   :  { %v1051_v30 = vmax.f32 %v519_v39, 0.0  ;;  %3042 = vmatmul.msk.bf16.gmra.mxu0 %vm151_vm0, %v3698_v29  ;;  %3058 = vmatmul.msk.bf16.gmra.mxu1 %vm151_vm0, %v3698_v29  ;;  %v1056_v17 = vmax.f32 %v255_v21, 0.0 }
 0x11d   :  { %3074 = vmatmul.msk.bf16.gmra.mxu2 %vm151_vm0, %v3698_v29  ;;  %v4097_v0 = vpack.c.bf16 %v1050_v15, %v1042_v7  ;;  %v1057_v7 = vmax.f32 %v344_v43, 0.0 }
 0x11e   :  { %3090 = vmatmul.msk.bf16.gmra.mxu3 %vm151_vm0, %v3698_v29  ;;  %v4101_v61 = vpack.c.bf16 %v1051_v30, %v1043_v16 }
 0x11f   :  { %5221 = vst [vmem:[#allocation13_spill] sm:$0xff] %v4097_v0 }
 0x120   :  { %5222 = vst [vmem:[#allocation14_spill] sm:$0xff] %v4101_v61  ;;  %v432_v26 = vpop.f32.mrf.mxu2 }
 0x121   :  { %v521_v22 = vpop.f32.mrf.mxu3  ;;  %v256_v58 = vpop.f32.mrf.mxu0  ;;  %v433_v29 = vadd.f32 %v432_v26, %v3830_v63 }
 0x122   :  { %v257_v45 = vadd.f32 %v256_v58, %v3815_v54  ;;  %v345_v52 = vpop.f32.mrf.mxu1  ;;  %v522_v20 = vadd.f32 %v521_v22, %v3833_v2  ;;  %v3374_v22 = vld [vmem:[#allocation2 + $0x28] sm:$0xff] }
 0x123   :  { %v346_v60 = vadd.f32 %v345_v52, %v3819_v55  ;;  %v1058_v21 = vmax.f32 %v433_v29, 0.0  ;;  %1814 = vmatpush.bf16.msra.mxu0 %v3374_v22 }
 0x124   :  { %v1064_v39 = vmax.f32 %v257_v45, 0.0  ;;  %v1059_v43 = vmax.f32 %v522_v20, 0.0 }
 0x125   :  { %v1065_v15 = vmax.f32 %v346_v60, 0.0 }
 0x126   :  { %v4107_v0 = vpack.c.bf16 %v1064_v39, %v1056_v17  ;;  %v3398_v17 = vld [vmem:[#allocation2 + $0xe8] sm:$0xff] }
 0x127   :  { %v4110_v16 = vpack.c.bf16 %v1065_v15, %v1057_v7  ;;  %2081 = vmatpush.bf16.msra.mxu3 %v3398_v17 }
 0x128   :  { %v434_v62 = vpop.f32.mrf.mxu2 }
 0x129   :  { %5223 = vst [vmem:[#allocation15_spill] sm:$0xff] %v4110_v16  ;;  %v435_v30 = vadd.f32 %v434_v62, %v3830_v63  ;;  %v523_v61 = vpop.f32.mrf.mxu3  ;;  %v259_v58 = vpop.f32.mrf.mxu0 }
 0x12a   :  { %v524_v28 = vadd.f32 %v523_v61, %v3833_v2  ;;  %v348_v52 = vpop.f32.mrf.mxu1  ;;  %v3390_v61 = vld [vmem:[#allocation2 + $0xa8] sm:$0xff] }
 0x12b   :  { %v1066_v45 = vmax.f32 %v435_v30, 0.0  ;;  %1992 = vmatpush.bf16.msra.mxu2 %v3390_v61  ;;  %v349_v15 = vadd.f32 %v348_v52, %v3819_v55 }
 0x12c   :  { %v1067_v60 = vmax.f32 %v524_v28, 0.0  ;;  %3043 = vmatmul.msk.bf16.gmra.mxu0 %vm151_vm0, %v3714_v32  ;;  %3059 = vmatmul.msk.bf16.gmra.mxu1 %vm151_vm0, %v3714_v32  ;;  %v260_v28 = vadd.f32 %v259_v58, %v3815_v54 }
 0x12d   :  { %3075 = vmatmul.msk.bf16.gmra.mxu2 %vm151_vm0, %v3714_v32  ;;  %v4121_v26 = vpack.c.bf16 %v1066_v45, %v1058_v21 }
 0x12e   :  { %3091 = vmatmul.msk.bf16.gmra.mxu3 %vm151_vm0, %v3714_v32  ;;  %v4125_v39 = vpack.c.bf16 %v1067_v60, %v1059_v43  ;;  %v1072_v21 = vmax.f32 %v260_v28, 0.0  ;;  %v1073_v43 = vmax.f32 %v349_v15, 0.0 }
 0x12f   :  { %5224 = vst [vmem:[#allocation16_spill] sm:$0xff] %v4121_v26  ;;  %v3382_v26 = vld [vmem:[#allocation2 + $0x68] sm:$0xff] }
 0x130   :  { %5225 = vst [vmem:[#allocation17_spill] sm:$0xff] %v4125_v39  ;;  %v437_v7 = vpop.f32.mrf.mxu2  ;;  %1903 = vmatpush.bf16.msra.mxu1 %v3382_v26 }
 0x131   :  { %v526_v29 = vpop.f32.mrf.mxu3  ;;  %v261_v20 = vpop.f32.mrf.mxu0  ;;  %v438_v61 = vadd.f32 %v437_v7, %v3830_v63 }
 0x132   :  { %v262_v62 = vadd.f32 %v261_v20, %v3815_v54  ;;  %v350_v30 = vpop.f32.mrf.mxu1  ;;  %v527_v52 = vadd.f32 %v526_v29, %v3833_v2 }
 0x133   :  { %v351_v32 = vadd.f32 %v350_v30, %v3819_v55  ;;  %v1074_v30 = vmax.f32 %v438_v61, 0.0 }
 0x134   :  { %v1080_v45 = vmax.f32 %v262_v62, 0.0 }
 0x135   :  { %v1081_v60 = vmax.f32 %v351_v32, 0.0  ;;  %v1075_v32 = vmax.f32 %v527_v52, 0.0 }
 0x136   :  { %v4131_v58 = vpack.c.bf16 %v1080_v45, %v1072_v21 }
 0x137   :  { %v4134_v22 = vpack.c.bf16 %v1081_v60, %v1073_v43 }
 0x138   :  { %v439_v17 = vpop.f32.mrf.mxu2 }
 0x139   :  { %5226 = vst [vmem:[#allocation18_spill] sm:$0xff] %v4134_v22  ;;  %v440_v20 = vadd.f32 %v439_v17, %v3830_v63  ;;  %v528_v39 = vpop.f32.mrf.mxu3  ;;  %v264_v16 = vpop.f32.mrf.mxu0 }
 0x13a   :  { %v529_v28 = vadd.f32 %v528_v39, %v3833_v2  ;;  %v353_v62 = vpop.f32.mrf.mxu1  ;;  %v265_v29 = vadd.f32 %v264_v16, %v3815_v54 }
 0x13b   :  { %v1082_v15 = vmax.f32 %v440_v20, 0.0  ;;  %v354_v45 = vadd.f32 %v353_v62, %v3819_v55 }
 0x13c   :  { %v1083_v26 = vmax.f32 %v529_v28, 0.0  ;;  %3044 = vmatmul.msk.bf16.gmra.mxu0 %vm151_vm0, %v3730_v35  ;;  %3060 = vmatmul.msk.bf16.gmra.mxu1 %vm151_vm0, %v3730_v35  ;;  %v1088_v20 = vmax.f32 %v265_v29, 0.0 }
 0x13d   :  { %3076 = vmatmul.msk.bf16.gmra.mxu2 %vm151_vm0, %v3730_v35  ;;  %v4145_v7 = vpack.c.bf16 %v1082_v15, %v1074_v30  ;;  %v1089_v30 = vmax.f32 %v354_v45, 0.0 }
 0x13e   :  { %3092 = vmatmul.msk.bf16.gmra.mxu3 %vm151_vm0, %v3730_v35  ;;  %v4149_v39 = vpack.c.bf16 %v1083_v26, %v1075_v32 }
 0x13f   :  { %5227 = vst [vmem:[#allocation19_spill] sm:$0xff] %v4145_v7 }
 0x140   :  { %5228 = vst [vmem:[#allocation20_spill] sm:$0xff] %v4149_v39  ;;  %v442_v21 = vpop.f32.mrf.mxu2 }
 0x141   :  { %v531_v43 = vpop.f32.mrf.mxu3  ;;  %v266_v60 = vpop.f32.mrf.mxu0  ;;  %v443_v35 = vadd.f32 %v442_v21, %v3830_v63 }
 0x142   :  { %v267_v61 = vadd.f32 %v266_v60, %v3815_v54  ;;  %v355_v52 = vpop.f32.mrf.mxu1  ;;  %v532_v16 = vadd.f32 %v531_v43, %v3833_v2  ;;  %v3373_v43 = vld [vmem:[#allocation2 + $0x20] sm:$0xff] }
 0x143   :  { %v356_v17 = vadd.f32 %v355_v52, %v3819_v55  ;;  %v1090_v29 = vmax.f32 %v443_v35, 0.0  ;;  %1815 = vmatpush.bf16.msra.mxu0 %v3373_v43 }
 0x144   :  { %v1096_v28 = vmax.f32 %v267_v61, 0.0  ;;  %v1091_v45 = vmax.f32 %v532_v16, 0.0 }
 0x145   :  { %v1097_v15 = vmax.f32 %v356_v17, 0.0 }
 0x146   :  { %v4155_v7 = vpack.c.bf16 %v1096_v28, %v1088_v20  ;;  %v3397_v20 = vld [vmem:[#allocation2 + $0xe0] sm:$0xff] }
 0x147   :  { %v4158_v32 = vpack.c.bf16 %v1097_v15, %v1089_v30  ;;  %2082 = vmatpush.bf16.msra.mxu3 %v3397_v20 }
 0x148   :  { %v444_v62 = vpop.f32.mrf.mxu2 }
 0x149   :  { %5229 = vst [vmem:[#allocation21_spill] sm:$0xff] %v4158_v32  ;;  %v445_v26 = vadd.f32 %v444_v62, %v3830_v63  ;;  %v533_v39 = vpop.f32.mrf.mxu3  ;;  %v269_v60 = vpop.f32.mrf.mxu0 }
 0x14a   :  { %v534_v22 = vadd.f32 %v533_v39, %v3833_v2  ;;  %v358_v52 = vpop.f32.mrf.mxu1  ;;  %v3389_v39 = vld [vmem:[#allocation2 + $0xa0] sm:$0xff] }
 0x14b   :  { %v1098_v61 = vmax.f32 %v445_v26, 0.0  ;;  %1993 = vmatpush.bf16.msra.mxu2 %v3389_v39  ;;  %v359_v15 = vadd.f32 %v358_v52, %v3819_v55 }
 0x14c   :  { %v1099_v17 = vmax.f32 %v534_v22, 0.0  ;;  %3045 = vmatmul.msk.bf16.gmra.mxu0 %vm151_vm0, %v3746_v38  ;;  %3061 = vmatmul.msk.bf16.gmra.mxu1 %vm151_vm0, %v3746_v38  ;;  %v270_v22 = vadd.f32 %v269_v60, %v3815_v54 }
 0x14d   :  { %3077 = vmatmul.msk.bf16.gmra.mxu2 %vm151_vm0, %v3746_v38  ;;  %v4169_v21 = vpack.c.bf16 %v1098_v61, %v1090_v29 }
 0x14e   :  { %3093 = vmatmul.msk.bf16.gmra.mxu3 %vm151_vm0, %v3746_v38  ;;  %v4173_v28 = vpack.c.bf16 %v1099_v17, %v1091_v45  ;;  %v1104_v29 = vmax.f32 %v270_v22, 0.0  ;;  %v1105_v45 = vmax.f32 %v359_v15, 0.0 }
 0x14f   :  { %5230 = vst [vmem:[#allocation22_spill] sm:$0xff] %v4169_v21  ;;  %v3381_v21 = vld [vmem:[#allocation2 + $0x60] sm:$0xff] }
 0x150   :  { %5231 = vst [vmem:[#allocation23_spill] sm:$0xff] %v4173_v28  ;;  %v447_v30 = vpop.f32.mrf.mxu2  ;;  %1904 = vmatpush.bf16.msra.mxu1 %v3381_v21 }
 0x151   :  { %v536_v35 = vpop.f32.mrf.mxu3  ;;  %v271_v16 = vpop.f32.mrf.mxu0  ;;  %v448_v39 = vadd.f32 %v447_v30, %v3830_v63 }
 0x152   :  { %v272_v62 = vadd.f32 %v271_v16, %v3815_v54  ;;  %v360_v26 = vpop.f32.mrf.mxu1  ;;  %v537_v52 = vadd.f32 %v536_v35, %v3833_v2 }
 0x153   :  { %v361_v38 = vadd.f32 %v360_v26, %v3819_v55  ;;  %v1106_v26 = vmax.f32 %v448_v39, 0.0 }
 0x154   :  { %v1112_v61 = vmax.f32 %v272_v62, 0.0 }
 0x155   :  { %v1113_v17 = vmax.f32 %v361_v38, 0.0  ;;  %v1107_v38 = vmax.f32 %v537_v52, 0.0 }
 0x156   :  { %v4179_v60 = vpack.c.bf16 %v1112_v61, %v1104_v29 }
 0x157   :  { %v4182_v43 = vpack.c.bf16 %v1113_v17, %v1105_v45 }
 0x158   :  { %v449_v20 = vpop.f32.mrf.mxu2 }
 0x159   :  { %5232 = vst [vmem:[#allocation24_spill] sm:$0xff] %v4182_v43  ;;  %v450_v16 = vadd.f32 %v449_v20, %v3830_v63  ;;  %v538_v28 = vpop.f32.mrf.mxu3  ;;  %v274_v32 = vpop.f32.mrf.mxu0 }
 0x15a   :  { %v539_v22 = vadd.f32 %v538_v28, %v3833_v2  ;;  %v363_v62 = vpop.f32.mrf.mxu1  ;;  %v275_v35 = vadd.f32 %v274_v32, %v3815_v54 }
 0x15b   :  { %v1114_v15 = vmax.f32 %v450_v16, 0.0  ;;  %v364_v61 = vadd.f32 %v363_v62, %v3819_v55 }
 0x15c   :  { %v1115_v21 = vmax.f32 %v539_v22, 0.0  ;;  %3046 = vmatmul.msk.bf16.gmra.mxu0 %vm151_vm0, %v3762_v41  ;;  %3062 = vmatmul.msk.bf16.gmra.mxu1 %vm151_vm0, %v3762_v41  ;;  %v1120_v16 = vmax.f32 %v275_v35, 0.0 }
 0x15d   :  { %3078 = vmatmul.msk.bf16.gmra.mxu2 %vm151_vm0, %v3762_v41  ;;  %v4193_v30 = vpack.c.bf16 %v1114_v15, %v1106_v26  ;;  %v1121_v26 = vmax.f32 %v364_v61, 0.0 }
 0x15e   :  { %3094 = vmatmul.msk.bf16.gmra.mxu3 %vm151_vm0, %v3762_v41  ;;  %v4197_v28 = vpack.c.bf16 %v1115_v21, %v1107_v38 }
 0x15f   :  { %5233 = vst [vmem:[#allocation25_spill] sm:$0xff] %v4193_v30 }
 0x160   :  { %5234 = vst [vmem:[#allocation26_spill] sm:$0xff] %v4197_v28  ;;  %v452_v29 = vpop.f32.mrf.mxu2 }
 0x161   :  { %v541_v45 = vpop.f32.mrf.mxu3  ;;  %v276_v17 = vpop.f32.mrf.mxu0  ;;  %v453_v41 = vadd.f32 %v452_v29, %v3830_v63 }
 0x162   :  { %v277_v39 = vadd.f32 %v276_v17, %v3815_v54  ;;  %v365_v52 = vpop.f32.mrf.mxu1  ;;  %v542_v32 = vadd.f32 %v541_v45, %v3833_v2  ;;  %v3372_v45 = vld [vmem:[#allocation2 + $0x18] sm:$0xff] }
 0x163   :  { %v366_v20 = vadd.f32 %v365_v52, %v3819_v55  ;;  %v1122_v35 = vmax.f32 %v453_v41, 0.0  ;;  %1816 = vmatpush.bf16.msra.mxu0 %v3372_v45 }
 0x164   :  { %v1128_v22 = vmax.f32 %v277_v39, 0.0  ;;  %v1123_v61 = vmax.f32 %v542_v32, 0.0 }
 0x165   :  { %v1129_v15 = vmax.f32 %v366_v20, 0.0 }
 0x166   :  { %v4203_v30 = vpack.c.bf16 %v1128_v22, %v1120_v16  ;;  %v3396_v16 = vld [vmem:[#allocation2 + $0xd8] sm:$0xff] }
 0x167   :  { %v4206_v38 = vpack.c.bf16 %v1129_v15, %v1121_v26  ;;  %2083 = vmatpush.bf16.msra.mxu3 %v3396_v16 }
 0x168   :  { %v454_v62 = vpop.f32.mrf.mxu2 }
 0x169   :  { %5235 = vst [vmem:[#allocation27_spill] sm:$0xff] %v4206_v38  ;;  %v455_v21 = vadd.f32 %v454_v62, %v3830_v63  ;;  %v543_v28 = vpop.f32.mrf.mxu3  ;;  %v279_v17 = vpop.f32.mrf.mxu0 }
 0x16a   :  { %v544_v43 = vadd.f32 %v543_v28, %v3833_v2  ;;  %v368_v52 = vpop.f32.mrf.mxu1  ;;  %v3388_v28 = vld [vmem:[#allocation2 + $0x98] sm:$0xff] }
 0x16b   :  { %v1130_v39 = vmax.f32 %v455_v21, 0.0  ;;  %1994 = vmatpush.bf16.msra.mxu2 %v3388_v28  ;;  %v369_v15 = vadd.f32 %v368_v52, %v3819_v55 }
 0x16c   :  { %v1131_v20 = vmax.f32 %v544_v43, 0.0  ;;  %3047 = vmatmul.msk.bf16.gmra.mxu0 %vm151_vm0, %v3778_v44  ;;  %3063 = vmatmul.msk.bf16.gmra.mxu1 %vm151_vm0, %v3778_v44  ;;  %v280_v43 = vadd.f32 %v279_v17, %v3815_v54 }
 0x16d   :  { %3079 = vmatmul.msk.bf16.gmra.mxu2 %vm151_vm0, %v3778_v44  ;;  %v4217_v29 = vpack.c.bf16 %v1130_v39, %v1122_v35 }
 0x16e   :  { %3095 = vmatmul.msk.bf16.gmra.mxu3 %vm151_vm0, %v3778_v44  ;;  %v4221_v22 = vpack.c.bf16 %v1131_v20, %v1123_v61  ;;  %v1136_v35 = vmax.f32 %v280_v43, 0.0  ;;  %v1137_v61 = vmax.f32 %v369_v15, 0.0 }
 0x16f   :  { %5236 = vst [vmem:[#allocation28_spill] sm:$0xff] %v4217_v29  ;;  %v3380_v29 = vld [vmem:[#allocation2 + $0x58] sm:$0xff] }
 0x170   :  { %5237 = vst [vmem:[#allocation29_spill] sm:$0xff] %v4221_v22  ;;  %v457_v26 = vpop.f32.mrf.mxu2  ;;  %1905 = vmatpush.bf16.msra.mxu1 %v3380_v29 }
 0x171   :  { %v546_v41 = vpop.f32.mrf.mxu3  ;;  %v281_v32 = vpop.f32.mrf.mxu0  ;;  %v458_v28 = vadd.f32 %v457_v26, %v3830_v63 }
 0x172   :  { %v282_v62 = vadd.f32 %v281_v32, %v3815_v54  ;;  %v370_v21 = vpop.f32.mrf.mxu1  ;;  %v547_v52 = vadd.f32 %v546_v41, %v3833_v2 }
 0x173   :  { %v371_v44 = vadd.f32 %v370_v21, %v3819_v55  ;;  %v1138_v21 = vmax.f32 %v458_v28, 0.0 }
 0x174   :  { %v1144_v39 = vmax.f32 %v282_v62, 0.0 }
 0x175   :  { %v1145_v20 = vmax.f32 %v371_v44, 0.0  ;;  %v1139_v44 = vmax.f32 %v547_v52, 0.0 }
 0x176   :  { %v4227_v17 = vpack.c.bf16 %v1144_v39, %v1136_v35 }
 0x177   :  { %v4230_v45 = vpack.c.bf16 %v1145_v20, %v1137_v61 }
 0x178   :  { %v459_v16 = vpop.f32.mrf.mxu2 }
 0x179   :  { %v460_v32 = vadd.f32 %v459_v16, %v3830_v63  ;;  %v548_v22 = vpop.f32.mrf.mxu3  ;;  %v284_v38 = vpop.f32.mrf.mxu0 }
 0x17a   :  { %v549_v43 = vadd.f32 %v548_v22, %v3833_v2  ;;  %v373_v62 = vpop.f32.mrf.mxu1  ;;  %v285_v41 = vadd.f32 %v284_v38, %v3815_v54 }
 0x17b   :  { %v1146_v15 = vmax.f32 %v460_v32, 0.0  ;;  %v374_v39 = vadd.f32 %v373_v62, %v3819_v55 }
 0x17c   :  { %v1147_v29 = vmax.f32 %v549_v43, 0.0  ;;  %3048 = vmatmul.msk.bf16.gmra.mxu0 %vm151_vm0, %v3794_v47  ;;  %3064 = vmatmul.msk.bf16.gmra.mxu1 %vm151_vm0, %v3794_v47  ;;  %v1152_v32 = vmax.f32 %v285_v41, 0.0 }
 0x17d   :  { %3080 = vmatmul.msk.bf16.gmra.mxu2 %vm151_vm0, %v3794_v47  ;;  %v4241_v26 = vpack.c.bf16 %v1146_v15, %v1138_v21  ;;  %v1153_v21 = vmax.f32 %v374_v39, 0.0 }
 0x17e   :  { %3096 = vmatmul.msk.bf16.gmra.mxu3 %vm151_vm0, %v3794_v47  ;;  %v4245_v22 = vpack.c.bf16 %v1147_v29, %v1139_v44 }
 0x17f   :  { %5238 = vst [vmem:[#allocation30_spill] sm:$0xff] %v4241_v26 }
 0x180   :  { %5239 = vst [vmem:[#allocation31_spill] sm:$0xff] %v4245_v22  ;;  %v462_v35 = vpop.f32.mrf.mxu2 }
 0x181   :  { %v551_v61 = vpop.f32.mrf.mxu3  ;;  %v286_v20 = vpop.f32.mrf.mxu0  ;;  %v463_v47 = vadd.f32 %v462_v35, %v3830_v63  ;;  %v3565_v35 = vld [vmem:[%s5209_s2] sm:$0xff] }
 0x182   :  { %v287_v28 = vadd.f32 %v286_v20, %v3815_v54  ;;  %v375_v52 = vpop.f32.mrf.mxu1  ;;  %v552_v38 = vadd.f32 %v551_v61, %v3833_v2  ;;  %v4266_v61 = vperm.slane %v3565_v35, 5 }
 0x183   :  { %v376_v16 = vadd.f32 %v375_v52, %v3819_v55  ;;  %v1154_v41 = vmax.f32 %v463_v47, 0.0 }
 0x184   :  { %v1160_v43 = vmax.f32 %v287_v28, 0.0  ;;  %v1155_v39 = vmax.f32 %v552_v38, 0.0 }
 0x185   :  { %v1161_v15 = vmax.f32 %v376_v16, 0.0  ;;  %v4262_v16 = vperm.slane %v3565_v35, 4 }
 0x186   :  { %v4251_v26 = vpack.c.bf16 %v1160_v43, %v1152_v32  ;;  %v3395_v32 = vld [vmem:[#allocation2 + $0xd0] sm:$0xff] }
 0x187   :  { %v4254_v44 = vpack.c.bf16 %v1161_v15, %v1153_v21  ;;  %2084 = vmatpush.bf16.msra.mxu3 %v3395_v32 }
 0x188   :  { %5240 = vst [vmem:[#allocation32_spill] sm:$0xff] %v4251_v26  ;;  %v464_v62 = vpop.f32.mrf.mxu2 }
 0x189   :  { %5241 = vst [vmem:[#allocation33_spill] sm:$0xff] %v4254_v44  ;;  %v465_v29 = vadd.f32 %v464_v62, %v3830_v63  ;;  %v553_v22 = vpop.f32.mrf.mxu3  ;;  %v565_v54 = vpop.f32.mrf.mxu0 }
 0x18a   :  { %v554_v20 = vadd.f32 %v553_v22, %v3833_v2  ;;  %v654_v55 = vpop.f32.mrf.mxu1  ;;  %v3387_v2 = vld [vmem:[#allocation2 + $0x90] sm:$0xff]  ;;  %v566_v21 = vadd.f32 %v565_v54, %v4262_v16 }
 0x18b   :  { %v1162_v28 = vmax.f32 %v465_v29, 0.0  ;;  %v3371_v22 = vld [vmem:[#allocation2 + $0x10] sm:$0xff]  ;;  %1995 = vmatpush.bf16.msra.mxu2 %v3387_v2  ;;  %v655_v47 = vadd.f32 %v654_v55, %v4266_v61 }
 0x18c   :  { %v1163_v52 = vmax.f32 %v554_v20, 0.0  ;;  %3049 = vmatmul.msk.bf16.gmra.mxu0 %vm151_vm0, %v3810_v50  ;;  %3065 = vmatmul.msk.bf16.gmra.mxu1 %vm151_vm0, %v3810_v50  ;;  %v3379_v54 = vld [vmem:[#allocation2 + $0x50] sm:$0xff] }
 0x18d   :  { %3081 = vmatmul.msk.bf16.gmra.mxu2 %vm151_vm0, %v3810_v50  ;;  %v4272_v63 = vpack.c.bf16 %v1162_v28, %v1154_v41  ;;  %1817 = vmatpush.bf16.msra.mxu0 %v3371_v22  ;;  %v4281_v41 = vperm.slane %v3565_v35, 6  ;;  %v916_v28 = vmax.f32 %v566_v21, 0.0 }
 0x18e   :  { %3097 = vmatmul.msk.bf16.gmra.mxu3 %vm151_vm0, %v3810_v50  ;;  %v4276_v43 = vpack.c.bf16 %v1163_v52, %v1155_v39  ;;  %v4284_v39 = vperm.slane %v3565_v35, 7  ;;  %1906 = vmatpush.bf16.msra.mxu1 %v3379_v54 }
 0x18f   :  { %5242 = vst [vmem:[#allocation34_spill] sm:$0xff] %v4272_v63 }
 0x190   :  { %5243 = vst [vmem:[#allocation35_spill] sm:$0xff] %v4276_v43  ;;  %v743_v15 = vpop.f32.mrf.mxu2  ;;  %v917_v43 = vmax.f32 %v655_v47, 0.0 }
 0x191   :  { %v832_v38 = vpop.f32.mrf.mxu3  ;;  %v567_v62 = vpop.f32.mrf.mxu0  ;;  %v744_v55 = vadd.f32 %v743_v15, %v4281_v41 }
 0x192   :  { %v568_v29 = vadd.f32 %v567_v62, %v4262_v16  ;;  %v656_v20 = vpop.f32.mrf.mxu1  ;;  %v833_v62 = vadd.f32 %v832_v38, %v4284_v39 }
 0x193   :  { %v657_v50 = vadd.f32 %v656_v20, %v4266_v61  ;;  %v918_v26 = vmax.f32 %v744_v55, 0.0 }
 0x194   :  { %v924_v52 = vmax.f32 %v568_v29, 0.0 }
 0x195   :  { %v925_v2 = vmax.f32 %v657_v50, 0.0  ;;  %v919_v50 = vmax.f32 %v833_v62, 0.0 }
 0x196   :  { %v4286_v22 = vpack.c.bf16 %v924_v52, %v916_v28 }
 0x197   :  { %v4289_v32 = vpack.c.bf16 %v925_v2, %v917_v43 }
 0x198   :  { %v745_v63 = vpop.f32.mrf.mxu2 }
 0x199   :  { %5244 = vst [vmem:[#allocation36_spill] sm:$0xff] %v4289_v32  ;;  %v746_v44 = vadd.f32 %v745_v63, %v4281_v41  ;;  %v834_v20 = vpop.f32.mrf.mxu3  ;;  %v570_v21 = vpop.f32.mrf.mxu0 }
 0x19a   :  { %v835_v35 = vadd.f32 %v834_v20, %v4284_v39  ;;  %v659_v29 = vpop.f32.mrf.mxu1 }
 0x19b   :  { %v926_v47 = vmax.f32 %v746_v44, 0.0  ;;  %v571_v44 = vadd.f32 %v570_v21, %v4262_v16  ;;  %v660_v38 = vadd.f32 %v659_v29, %v4266_v61 }
 0x19c   :  { %v927_v28 = vmax.f32 %v835_v35, 0.0  ;;  %3050 = vmatmul.msk.bf16.gmra.mxu0 %vm151_vm0, %v3847_v13  ;;  %3066 = vmatmul.msk.bf16.gmra.mxu1 %vm151_vm0, %v3847_v13 }
 0x19d   :  { %v4296_v15 = vpack.c.bf16 %v926_v47, %v918_v26  ;;  %3082 = vmatmul.msk.bf16.gmra.mxu2 %vm151_vm0, %v3847_v13  ;;  %v932_v62 = vmax.f32 %v571_v44, 0.0  ;;  %v933_v35 = vmax.f32 %v660_v38, 0.0 }
 0x19e   :  { %v4302_v63 = vpack.c.bf16 %v927_v28, %v919_v50  ;;  %3098 = vmatmul.msk.bf16.gmra.mxu3 %vm151_vm0, %v3847_v13 }
 0x19f   :  { %5245 = vst [vmem:[#allocation37_spill] sm:$0xff] %v4296_v15 }
 0x1a0   :  { %5246 = vst [vmem:[#allocation38_spill] sm:$0xff] %v4302_v63  ;;  %v748_v43 = vpop.f32.mrf.mxu2 }
 0x1a1   :  { %v837_v52 = vpop.f32.mrf.mxu3  ;;  %v572_v54 = vpop.f32.mrf.mxu0  ;;  %v749_v13 = vadd.f32 %v748_v43, %v4281_v41 }
 0x1a2   :  { %v573_v26 = vadd.f32 %v572_v54, %v4262_v16  ;;  %v661_v2 = vpop.f32.mrf.mxu1  ;;  %v838_v21 = vadd.f32 %v837_v52, %v4284_v39  ;;  %v3370_v52 = vld [vmem:[#allocation2 + $0x8] sm:$0xff] }
 0x1a3   :  { %v662_v55 = vadd.f32 %v661_v2, %v4266_v61  ;;  %v934_v44 = vmax.f32 %v749_v13, 0.0  ;;  %1818 = vmatpush.bf16.msra.mxu0 %v3370_v52 }
 0x1a4   :  { %v940_v20 = vmax.f32 %v573_v26, 0.0  ;;  %v935_v38 = vmax.f32 %v838_v21, 0.0 }
 0x1a5   :  { %v941_v47 = vmax.f32 %v662_v55, 0.0 }
 0x1a6   :  { %v4310_v50 = vpack.c.bf16 %v940_v20, %v932_v62  ;;  %v3394_v62 = vld [vmem:[#allocation2 + $0xc8] sm:$0xff] }
 0x1a7   :  { %v4313_v28 = vpack.c.bf16 %v941_v47, %v933_v35  ;;  %2085 = vmatpush.bf16.msra.mxu3 %v3394_v62 }
 0x1a8   :  { %v750_v29 = vpop.f32.mrf.mxu2 }
 0x1a9   :  { %5247 = vst [vmem:[#allocation39_spill] sm:$0xff] %v4313_v28  ;;  %v751_v63 = vadd.f32 %v750_v29, %v4281_v41  ;;  %v839_v15 = vpop.f32.mrf.mxu3  ;;  %v575_v54 = vpop.f32.mrf.mxu0 }
 0x1aa   :  { %v840_v32 = vadd.f32 %v839_v15, %v4284_v39  ;;  %v664_v2 = vpop.f32.mrf.mxu1  ;;  %v3386_v15 = vld [vmem:[#allocation2 + $0x88] sm:$0xff] }
 0x1ab   :  { %v942_v26 = vmax.f32 %v751_v63, 0.0  ;;  %1996 = vmatpush.bf16.msra.mxu2 %v3386_v15  ;;  %v665_v35 = vadd.f32 %v664_v2, %v4266_v61 }
 0x1ac   :  { %v943_v55 = vmax.f32 %v840_v32, 0.0  ;;  %3051 = vmatmul.msk.bf16.gmra.mxu0 %vm151_vm0, %v3879_v53  ;;  %3067 = vmatmul.msk.bf16.gmra.mxu1 %vm151_vm0, %v3879_v53  ;;  %v576_v32 = vadd.f32 %v575_v54, %v4262_v16 }
 0x1ad   :  { %3083 = vmatmul.msk.bf16.gmra.mxu2 %vm151_vm0, %v3879_v53  ;;  %v4324_v43 = vpack.c.bf16 %v942_v26, %v934_v44 }
 0x1ae   :  { %3099 = vmatmul.msk.bf16.gmra.mxu3 %vm151_vm0, %v3879_v53  ;;  %v4328_v63 = vpack.c.bf16 %v943_v55, %v935_v38  ;;  %v948_v44 = vmax.f32 %v576_v32, 0.0  ;;  %v949_v38 = vmax.f32 %v665_v35, 0.0 }
 0x1af   :  { %5248 = vst [vmem:[#allocation40_spill] sm:$0xff] %v4324_v43  ;;  %v3378_v43 = vld [vmem:[#allocation2 + $0x48] sm:$0xff] }
 0x1b0   :  { %5249 = vst [vmem:[#allocation41_spill] sm:$0xff] %v4328_v63  ;;  %v753_v20 = vpop.f32.mrf.mxu2  ;;  %1907 = vmatpush.bf16.msra.mxu1 %v3378_v43 }
 0x1b1   :  { %v842_v47 = vpop.f32.mrf.mxu3  ;;  %v577_v13 = vpop.f32.mrf.mxu0  ;;  %v754_v15 = vadd.f32 %v753_v20, %v4281_v41 }
 0x1b2   :  { %v578_v21 = vadd.f32 %v577_v13, %v4262_v16  ;;  %v666_v29 = vpop.f32.mrf.mxu1  ;;  %v843_v2 = vadd.f32 %v842_v47, %v4284_v39 }
 0x1b3   :  { %v667_v53 = vadd.f32 %v666_v29, %v4266_v61  ;;  %v950_v29 = vmax.f32 %v754_v15, 0.0 }
 0x1b4   :  { %v956_v26 = vmax.f32 %v578_v21, 0.0 }
 0x1b5   :  { %v957_v55 = vmax.f32 %v667_v53, 0.0  ;;  %v951_v53 = vmax.f32 %v843_v2, 0.0 }
 0x1b6   :  { %v4334_v54 = vpack.c.bf16 %v956_v26, %v948_v44 }
 0x1b7   :  { %v4337_v52 = vpack.c.bf16 %v957_v55, %v949_v38 }
 0x1b8   :  { %v755_v62 = vpop.f32.mrf.mxu2 }
 0x1b9   :  { %5250 = vst [vmem:[#allocation42_spill] sm:$0xff] %v4337_v52  ;;  %v756_v13 = vadd.f32 %v755_v62, %v4281_v41  ;;  %v844_v63 = vpop.f32.mrf.mxu3  ;;  %v580_v28 = vpop.f32.mrf.mxu0 }
 0x1ba   :  { %v845_v32 = vadd.f32 %v844_v63, %v4284_v39  ;;  %v669_v21 = vpop.f32.mrf.mxu1  ;;  %v581_v47 = vadd.f32 %v580_v28, %v4262_v16 }
 0x1bb   :  { %v958_v35 = vmax.f32 %v756_v13, 0.0  ;;  %v670_v26 = vadd.f32 %v669_v21, %v4266_v61 }
 0x1bc   :  { %v959_v43 = vmax.f32 %v845_v32, 0.0  ;;  %3052 = vmatmul.msk.bf16.gmra.mxu0 %vm151_vm0, %v3911_v31  ;;  %3068 = vmatmul.msk.bf16.gmra.mxu1 %vm151_vm0, %v3911_v31  ;;  %v964_v13 = vmax.f32 %v581_v47, 0.0 }
 0x1bd   :  { %3084 = vmatmul.msk.bf16.gmra.mxu2 %vm151_vm0, %v3911_v31  ;;  %v4348_v20 = vpack.c.bf16 %v958_v35, %v950_v29  ;;  %v965_v29 = vmax.f32 %v670_v26, 0.0 }
 0x1be   :  { %3100 = vmatmul.msk.bf16.gmra.mxu3 %vm151_vm0, %v3911_v31  ;;  %v4352_v63 = vpack.c.bf16 %v959_v43, %v951_v53 }
 0x1bf   :  { %5251 = vst [vmem:[#allocation43_spill] sm:$0xff] %v4348_v20 }
 0x1c0   :  { %5252 = vst [vmem:[#allocation44_spill] sm:$0xff] %v4352_v63  ;;  %v758_v44 = vpop.f32.mrf.mxu2 }
 0x1c1   :  { %v847_v38 = vpop.f32.mrf.mxu3  ;;  %v582_v55 = vpop.f32.mrf.mxu0  ;;  %v759_v31 = vadd.f32 %v758_v44, %v4281_v41 }
 0x1c2   :  { %v583_v15 = vadd.f32 %v582_v55, %v4262_v16  ;;  %v671_v2 = vpop.f32.mrf.mxu1  ;;  %v848_v28 = vadd.f32 %v847_v38, %v4284_v39  ;;  %v3369_v38 = vld [vmem:[#allocation2] sm:$0xff] }
 0x1c3   :  { %v672_v62 = vadd.f32 %v671_v2, %v4266_v61  ;;  %v966_v47 = vmax.f32 %v759_v31, 0.0  ;;  %1819 = vmatpush.bf16.msra.mxu0 %v3369_v38 }
 0x1c4   :  { %v972_v32 = vmax.f32 %v583_v15, 0.0  ;;  %v967_v26 = vmax.f32 %v848_v28, 0.0 }
 0x1c5   :  { %v973_v35 = vmax.f32 %v672_v62, 0.0 }
 0x1c6   :  { %v4358_v20 = vpack.c.bf16 %v972_v32, %v964_v13  ;;  %v3393_v13 = vld [vmem:[#allocation2 + $0xc0] sm:$0xff] }
 0x1c7   :  { %v4361_v53 = vpack.c.bf16 %v973_v35, %v965_v29  ;;  %2086 = vmatpush.bf16.msra.mxu3 %v3393_v13 }
 0x1c8   :  { %v760_v21 = vpop.f32.mrf.mxu2 }
 0x1c9   :  { %5253 = vst [vmem:[#allocation45_spill] sm:$0xff] %v4361_v53  ;;  %v761_v43 = vadd.f32 %v760_v21, %v4281_v41  ;;  %v849_v63 = vpop.f32.mrf.mxu3  ;;  %v585_v55 = vpop.f32.mrf.mxu0 }
 0x1ca   :  { %v850_v52 = vadd.f32 %v849_v63, %v4284_v39  ;;  %v674_v2 = vpop.f32.mrf.mxu1  ;;  %v3385_v63 = vld [vmem:[#allocation2 + $0x80] sm:$0xff] }
 0x1cb   :  { %v974_v15 = vmax.f32 %v761_v43, 0.0  ;;  %1997 = vmatpush.bf16.msra.mxu2 %v3385_v63  ;;  %v675_v35 = vadd.f32 %v674_v2, %v4266_v61 }
 0x1cc   :  { %v975_v62 = vmax.f32 %v850_v52, 0.0  ;;  %3053 = vmatmul.msk.bf16.gmra.mxu0 %vm151_vm0, %v3943_v18  ;;  %3069 = vmatmul.msk.bf16.gmra.mxu1 %vm151_vm0, %v3943_v18  ;;  %v586_v52 = vadd.f32 %v585_v55, %v4262_v16 }
 0x1cd   :  { %3085 = vmatmul.msk.bf16.gmra.mxu2 %vm151_vm0, %v3943_v18  ;;  %v4372_v44 = vpack.c.bf16 %v974_v15, %v966_v47 }
 0x1ce   :  { %3101 = vmatmul.msk.bf16.gmra.mxu3 %vm151_vm0, %v3943_v18  ;;  %v4376_v32 = vpack.c.bf16 %v975_v62, %v967_v26  ;;  %v980_v47 = vmax.f32 %v586_v52, 0.0  ;;  %v981_v26 = vmax.f32 %v675_v35, 0.0 }
 0x1cf   :  { %5254 = vst [vmem:[#allocation46_spill] sm:$0xff] %v4372_v44  ;;  %v3377_v44 = vld [vmem:[#allocation2 + $0x40] sm:$0xff] }
 0x1d0   :  { %5255 = vst [vmem:[#allocation47_spill] sm:$0xff] %v4376_v32  ;;  %v763_v29 = vpop.f32.mrf.mxu2  ;;  %1908 = vmatpush.bf16.msra.mxu1 %v3377_v44 }
 0x1d1   :  { %v852_v31 = vpop.f32.mrf.mxu3  ;;  %v587_v28 = vpop.f32.mrf.mxu0  ;;  %v764_v63 = vadd.f32 %v763_v29, %v4281_v41 }
 0x1d2   :  { %v588_v21 = vadd.f32 %v587_v28, %v4262_v16  ;;  %v676_v43 = vpop.f32.mrf.mxu1  ;;  %v853_v2 = vadd.f32 %v852_v31, %v4284_v39 }
 0x1d3   :  { %v677_v18 = vadd.f32 %v676_v43, %v4266_v61  ;;  %v982_v43 = vmax.f32 %v764_v63, 0.0 }
 0x1d4   :  { %v988_v15 = vmax.f32 %v588_v21, 0.0 }
 0x1d5   :  { %v989_v62 = vmax.f32 %v677_v18, 0.0  ;;  %v983_v18 = vmax.f32 %v853_v2, 0.0 }
 0x1d6   :  { %v4382_v55 = vpack.c.bf16 %v988_v15, %v980_v47 }
 0x1d7   :  { %v4385_v38 = vpack.c.bf16 %v989_v62, %v981_v26 }
 0x1d8   :  { %v765_v13 = vpop.f32.mrf.mxu2 }
 0x1d9   :  { %5256 = vst [vmem:[#allocation48_spill] sm:$0xff] %v4385_v38  ;;  %v766_v28 = vadd.f32 %v765_v13, %v4281_v41  ;;  %v854_v32 = vpop.f32.mrf.mxu3  ;;  %v590_v53 = vpop.f32.mrf.mxu0 }
 0x1da   :  { %v855_v52 = vadd.f32 %v854_v32, %v4284_v39  ;;  %v679_v21 = vpop.f32.mrf.mxu1  ;;  %v591_v31 = vadd.f32 %v590_v53, %v4262_v16 }
 0x1db   :  { %v990_v35 = vmax.f32 %v766_v28, 0.0  ;;  %v680_v15 = vadd.f32 %v679_v21, %v4266_v61 }
 0x1dc   :  { %v991_v44 = vmax.f32 %v855_v52, 0.0  ;;  %3054 = vmatmul.msk.bf16.gmra.mxu0 %vm151_vm0, %v3975_v12  ;;  %3070 = vmatmul.msk.bf16.gmra.mxu1 %vm151_vm0, %v3975_v12  ;;  %v996_v28 = vmax.f32 %v591_v31, 0.0 }
 0x1dd   :  { %3086 = vmatmul.msk.bf16.gmra.mxu2 %vm151_vm0, %v3975_v12  ;;  %v4396_v29 = vpack.c.bf16 %v990_v35, %v982_v43  ;;  %v997_v43 = vmax.f32 %v680_v15, 0.0 }
 0x1de   :  { %3102 = vmatmul.msk.bf16.gmra.mxu3 %vm151_vm0, %v3975_v12  ;;  %v4400_v32 = vpack.c.bf16 %v991_v44, %v983_v18 }
 0x1df   :  { %5257 = vst [vmem:[#allocation49_spill] sm:$0xff] %v4396_v29 }
 0x1e0   :  { %5258 = vst [vmem:[#allocation50_spill] sm:$0xff] %v4400_v32  ;;  %v768_v47 = vpop.f32.mrf.mxu2 }
 0x1e1   :  { %v857_v26 = vpop.f32.mrf.mxu3  ;;  %v592_v62 = vpop.f32.mrf.mxu0  ;;  %v769_v12 = vadd.f32 %v768_v47, %v4281_v41 }
 0x1e2   :  { %v593_v63 = vadd.f32 %v592_v62, %v4262_v16  ;;  %v681_v2 = vpop.f32.mrf.mxu1  ;;  %v858_v53 = vadd.f32 %v857_v26, %v4284_v39  ;;  %v3408_v26 = vld [vmem:[#allocation2 + $0x138] sm:$0xff] }
 0x1e3   :  { %v682_v13 = vadd.f32 %v681_v2, %v4266_v61  ;;  %v998_v31 = vmax.f32 %v769_v12, 0.0  ;;  %2168 = vmatpush.bf16.msrb.mxu0 %v3408_v26 }
 0x1e4   :  { %v1004_v52 = vmax.f32 %v593_v63, 0.0  ;;  %v999_v15 = vmax.f32 %v858_v53, 0.0 }
 0x1e5   :  { %v1005_v35 = vmax.f32 %v682_v13, 0.0 }
 0x1e6   :  { %v4406_v29 = vpack.c.bf16 %v1004_v52, %v996_v28  ;;  %v3432_v28 = vld [vmem:[#allocation2 + $0x1f8] sm:$0xff] }
 0x1e7   :  { %v4409_v18 = vpack.c.bf16 %v1005_v35, %v997_v43  ;;  %2435 = vmatpush.bf16.msrb.mxu3 %v3432_v28 }
 0x1e8   :  { %v770_v21 = vpop.f32.mrf.mxu2 }
 0x1e9   :  { %5259 = vst [vmem:[#allocation51_spill] sm:$0xff] %v4409_v18  ;;  %v771_v44 = vadd.f32 %v770_v21, %v4281_v41  ;;  %v859_v32 = vpop.f32.mrf.mxu3  ;;  %v595_v62 = vpop.f32.mrf.mxu0 }
 0x1ea   :  { %v860_v38 = vadd.f32 %v859_v32, %v4284_v39  ;;  %v684_v2 = vpop.f32.mrf.mxu1  ;;  %v3424_v32 = vld [vmem:[#allocation2 + $0x1b8] sm:$0xff] }
 0x1eb   :  { %v1006_v63 = vmax.f32 %v771_v44, 0.0  ;;  %2346 = vmatpush.bf16.msrb.mxu2 %v3424_v32  ;;  %v685_v35 = vadd.f32 %v684_v2, %v4266_v61 }
 0x1ec   :  { %v1007_v13 = vmax.f32 %v860_v38, 0.0  ;;  %3055 = vmatmul.msk.bf16.gmra.mxu0 %vm151_vm0, %v4007_v19  ;;  %3071 = vmatmul.msk.bf16.gmra.mxu1 %vm151_vm0, %v4007_v19  ;;  %v596_v38 = vadd.f32 %v595_v62, %v4262_v16 }
 0x1ed   :  { %3087 = vmatmul.msk.bf16.gmra.mxu2 %vm151_vm0, %v4007_v19  ;;  %v4420_v47 = vpack.c.bf16 %v1006_v63, %v998_v31 }
 0x1ee   :  { %3103 = vmatmul.msk.bf16.gmra.mxu3 %vm151_vm0, %v4007_v19  ;;  %v4424_v52 = vpack.c.bf16 %v1007_v13, %v999_v15  ;;  %v1012_v31 = vmax.f32 %v596_v38, 0.0  ;;  %v1013_v15 = vmax.f32 %v685_v35, 0.0 }
 0x1ef   :  { %5260 = vst [vmem:[#allocation52_spill] sm:$0xff] %v4420_v47  ;;  %v3416_v47 = vld [vmem:[#allocation2 + $0x178] sm:$0xff] }
 0x1f0   :  { %5261 = vst [vmem:[#allocation53_spill] sm:$0xff] %v4424_v52  ;;  %v773_v43 = vpop.f32.mrf.mxu2  ;;  %2257 = vmatpush.bf16.msrb.mxu1 %v3416_v47 }
 0x1f1   :  { %v862_v12 = vpop.f32.mrf.mxu3  ;;  %v597_v53 = vpop.f32.mrf.mxu0  ;;  %v774_v32 = vadd.f32 %v773_v43, %v4281_v41 }
 0x1f2   :  { %v598_v21 = vadd.f32 %v597_v53, %v4262_v16  ;;  %v686_v44 = vpop.f32.mrf.mxu1  ;;  %v863_v2 = vadd.f32 %v862_v12, %v4284_v39 }
 0x1f3   :  { %v687_v19 = vadd.f32 %v686_v44, %v4266_v61  ;;  %v1014_v44 = vmax.f32 %v774_v32, 0.0 }
 0x1f4   :  { %v1020_v63 = vmax.f32 %v598_v21, 0.0 }
 0x1f5   :  { %v1021_v13 = vmax.f32 %v687_v19, 0.0  ;;  %v1015_v19 = vmax.f32 %v863_v2, 0.0 }
 0x1f6   :  { %v4430_v62 = vpack.c.bf16 %v1020_v63, %v1012_v31 }
 0x1f7   :  { %v4433_v26 = vpack.c.bf16 %v1021_v13, %v1013_v15 }
 0x1f8   :  { %v775_v28 = vpop.f32.mrf.mxu2 }
 0x1f9   :  { %5262 = vst [vmem:[#allocation54_spill] sm:$0xff] %v4433_v26  ;;  %v776_v53 = vadd.f32 %v775_v28, %v4281_v41  ;;  %v864_v52 = vpop.f32.mrf.mxu3  ;;  %v600_v18 = vpop.f32.mrf.mxu0 }
 0x1fa   :  { %v865_v38 = vadd.f32 %v864_v52, %v4284_v39  ;;  %v689_v21 = vpop.f32.mrf.mxu1  ;;  %v601_v12 = vadd.f32 %v600_v18, %v4262_v16 }
 0x1fb   :  { %v1022_v35 = vmax.f32 %v776_v53, 0.0  ;;  %v690_v63 = vadd.f32 %v689_v21, %v4266_v61 }
 0x1fc   :  { %v1023_v47 = vmax.f32 %v865_v38, 0.0  ;;  %3056 = vmatmul.msk.bf16.gmra.mxu0 %vm151_vm0, %v4039_v56  ;;  %3072 = vmatmul.msk.bf16.gmra.mxu1 %vm151_vm0, %v4039_v56  ;;  %v1028_v53 = vmax.f32 %v601_v12, 0.0 }
 0x1fd   :  { %3088 = vmatmul.msk.bf16.gmra.mxu2 %vm151_vm0, %v4039_v56  ;;  %v4444_v43 = vpack.c.bf16 %v1022_v35, %v1014_v44  ;;  %v1029_v44 = vmax.f32 %v690_v63, 0.0 }
 0x1fe   :  { %3104 = vmatmul.msk.bf16.gmra.mxu3 %vm151_vm0, %v4039_v56  ;;  %v4448_v52 = vpack.c.bf16 %v1023_v47, %v1015_v19 }
 0x1ff   :  { %5263 = vst [vmem:[#allocation55_spill] sm:$0xff] %v4444_v43 }
 0x200   :  { %5264 = vst [vmem:[#allocation56_spill] sm:$0xff] %v4448_v52  ;;  %v778_v31 = vpop.f32.mrf.mxu2 }
 0x201   :  { %v867_v15 = vpop.f32.mrf.mxu3  ;;  %v602_v13 = vpop.f32.mrf.mxu0  ;;  %v779_v56 = vadd.f32 %v778_v31, %v4281_v41 }
 0x202   :  { %v603_v32 = vadd.f32 %v602_v13, %v4262_v16  ;;  %v691_v2 = vpop.f32.mrf.mxu1  ;;  %v868_v18 = vadd.f32 %v867_v15, %v4284_v39  ;;  %v3423_v15 = vld [vmem:[#allocation2 + $0x1b0] sm:$0xff] }
 0x203   :  { %v692_v28 = vadd.f32 %v691_v2, %v4266_v61  ;;  %v1030_v12 = vmax.f32 %v779_v56, 0.0  ;;  %2347 = vmatpush.bf16.msrb.mxu2 %v3423_v15 }
 0x204   :  { %v1036_v38 = vmax.f32 %v603_v32, 0.0  ;;  %v1031_v63 = vmax.f32 %v868_v18, 0.0 }
 0x205   :  { %v1037_v35 = vmax.f32 %v692_v28, 0.0 }
 0x206   :  { %v4454_v43 = vpack.c.bf16 %v1036_v38, %v1028_v53  ;;  %v3407_v53 = vld [vmem:[#allocation2 + $0x130] sm:$0xff] }
 0x207   :  { %v4457_v19 = vpack.c.bf16 %v1037_v35, %v1029_v44  ;;  %v3431_v38 = vld [vmem:[#allocation2 + $0x1f0] sm:$0xff]  ;;  %2169 = vmatpush.bf16.msrb.mxu0 %v3407_v53 }
 0x208   :  { %v780_v21 = vpop.f32.mrf.mxu2  ;;  %2436 = vmatpush.bf16.msrb.mxu3 %v3431_v38 }
 0x209   :  { %v781_v47 = vadd.f32 %v780_v21, %v4281_v41  ;;  %v869_v52 = vpop.f32.mrf.mxu3  ;;  %v605_v13 = vpop.f32.mrf.mxu0 }
 0x20a   :  { %v870_v26 = vadd.f32 %v869_v52, %v4284_v39  ;;  %v694_v2 = vpop.f32.mrf.mxu1  ;;  %v606_v52 = vadd.f32 %v605_v13, %v4262_v16 }
 0x20b   :  { %v1038_v32 = vmax.f32 %v781_v47, 0.0  ;;  %v3415_v47 = vld [vmem:[#allocation2 + $0x170] sm:$0xff] }
 0x20c   :  { %v1039_v28 = vmax.f32 %v870_v26, 0.0  ;;  %1820 = vmatmul.bf16.vlgmr.msra.gmra.mxu0 %v3841_v8  ;;  %1909 = vmatmul.bf16.vlgmr.msra.gmra.mxu1 %v3844_v10  ;;  %v695_v8 = vadd.f32 %v694_v2, %v4266_v61  ;;  %v1044_v18 = vmax.f32 %v606_v52, 0.0 }
 0x20d   :  { %1998 = vmatmul.bf16.vlgmr.msra.gmra.mxu2 %v3853_v24  ;;  %v4465_v31 = vpack.c.bf16 %v1038_v32, %v1030_v12  ;;  %2258 = vmatpush.bf16.msrb.mxu1 %v3415_v47 }
 0x20e   :  { %2087 = vmatmul.bf16.vlgmr.msra.gmra.mxu3 %v3859_v25  ;;  %v4468_v44 = vpack.c.bf16 %v1039_v28, %v1031_v63  ;;  %v1045_v12 = vmax.f32 %v695_v8, 0.0 }
 0x210   :  { %v783_v35 = vpop.f32.mrf.mxu2 }
 0x211   :  { %v872_v26 = vpop.f32.mrf.mxu3  ;;  %v607_v10 = vpop.f32.mrf.mxu0  ;;  %v784_v63 = vadd.f32 %v783_v35, %v4281_v41 }
 0x212   :  { %v608_v24 = vadd.f32 %v607_v10, %v4262_v16  ;;  %v696_v56 = vpop.f32.mrf.mxu1  ;;  %v873_v2 = vadd.f32 %v872_v26, %v4284_v39 }
 0x213   :  { %v697_v25 = vadd.f32 %v696_v56, %v4266_v61  ;;  %v1046_v56 = vmax.f32 %v784_v63, 0.0 }
 0x214   :  { %v1052_v21 = vmax.f32 %v608_v24, 0.0 }
 0x215   :  { %v1053_v32 = vmax.f32 %v697_v25, 0.0  ;;  %v1047_v25 = vmax.f32 %v873_v2, 0.0 }
 0x216   :  { %v4474_v13 = vpack.c.bf16 %v1052_v21, %v1044_v18 }
 0x217   :  { %v4477_v28 = vpack.c.bf16 %v1053_v32, %v1045_v12 }
 0x218   :  { %v785_v15 = vpop.f32.mrf.mxu2 }
 0x219   :  { %v786_v53 = vadd.f32 %v785_v15, %v4281_v41  ;;  %v874_v38 = vpop.f32.mrf.mxu3  ;;  %v610_v10 = vpop.f32.mrf.mxu0 }
 0x21a   :  { %v875_v52 = vadd.f32 %v874_v38, %v4284_v39  ;;  %v699_v24 = vpop.f32.mrf.mxu1  ;;  %v611_v18 = vadd.f32 %v610_v10, %v4262_v16 }
 0x21b   :  { %v1054_v8 = vmax.f32 %v786_v53, 0.0  ;;  %v700_v12 = vadd.f32 %v699_v24, %v4266_v61 }
 0x21c   :  { %v1055_v47 = vmax.f32 %v875_v52, 0.0  ;;  %1825 = vmatmul.bf16.gmra.mxu0 %v3873_v46  ;;  %1914 = vmatmul.bf16.gmra.mxu1 %v3876_v49  ;;  %v1060_v15 = vmax.f32 %v611_v18, 0.0 }
 0x21d   :  { %2003 = vmatmul.bf16.gmra.mxu2 %v3889_v3  ;;  %v4485_v35 = vpack.c.bf16 %v1054_v8, %v1046_v56  ;;  %v1061_v53 = vmax.f32 %v700_v12, 0.0 }
 0x21e   :  { %2092 = vmatmul.bf16.gmra.mxu3 %v3893_v4  ;;  %v4488_v26 = vpack.c.bf16 %v1055_v47, %v1047_v25 }
 0x220   :  { %v788_v21 = vpop.f32.mrf.mxu2 }
 0x221   :  { %v877_v32 = vpop.f32.mrf.mxu3  ;;  %v612_v63 = vpop.f32.mrf.mxu0  ;;  %v789_v4 = vadd.f32 %v788_v21, %v4281_v41 }
 0x222   :  { %v613_v2 = vadd.f32 %v612_v63, %v4262_v16  ;;  %v701_v46 = vpop.f32.mrf.mxu1  ;;  %v878_v10 = vadd.f32 %v877_v32, %v4284_v39  ;;  %v3422_v32 = vld [vmem:[#allocation2 + $0x1a8] sm:$0xff] }
 0x223   :  { %v702_v49 = vadd.f32 %v701_v46, %v4266_v61  ;;  %v1062_v18 = vmax.f32 %v789_v4, 0.0  ;;  %2348 = vmatpush.bf16.msrb.mxu2 %v3422_v32 }
 0x224   :  { %v1068_v3 = vmax.f32 %v613_v2, 0.0  ;;  %v1063_v12 = vmax.f32 %v878_v10, 0.0 }
 0x225   :  { %v1069_v38 = vmax.f32 %v702_v49, 0.0 }
 0x226   :  { %v4494_v52 = vpack.c.bf16 %v1068_v3, %v1060_v15  ;;  %v3406_v15 = vld [vmem:[#allocation2 + $0x128] sm:$0xff] }
 0x227   :  { %v4497_v56 = vpack.c.bf16 %v1069_v38, %v1061_v53  ;;  %v3430_v3 = vld [vmem:[#allocation2 + $0x1e8] sm:$0xff]  ;;  %2170 = vmatpush.bf16.msrb.mxu0 %v3406_v15 }
 0x228   :  { %v790_v24 = vpop.f32.mrf.mxu2  ;;  %2437 = vmatpush.bf16.msrb.mxu3 %v3430_v3 }
 0x229   :  { %v791_v8 = vadd.f32 %v790_v24, %v4281_v41  ;;  %v879_v25 = vpop.f32.mrf.mxu3  ;;  %v615_v47 = vpop.f32.mrf.mxu0 }
 0x22a   :  { %v880_v63 = vadd.f32 %v879_v25, %v4284_v39  ;;  %v704_v46 = vpop.f32.mrf.mxu1  ;;  %v616_v38 = vadd.f32 %v615_v47, %v4262_v16 }
 0x22b   :  { %v1070_v2 = vmax.f32 %v791_v8, 0.0 }
 0x22c   :  { %v1071_v49 = vmax.f32 %v880_v63, 0.0  ;;  %1830 = vmatmul.bf16.gmra.mxu0 %v3905_v23  ;;  %1919 = vmatmul.bf16.gmra.mxu1 %v3908_v27  ;;  %v705_v23 = vadd.f32 %v704_v46, %v4266_v61  ;;  %v1076_v8 = vmax.f32 %v616_v38, 0.0  ;;  %v3414_v63 = vld [vmem:[#allocation2 + $0x168] sm:$0xff] }
 0x22d   :  { %2008 = vmatmul.bf16.gmra.mxu2 %v3921_v48  ;;  %v4505_v21 = vpack.c.bf16 %v1070_v2, %v1062_v18  ;;  %2259 = vmatpush.bf16.msrb.mxu1 %v3414_v63 }
 0x22e   :  { %2097 = vmatmul.bf16.gmra.mxu3 %v3925_v51  ;;  %v4508_v53 = vpack.c.bf16 %v1071_v49, %v1063_v12  ;;  %v1077_v18 = vmax.f32 %v705_v23, 0.0 }
 0x230   :  { %v793_v4 = vpop.f32.mrf.mxu2 }
 0x231   :  { %v882_v10 = vpop.f32.mrf.mxu3  ;;  %v617_v27 = vpop.f32.mrf.mxu0  ;;  %v794_v12 = vadd.f32 %v793_v4, %v4281_v41 }
 0x232   :  { %v618_v48 = vadd.f32 %v617_v27, %v4262_v16  ;;  %v706_v24 = vpop.f32.mrf.mxu1  ;;  %v883_v46 = vadd.f32 %v882_v10, %v4284_v39 }
 0x233   :  { %v707_v51 = vadd.f32 %v706_v24, %v4266_v61  ;;  %v1078_v24 = vmax.f32 %v794_v12, 0.0 }
 0x234   :  { %v1084_v25 = vmax.f32 %v618_v48, 0.0 }
 0x235   :  { %v1085_v2 = vmax.f32 %v707_v51, 0.0  ;;  %v1079_v51 = vmax.f32 %v883_v46, 0.0 }
 0x236   :  { %v4514_v47 = vpack.c.bf16 %v1084_v25, %v1076_v8 }
 0x237   :  { %v4517_v49 = vpack.c.bf16 %v1085_v2, %v1077_v18 }
 0x238   :  { %v795_v32 = vpop.f32.mrf.mxu2 }
 0x239   :  { %v796_v15 = vadd.f32 %v795_v32, %v4281_v41  ;;  %v884_v3 = vpop.f32.mrf.mxu3  ;;  %v620_v27 = vpop.f32.mrf.mxu0 }
 0x23a   :  { %v885_v38 = vadd.f32 %v884_v3, %v4284_v39  ;;  %v709_v48 = vpop.f32.mrf.mxu1  ;;  %v621_v8 = vadd.f32 %v620_v27, %v4262_v16 }
 0x23b   :  { %v1086_v23 = vmax.f32 %v796_v15, 0.0  ;;  %v710_v18 = vadd.f32 %v709_v48, %v4266_v61 }
 0x23c   :  { %v1087_v63 = vmax.f32 %v885_v38, 0.0  ;;  %1835 = vmatmul.bf16.gmra.mxu0 %v3937_v11  ;;  %1924 = vmatmul.bf16.gmra.mxu1 %v3940_v14  ;;  %v1092_v32 = vmax.f32 %v621_v8, 0.0 }
 0x23d   :  { %2013 = vmatmul.bf16.gmra.mxu2 %v3953_v36  ;;  %v4525_v4 = vpack.c.bf16 %v1086_v23, %v1078_v24  ;;  %v1093_v15 = vmax.f32 %v710_v18, 0.0 }
 0x23e   :  { %2102 = vmatmul.bf16.gmra.mxu3 %v3957_v37  ;;  %v4528_v10 = vpack.c.bf16 %v1087_v63, %v1079_v51 }
 0x240   :  { %v798_v25 = vpop.f32.mrf.mxu2 }
 0x241   :  { %v887_v2 = vpop.f32.mrf.mxu3  ;;  %v622_v12 = vpop.f32.mrf.mxu0  ;;  %v799_v37 = vadd.f32 %v798_v25, %v4281_v41 }
 0x242   :  { %v623_v46 = vadd.f32 %v622_v12, %v4262_v16  ;;  %v711_v11 = vpop.f32.mrf.mxu1  ;;  %v888_v27 = vadd.f32 %v887_v2, %v4284_v39  ;;  %v3421_v2 = vld [vmem:[#allocation2 + $0x1a0] sm:$0xff] }
 0x243   :  { %v712_v14 = vadd.f32 %v711_v11, %v4266_v61  ;;  %v1094_v8 = vmax.f32 %v799_v37, 0.0  ;;  %2349 = vmatpush.bf16.msrb.mxu2 %v3421_v2 }
 0x244   :  { %v1100_v36 = vmax.f32 %v623_v46, 0.0  ;;  %v1095_v18 = vmax.f32 %v888_v27, 0.0 }
 0x245   :  { %v1101_v3 = vmax.f32 %v712_v14, 0.0 }
 0x246   :  { %v4534_v38 = vpack.c.bf16 %v1100_v36, %v1092_v32  ;;  %v3405_v32 = vld [vmem:[#allocation2 + $0x120] sm:$0xff] }
 0x247   :  { %v4537_v24 = vpack.c.bf16 %v1101_v3, %v1093_v15  ;;  %v3429_v36 = vld [vmem:[#allocation2 + $0x1e0] sm:$0xff]  ;;  %2171 = vmatpush.bf16.msrb.mxu0 %v3405_v32 }
 0x248   :  { %v800_v48 = vpop.f32.mrf.mxu2  ;;  %2438 = vmatpush.bf16.msrb.mxu3 %v3429_v36 }
 0x249   :  { %v801_v23 = vadd.f32 %v800_v48, %v4281_v41  ;;  %v889_v51 = vpop.f32.mrf.mxu3  ;;  %v625_v63 = vpop.f32.mrf.mxu0 }
 0x24a   :  { %v890_v12 = vadd.f32 %v889_v51, %v4284_v39  ;;  %v714_v11 = vpop.f32.mrf.mxu1  ;;  %v626_v3 = vadd.f32 %v625_v63, %v4262_v16 }
 0x24b   :  { %v1102_v46 = vmax.f32 %v801_v23, 0.0 }
 0x24c   :  { %v1103_v14 = vmax.f32 %v890_v12, 0.0  ;;  %1840 = vmatmul.bf16.gmra.mxu0 %v3969_v1  ;;  %1929 = vmatmul.bf16.gmra.mxu1 %v3972_v6  ;;  %v715_v1 = vadd.f32 %v714_v11, %v4266_v61  ;;  %v1108_v23 = vmax.f32 %v626_v3, 0.0  ;;  %v3413_v12 = vld [vmem:[#allocation2 + $0x160] sm:$0xff] }
 0x24d   :  { %2018 = vmatmul.bf16.gmra.mxu2 %v3985_v33  ;;  %v4545_v25 = vpack.c.bf16 %v1102_v46, %v1094_v8  ;;  %2260 = vmatpush.bf16.msrb.mxu1 %v3413_v12 }
 0x24e   :  { %2107 = vmatmul.bf16.gmra.mxu3 %v3989_v34  ;;  %v4548_v15 = vpack.c.bf16 %v1103_v14, %v1095_v18  ;;  %v1109_v8 = vmax.f32 %v715_v1, 0.0 }
 0x250   :  { %v803_v37 = vpop.f32.mrf.mxu2 }
 0x251   :  { %v892_v27 = vpop.f32.mrf.mxu3  ;;  %v627_v6 = vpop.f32.mrf.mxu0  ;;  %v804_v18 = vadd.f32 %v803_v37, %v4281_v41 }
 0x252   :  { %v628_v33 = vadd.f32 %v627_v6, %v4262_v16  ;;  %v716_v48 = vpop.f32.mrf.mxu1  ;;  %v893_v11 = vadd.f32 %v892_v27, %v4284_v39 }
 0x253   :  { %v717_v34 = vadd.f32 %v716_v48, %v4266_v61  ;;  %v1110_v48 = vmax.f32 %v804_v18, 0.0 }
 0x254   :  { %v1116_v51 = vmax.f32 %v628_v33, 0.0 }
 0x255   :  { %v1117_v46 = vmax.f32 %v717_v34, 0.0  ;;  %v1111_v34 = vmax.f32 %v893_v11, 0.0 }
 0x256   :  { %v4554_v63 = vpack.c.bf16 %v1116_v51, %v1108_v23 }
 0x257   :  { %v4557_v14 = vpack.c.bf16 %v1117_v46, %v1109_v8 }
 0x258   :  { %v805_v2 = vpop.f32.mrf.mxu2 }
 0x259   :  { %v806_v32 = vadd.f32 %v805_v2, %v4281_v41  ;;  %v894_v36 = vpop.f32.mrf.mxu3  ;;  %v630_v6 = vpop.f32.mrf.mxu0 }
 0x25a   :  { %v895_v3 = vadd.f32 %v894_v36, %v4284_v39  ;;  %v719_v33 = vpop.f32.mrf.mxu1  ;;  %v631_v23 = vadd.f32 %v630_v6, %v4262_v16 }
 0x25b   :  { %v1118_v1 = vmax.f32 %v806_v32, 0.0  ;;  %v720_v8 = vadd.f32 %v719_v33, %v4266_v61 }
 0x25c   :  { %v1119_v12 = vmax.f32 %v895_v3, 0.0  ;;  %1845 = vmatmul.bf16.gmra.mxu0 %v4001_v5  ;;  %1934 = vmatmul.bf16.gmra.mxu1 %v4004_v9  ;;  %v1124_v2 = vmax.f32 %v631_v23, 0.0 }
 0x25d   :  { %2023 = vmatmul.bf16.gmra.mxu2 %v4017_v40  ;;  %v4565_v37 = vpack.c.bf16 %v1118_v1, %v1110_v48  ;;  %v1125_v32 = vmax.f32 %v720_v8, 0.0 }
 0x25e   :  { %2112 = vmatmul.bf16.gmra.mxu3 %v4021_v57  ;;  %v4568_v27 = vpack.c.bf16 %v1119_v12, %v1111_v34 }
 0x260   :  { %v808_v51 = vpop.f32.mrf.mxu2 }
 0x261   :  { %v897_v46 = vpop.f32.mrf.mxu3  ;;  %v632_v18 = vpop.f32.mrf.mxu0  ;;  %v809_v57 = vadd.f32 %v808_v51, %v4281_v41  ;;  %v5269_v51 = vld [vmem:[#allocation7_spill] sm:$0xff] }
 0x262   :  { %v633_v11 = vadd.f32 %v632_v18, %v4262_v16  ;;  %v721_v5 = vpop.f32.mrf.mxu1  ;;  %v898_v6 = vadd.f32 %v897_v46, %v4284_v39  ;;  %v5271_v46 = vld [vmem:[#allocation8_spill] sm:$0xff] }
 0x263   :  { %v722_v9 = vadd.f32 %v721_v5, %v4266_v61  ;;  %v1126_v23 = vmax.f32 %v809_v57, 0.0 }
 0x264   :  { %v1132_v40 = vmax.f32 %v633_v11, 0.0  ;;  %v1127_v8 = vmax.f32 %v898_v6, 0.0 }
 0x265   :  { %v1133_v36 = vmax.f32 %v722_v9, 0.0 }
 0x266   :  { %v4574_v3 = vpack.c.bf16 %v1132_v40, %v1124_v2  ;;  %v5267_v2 = vld [vmem:[#allocation5_spill] sm:$0xff]  ;;  %v5268_v40 = vld [vmem:[#allocation6_spill] sm:$0xff] }
 0x267   :  { %v4577_v48 = vpack.c.bf16 %v1133_v36, %v1125_v32  ;;  %v3420_v36 = vld [vmem:[#allocation2 + $0x198] sm:$0xff] }
 0x268   :  { %5265 = vst [vmem:[#allocation57_spill] sm:$0xff] %v4574_v3  ;;  %v810_v33 = vpop.f32.mrf.mxu2  ;;  %2350 = vmatpush.bf16.msrb.mxu2 %v3420_v36 }
 0x269   :  { %5266 = vst [vmem:[#allocation58_spill] sm:$0xff] %v4577_v48  ;;  %v811_v1 = vadd.f32 %v810_v33, %v4281_v41  ;;  %v899_v34 = vpop.f32.mrf.mxu3  ;;  %v635_v12 = vpop.f32.mrf.mxu0  ;;  %v3404_v33 = vld [vmem:[#allocation2 + $0x118] sm:$0xff] }
 0x26a   :  { %v900_v18 = vadd.f32 %v899_v34, %v4284_v39  ;;  %v724_v5 = vpop.f32.mrf.mxu1  ;;  %v3428_v48 = vld [vmem:[#allocation2 + $0x1d8] sm:$0xff]  ;;  %v636_v57 = vadd.f32 %v635_v12, %v4262_v16  ;;  %2172 = vmatpush.bf16.msrb.mxu0 %v3404_v33 }
 0x26b   :  { %v1134_v11 = vmax.f32 %v811_v1, 0.0  ;;  %v725_v6 = vadd.f32 %v724_v5, %v4266_v61  ;;  %2439 = vmatpush.bf16.msrb.mxu3 %v3428_v48 }
 0x26c   :  { %v1135_v9 = vmax.f32 %v900_v18, 0.0  ;;  %1850 = vmatmul.bf16.gmra.mxu0 %v5267_v2  ;;  %1939 = vmatmul.bf16.gmra.mxu1 %v5268_v40  ;;  %v3412_v40 = vld [vmem:[#allocation2 + $0x158] sm:$0xff] }
 0x26d   :  { %2028 = vmatmul.bf16.gmra.mxu2 %v5269_v51  ;;  %v4585_v32 = vpack.c.bf16 %v1134_v11, %v1126_v23  ;;  %v1140_v51 = vmax.f32 %v636_v57, 0.0  ;;  %2261 = vmatpush.bf16.msrb.mxu1 %v3412_v40 }
 0x26e   :  { %2117 = vmatmul.bf16.gmra.mxu3 %v5271_v46  ;;  %v4588_v3 = vpack.c.bf16 %v1135_v9, %v1127_v8  ;;  %v1141_v8 = vmax.f32 %v725_v6, 0.0 }
 0x26f   :  { %5270 = vst [vmem:[#allocation5_spill] sm:$0xff] %v4585_v32 }
 0x270   :  { %5272 = vst [vmem:[#allocation6_spill] sm:$0xff] %v4588_v3  ;;  %v813_v1 = vpop.f32.mrf.mxu2 }
 0x271   :  { %v902_v34 = vpop.f32.mrf.mxu3  ;;  %v637_v18 = vpop.f32.mrf.mxu0  ;;  %v814_v36 = vadd.f32 %v813_v1, %v4281_v41  ;;  %v5274_v1 = vld [vmem:[#allocation10_spill] sm:$0xff] }
 0x272   :  { %v638_v23 = vadd.f32 %v637_v18, %v4262_v16  ;;  %v726_v11 = vpop.f32.mrf.mxu1  ;;  %v903_v5 = vadd.f32 %v902_v34, %v4284_v39  ;;  %v5276_v34 = vld [vmem:[#allocation11_spill] sm:$0xff] }
 0x273   :  { %v727_v2 = vadd.f32 %v726_v11, %v4266_v61 }
 0x274   :  { %v1148_v46 = vmax.f32 %v638_v23, 0.0  ;;  %v1142_v23 = vmax.f32 %v814_v36, 0.0 }
 0x275   :  { %v1149_v9 = vmax.f32 %v727_v2, 0.0  ;;  %v1143_v2 = vmax.f32 %v903_v5, 0.0 }
 0x276   :  { %v4594_v12 = vpack.c.bf16 %v1148_v46, %v1140_v51  ;;  %v5273_v51 = vld [vmem:[#allocation9_spill] sm:$0xff] }
 0x277   :  { %v4597_v33 = vpack.c.bf16 %v1149_v9, %v1141_v8 }
 0x278   :  { %v815_v48 = vpop.f32.mrf.mxu2 }
 0x279   :  { %v816_v18 = vadd.f32 %v815_v48, %v4281_v41  ;;  %v904_v3 = vpop.f32.mrf.mxu3  ;;  %v640_v32 = vpop.f32.mrf.mxu0 }
 0x27a   :  { %v905_v11 = vadd.f32 %v904_v3, %v4284_v39  ;;  %v729_v57 = vpop.f32.mrf.mxu1  ;;  %v641_v9 = vadd.f32 %v640_v32, %v4262_v16 }
 0x27b   :  { %v1150_v6 = vmax.f32 %v816_v18, 0.0  ;;  %v730_v36 = vadd.f32 %v729_v57, %v4266_v61 }
 0x27c   :  { %v1151_v40 = vmax.f32 %v905_v11, 0.0  ;;  %1855 = vmatmul.bf16.gmra.mxu0 %v4059_v59  ;;  %1944 = vmatmul.bf16.gmra.mxu1 %v5273_v51  ;;  %v1156_v51 = vmax.f32 %v641_v9, 0.0 }
 0x27d   :  { %2033 = vmatmul.bf16.gmra.mxu2 %v5274_v1  ;;  %v4605_v46 = vpack.c.bf16 %v1150_v6, %v1142_v23  ;;  %v1157_v23 = vmax.f32 %v730_v36, 0.0 }
 0x27e   :  { %2122 = vmatmul.bf16.gmra.mxu3 %v5276_v34  ;;  %v4608_v8 = vpack.c.bf16 %v1151_v40, %v1143_v2  ;;  %v4617_v2 = vld [vmem:[%s5211_s4] ss:$0 sm:$0xff] }
 0x27f   :  { %5275 = vst [vmem:[#allocation7_spill] sm:$0xff] %v4605_v46  ;;  %v5303_v46 = vld [vmem:[#allocation32_spill] sm:$0xff] }
 0x280   :  { %5277 = vst [vmem:[#allocation8_spill] sm:$0xff] %v4608_v8  ;;  %v818_v3 = vpop.f32.mrf.mxu2 }
 0x281   :  { %v907_v48 = vpop.f32.mrf.mxu3  ;;  %v642_v5 = vpop.f32.mrf.mxu0  ;;  %v819_v57 = vadd.f32 %v818_v3, %v4281_v41  ;;  %v5280_v3 = vld [vmem:[#allocation12_spill] sm:$0xff] }
 0x282   :  { %v643_v18 = vadd.f32 %v642_v5, %v4262_v16  ;;  %v731_v59 = vpop.f32.mrf.mxu1  ;;  %v908_v16 = vadd.f32 %v907_v48, %v4284_v39  ;;  %v5281_v48 = vld [vmem:[#allocation13_spill] sm:$0xff] }
 0x283   :  { %v732_v11 = vadd.f32 %v731_v59, %v4266_v61 }
 0x284   :  { %v1164_v1 = vmax.f32 %v643_v18, 0.0 }
 0x285   :  { %v1165_v6 = vmax.f32 %v732_v11, 0.0  ;;  %v1158_v11 = vmax.f32 %v819_v57, 0.0 }
 0x286   :  { %v4619_v32 = vpack.c.bf16 %v1164_v1, %v1156_v51  ;;  %v1159_v51 = vmax.f32 %v908_v16, 0.0 }
 0x287   :  { %v4622_v40 = vpack.c.bf16 %v1165_v6, %v1157_v23  ;;  %v3419_v6 = vld [vmem:[#allocation2 + $0x190] sm:$0xff] }
 0x288   :  { %5278 = vst [vmem:[#allocation9_spill] sm:$0xff] %v4619_v32  ;;  %v820_v34 = vpop.f32.mrf.mxu2  ;;  %2351 = vmatpush.bf16.msrb.mxu2 %v3419_v6 }
 0x289   :  { %5279 = vst [vmem:[#allocation10_spill] sm:$0xff] %v4622_v40  ;;  %v821_v61 = vadd.f32 %v820_v34, %v4281_v41  ;;  %v909_v9 = vpop.f32.mrf.mxu3  ;;  %v1821_v5 = vpop.f32.mrf.mxu0  ;;  %v5283_v41 = vld [vmem:[#allocation14_spill] sm:$0xff]  ;;  %v3427_v34 = vld [vmem:[#allocation2 + $0x1d0] sm:$0xff] }
 0x28a   :  { %v910_v36 = vadd.f32 %v909_v9, %v4284_v39  ;;  %v1822_v18 = vadd.f32 %v4617_v2, %v1821_v5  ;;  %v1910_v59 = vpop.f32.mrf.mxu1  ;;  %v3403_v39 = vld [vmem:[#allocation2 + $0x110] sm:$0xff]  ;;  %2440 = vmatpush.bf16.msrb.mxu3 %v3427_v34  ;;  %v5286_v34 = vld [vmem:[#allocation16_spill] sm:$0xff] }
 0x28b   :  { %v1166_v8 = vmax.f32 %v821_v61, 0.0  ;;  %2173 = vmatpush.bf16.msrb.mxu0 %v3403_v39  ;;  %v5285_v39 = vld [vmem:[#allocation15_spill] sm:$0xff] }
 0x28c   :  { %v1167_v1 = vmax.f32 %v910_v36, 0.0  ;;  %v1911_v32 = vadd.f32 %v1910_v59, %v1822_v18  ;;  %1860 = vmatmul.bf16.gmra.mxu0 %v4083_v42  ;;  %1949 = vmatmul.bf16.gmra.mxu1 %v5280_v3 }
 0x28d   :  { %2038 = vmatmul.bf16.gmra.mxu2 %v5281_v48  ;;  %v4631_v23 = vpack.c.bf16 %v1166_v8, %v1158_v11  ;;  %v3411_v8 = vld [vmem:[#allocation2 + $0x150] sm:$0xff] }
 0x28e   :  { %2127 = vmatmul.bf16.gmra.mxu3 %v5283_v41  ;;  %v4634_v9 = vpack.c.bf16 %v1167_v1, %v1159_v51  ;;  %2262 = vmatpush.bf16.msrb.mxu1 %v3411_v8 }
 0x28f   :  { %5282 = vst [vmem:[#allocation11_spill] sm:$0xff] %v4631_v23 }
 0x290   :  { %5284 = vst [vmem:[#allocation12_spill] sm:$0xff] %v4634_v9  ;;  %v1999_v57 = vpop.f32.mrf.mxu2 }
 0x291   :  { %v2000_v16 = vadd.f32 %v1999_v57, %v1911_v32  ;;  %v2088_v61 = vpop.f32.mrf.mxu3  ;;  %v1823_v5 = vpop.f32.mrf.mxu0  ;;  %v5287_v57 = vld [vmem:[#allocation17_spill] sm:$0xff] }
 0x292   :  { %v1824_v42 = vadd.f32 %v4617_v2, %v1823_v5  ;;  %v1912_v36 = vpop.f32.mrf.mxu1 }
 0x293   :  { %v4637_v18 = vadd.f32 %v2088_v61, %v2000_v16 }
 0x294   :  { %v1913_v59 = vadd.f32 %v1912_v36, %v1824_v42 }
 0x298   :  { %v2001_v11 = vpop.f32.mrf.mxu2 }
 0x299   :  { %v2002_v3 = vadd.f32 %v2001_v11, %v1913_v59  ;;  %v2090_v48 = vpop.f32.mrf.mxu3  ;;  %v1826_v51 = vpop.f32.mrf.mxu0 }
 0x29a   :  { %v1827_v1 = vadd.f32 %v4617_v2, %v1826_v51  ;;  %v1915_v41 = vpop.f32.mrf.mxu1 }
 0x29b   :  { %v4640_v6 = vadd.f32 %v2090_v48, %v2002_v3 }
 0x29c   :  { %v1916_v32 = vadd.f32 %v1915_v41, %v1827_v1  ;;  %1865 = vmatmul.bf16.gmra.mxu0 %v4107_v0  ;;  %1954 = vmatmul.bf16.gmra.mxu1 %v5285_v39 }
 0x29d   :  { %2043 = vmatmul.bf16.gmra.mxu2 %v5286_v34 }
 0x29e   :  { %2132 = vmatmul.bf16.gmra.mxu3 %v5287_v57  ;;  %v5289_v57 = vld [vmem:[#allocation19_spill] sm:$0xff] }
 0x2a0   :  { %v2004_v16 = vpop.f32.mrf.mxu2 }
 0x2a1   :  { %v2005_v61 = vadd.f32 %v2004_v16, %v1916_v32  ;;  %v2093_v5 = vpop.f32.mrf.mxu3  ;;  %v1828_v42 = vpop.f32.mrf.mxu0  ;;  %v5288_v32 = vld [vmem:[#allocation18_spill] sm:$0xff]  ;;  %v5290_v16 = vld [vmem:[#allocation20_spill] sm:$0xff] }
 0x2a2   :  { %v1829_v36 = vadd.f32 %v4617_v2, %v1828_v42  ;;  %v1917_v8 = vpop.f32.mrf.mxu1  ;;  %v3426_v42 = vld [vmem:[#allocation2 + $0x1c8] sm:$0xff] }
 0x2a3   :  { %v4647_v59 = vadd.f32 %v2093_v5, %v2005_v61  ;;  %v3418_v61 = vld [vmem:[#allocation2 + $0x188] sm:$0xff]  ;;  %2441 = vmatpush.bf16.msrb.mxu3 %v3426_v42  ;;  %v5291_v42 = vld [vmem:[#allocation21_spill] sm:$0xff] }
 0x2a4   :  { %v1918_v11 = vadd.f32 %v1917_v8, %v1829_v36  ;;  %v3402_v5 = vld [vmem:[#allocation2 + $0x108] sm:$0xff]  ;;  %2352 = vmatpush.bf16.msrb.mxu2 %v3418_v61 }
 0x2a5   :  { %2174 = vmatpush.bf16.msrb.mxu0 %v3402_v5 }
 0x2a8   :  { %v2006_v3 = vpop.f32.mrf.mxu2 }
 0x2a9   :  { %v2007_v48 = vadd.f32 %v2006_v3, %v1918_v11  ;;  %v2095_v51 = vpop.f32.mrf.mxu3  ;;  %v1831_v0 = vpop.f32.mrf.mxu0 }
 0x2aa   :  { %v1832_v1 = vadd.f32 %v4617_v2, %v1831_v0  ;;  %v1920_v41 = vpop.f32.mrf.mxu1  ;;  %v3410_v0 = vld [vmem:[#allocation2 + $0x148] sm:$0xff] }
 0x2ab   :  { %v4650_v39 = vadd.f32 %v2095_v51, %v2007_v48  ;;  %2263 = vmatpush.bf16.msrb.mxu1 %v3410_v0 }
 0x2ac   :  { %v1921_v34 = vadd.f32 %v1920_v41, %v1832_v1  ;;  %1870 = vmatmul.bf16.gmra.mxu0 %v4131_v58  ;;  %1959 = vmatmul.bf16.gmra.mxu1 %v5288_v32 }
 0x2ad   :  { %2048 = vmatmul.bf16.gmra.mxu2 %v5289_v57 }
 0x2ae   :  { %2137 = vmatmul.bf16.gmra.mxu3 %v5290_v16 }
 0x2b0   :  { %v2009_v36 = vpop.f32.mrf.mxu2 }
 0x2b1   :  { %v2010_v8 = vadd.f32 %v2009_v36, %v1921_v34  ;;  %v2098_v11 = vpop.f32.mrf.mxu3  ;;  %v1833_v3 = vpop.f32.mrf.mxu0  ;;  %v5292_v36 = vld [vmem:[#allocation22_spill] sm:$0xff] }
 0x2b2   :  { %v1834_v48 = vadd.f32 %v4617_v2, %v1833_v3  ;;  %v1922_v51 = vpop.f32.mrf.mxu1 }
 0x2b3   :  { %v4657_v58 = vadd.f32 %v2098_v11, %v2010_v8  ;;  %v5293_v8 = vld [vmem:[#allocation23_spill] sm:$0xff] }
 0x2b4   :  { %v1923_v1 = vadd.f32 %v1922_v51, %v1834_v48 }
 0x2b8   :  { %v2011_v41 = vpop.f32.mrf.mxu2 }
 0x2b9   :  { %v2012_v32 = vadd.f32 %v2011_v41, %v1923_v1  ;;  %v2100_v57 = vpop.f32.mrf.mxu3  ;;  %v1836_v16 = vpop.f32.mrf.mxu0 }
 0x2ba   :  { %v1837_v9 = vadd.f32 %v4617_v2, %v1836_v16  ;;  %v1925_v61 = vpop.f32.mrf.mxu1 }
 0x2bb   :  { %v4660_v5 = vadd.f32 %v2100_v57, %v2012_v32 }
 0x2bc   :  { %v1926_v34 = vadd.f32 %v1925_v61, %v1837_v9  ;;  %1875 = vmatmul.bf16.gmra.mxu0 %v4155_v7  ;;  %1964 = vmatmul.bf16.gmra.mxu1 %v5291_v42 }
 0x2bd   :  { %2053 = vmatmul.bf16.gmra.mxu2 %v5292_v36 }
 0x2be   :  { %2142 = vmatmul.bf16.gmra.mxu3 %v5293_v8 }
 0x2c0   :  { %v2014_v11 = vpop.f32.mrf.mxu2 }
 0x2c1   :  { %v2015_v3 = vadd.f32 %v2014_v11, %v1926_v34  ;;  %v2103_v48 = vpop.f32.mrf.mxu3  ;;  %v1838_v51 = vpop.f32.mrf.mxu0  ;;  %v5294_v34 = vld [vmem:[#allocation24_spill] sm:$0xff]  ;;  %v5295_v11 = vld [vmem:[#allocation25_spill] sm:$0xff] }
 0x2c2   :  { %v1839_v0 = vadd.f32 %v4617_v2, %v1838_v51  ;;  %v1927_v1 = vpop.f32.mrf.mxu1  ;;  %v5296_v51 = vld [vmem:[#allocation26_spill] sm:$0xff] }
 0x2c3   :  { %v4667_v41 = vadd.f32 %v2103_v48, %v2015_v3  ;;  %v3417_v3 = vld [vmem:[#allocation2 + $0x180] sm:$0xff] }
 0x2c4   :  { %v1928_v32 = vadd.f32 %v1927_v1, %v1839_v0  ;;  %v3401_v48 = vld [vmem:[#allocation2 + $0x100] sm:$0xff]  ;;  %2353 = vmatpush.bf16.msrb.mxu2 %v3417_v3 }
 0x2c5   :  { %v3425_v0 = vld [vmem:[#allocation2 + $0x1c0] sm:$0xff]  ;;  %2175 = vmatpush.bf16.msrb.mxu0 %v3401_v48 }
 0x2c6   :  { %2442 = vmatpush.bf16.msrb.mxu3 %v3425_v0  ;;  %v5297_v0 = vld [vmem:[#allocation27_spill] sm:$0xff] }
 0x2c8   :  { %v2016_v57 = vpop.f32.mrf.mxu2 }
 0x2c9   :  { %v2017_v9 = vadd.f32 %v2016_v57, %v1928_v32  ;;  %v2105_v16 = vpop.f32.mrf.mxu3  ;;  %v1841_v7 = vpop.f32.mrf.mxu0 }
 0x2ca   :  { %v1842_v61 = vadd.f32 %v4617_v2, %v1841_v7  ;;  %v1930_v42 = vpop.f32.mrf.mxu1 }
 0x2cb   :  { %v4670_v36 = vadd.f32 %v2105_v16, %v2017_v9 }
 0x2cc   :  { %v1931_v8 = vadd.f32 %v1930_v42, %v1842_v61  ;;  %1880 = vmatmul.bf16.gmra.mxu0 %v4179_v60  ;;  %1969 = vmatmul.bf16.gmra.mxu1 %v5294_v34  ;;  %v3409_v61 = vld [vmem:[#allocation2 + $0x140] sm:$0xff] }
 0x2cd   :  { %2058 = vmatmul.bf16.gmra.mxu2 %v5295_v11  ;;  %2264 = vmatpush.bf16.msrb.mxu1 %v3409_v61 }
 0x2ce   :  { %2147 = vmatmul.bf16.gmra.mxu3 %v5296_v51 }
 0x2d0   :  { %v2019_v1 = vpop.f32.mrf.mxu2 }
 0x2d1   :  { %v2020_v32 = vadd.f32 %v2019_v1, %v1931_v8  ;;  %v2108_v57 = vpop.f32.mrf.mxu3  ;;  %v1843_v7 = vpop.f32.mrf.mxu0  ;;  %v5298_v1 = vld [vmem:[#allocation28_spill] sm:$0xff] }
 0x2d2   :  { %v1844_v9 = vadd.f32 %v4617_v2, %v1843_v7  ;;  %v1932_v16 = vpop.f32.mrf.mxu1 }
 0x2d3   :  { %v4677_v60 = vadd.f32 %v2108_v57, %v2020_v32  ;;  %v5299_v32 = vld [vmem:[#allocation29_spill] sm:$0xff] }
 0x2d4   :  { %v1933_v42 = vadd.f32 %v1932_v16, %v1844_v9 }
 0x2d8   :  { %v2021_v34 = vpop.f32.mrf.mxu2 }
 0x2d9   :  { %v2022_v11 = vadd.f32 %v2021_v34, %v1933_v42  ;;  %v2110_v51 = vpop.f32.mrf.mxu3  ;;  %v1846_v23 = vpop.f32.mrf.mxu0 }
 0x2da   :  { %v1847_v40 = vadd.f32 %v4617_v2, %v1846_v23  ;;  %v1935_v3 = vpop.f32.mrf.mxu1 }
 0x2db   :  { %v4680_v48 = vadd.f32 %v2110_v51, %v2022_v11 }
 0x2dc   :  { %v1936_v8 = vadd.f32 %v1935_v3, %v1847_v40  ;;  %1885 = vmatmul.bf16.gmra.mxu0 %v4203_v30  ;;  %1974 = vmatmul.bf16.gmra.mxu1 %v5297_v0 }
 0x2dd   :  { %2063 = vmatmul.bf16.gmra.mxu2 %v5298_v1 }
 0x2de   :  { %2152 = vmatmul.bf16.gmra.mxu3 %v5299_v32 }
 0x2e0   :  { %v2024_v57 = vpop.f32.mrf.mxu2 }
 0x2e1   :  { %v2025_v7 = vadd.f32 %v2024_v57, %v1936_v8  ;;  %v2113_v9 = vpop.f32.mrf.mxu3  ;;  %v1848_v16 = vpop.f32.mrf.mxu0  ;;  %v5300_v8 = vld [vmem:[#allocation30_spill] sm:$0xff]  ;;  %v5301_v57 = vld [vmem:[#allocation31_spill] sm:$0xff] }
 0x2e2   :  { %v1849_v61 = vadd.f32 %v4617_v2, %v1848_v16  ;;  %v1937_v42 = vpop.f32.mrf.mxu1 }
 0x2e3   :  { %v4687_v23 = vadd.f32 %v2113_v9, %v2025_v7 }
 0x2e4   :  { %v1938_v34 = vadd.f32 %v1937_v42, %v1849_v61 }
 0x2e8   :  { %v2026_v11 = vpop.f32.mrf.mxu2 }
 0x2e9   :  { %v2027_v40 = vadd.f32 %v2026_v11, %v1938_v34  ;;  %v2115_v51 = vpop.f32.mrf.mxu3  ;;  %v1851_v30 = vpop.f32.mrf.mxu0 }
 0x2ea   :  { %v1852_v3 = vadd.f32 %v4617_v2, %v1851_v30  ;;  %v1940_v0 = vpop.f32.mrf.mxu1 }
 0x2eb   :  { %v4690_v1 = vadd.f32 %v2115_v51, %v2027_v40 }
 0x2ec   :  { %v1941_v32 = vadd.f32 %v1940_v0, %v1852_v3  ;;  %1890 = vmatmul.bf16.gmra.mxu0 %v4227_v17  ;;  %1979 = vmatmul.bf16.gmra.mxu1 %v4230_v45 }
 0x2ed   :  { %2068 = vmatmul.bf16.gmra.mxu2 %v5300_v8 }
 0x2ee   :  { %2157 = vmatmul.bf16.gmra.mxu3 %v5301_v57 }
 0x2f0   :  { %v2029_v7 = vpop.f32.mrf.mxu2 }
 0x2f1   :  { %v2030_v9 = vadd.f32 %v2029_v7, %v1941_v32  ;;  %v2118_v16 = vpop.f32.mrf.mxu3  ;;  %v1853_v61 = vpop.f32.mrf.mxu0  ;;  %v5304_v32 = vld [vmem:[#allocation33_spill] sm:$0xff]  ;;  %v5305_v7 = vld [vmem:[#allocation34_spill] sm:$0xff] }
 0x2f2   :  { %v1854_v42 = vadd.f32 %v4617_v2, %v1853_v61  ;;  %v1942_v34 = vpop.f32.mrf.mxu1  ;;  %v5306_v61 = vld [vmem:[#allocation35_spill] sm:$0xff] }
 0x2f3   :  { %v4697_v11 = vadd.f32 %v2118_v16, %v2030_v9 }
 0x2f4   :  { %v1943_v40 = vadd.f32 %v1942_v34, %v1854_v42 }
 0x2f8   :  { %v2031_v51 = vpop.f32.mrf.mxu2 }
 0x2f9   :  { %v2032_v30 = vadd.f32 %v2031_v51, %v1943_v40  ;;  %v2120_v3 = vpop.f32.mrf.mxu3  ;;  %v1856_v17 = vpop.f32.mrf.mxu0 }
 0x2fa   :  { %v1857_v45 = vadd.f32 %v4617_v2, %v1856_v17  ;;  %v1945_v0 = vpop.f32.mrf.mxu1 }
 0x2fb   :  { %v4700_v8 = vadd.f32 %v2120_v3, %v2032_v30 }
 0x2fc   :  { %v1946_v57 = vadd.f32 %v1945_v0, %v1857_v45  ;;  %1895 = vmatmul.bf16.gmra.mxu0 %v5303_v46  ;;  %1984 = vmatmul.bf16.gmra.mxu1 %v5304_v32 }
 0x2fd   :  { %5302 = vst [vmem:[#allocation13_spill] sm:$0xff] %v4700_v8  ;;  %2073 = vmatmul.bf16.gmra.mxu2 %v5305_v7 }
 0x2fe   :  { %2162 = vmatmul.bf16.gmra.mxu3 %v5306_v61 }
 0x300   :  { %v2034_v9 = vpop.f32.mrf.mxu2 }
 0x301   :  { %v2035_v16 = vadd.f32 %v2034_v9, %v1946_v57  ;;  %v2123_v42 = vpop.f32.mrf.mxu3  ;;  %v1858_v34 = vpop.f32.mrf.mxu0  ;;  %v5308_v57 = vld [vmem:[#allocation36_spill] sm:$0xff]  ;;  %v5309_v9 = vld [vmem:[#allocation37_spill] sm:$0xff] }
 0x302   :  { %v1859_v40 = vadd.f32 %v4617_v2, %v1858_v34  ;;  %v1947_v51 = vpop.f32.mrf.mxu1  ;;  %v5310_v34 = vld [vmem:[#allocation38_spill] sm:$0xff] }
 0x303   :  { %v4707_v17 = vadd.f32 %v2123_v42, %v2035_v16 }
 0x304   :  { %v1948_v30 = vadd.f32 %v1947_v51, %v1859_v40 }
 0x308   :  { %v2036_v3 = vpop.f32.mrf.mxu2 }
 0x309   :  { %v2037_v45 = vadd.f32 %v2036_v3, %v1948_v30  ;;  %v2125_v0 = vpop.f32.mrf.mxu3  ;;  %v1861_v46 = vpop.f32.mrf.mxu0 }
 0x30a   :  { %v1862_v32 = vadd.f32 %v4617_v2, %v1861_v46  ;;  %v1950_v8 = vpop.f32.mrf.mxu1 }
 0x30b   :  { %v4710_v7 = vadd.f32 %v2125_v0, %v2037_v45 }
 0x30c   :  { %v1951_v61 = vadd.f32 %v1950_v8, %v1862_v32  ;;  %2176 = vmatmul.bf16.vlgmr.msrb.gmra.mxu0 %v4286_v22  ;;  %2265 = vmatmul.bf16.vlgmr.msrb.gmra.mxu1 %v5308_v57 }
 0x30d   :  { %5307 = vst [vmem:[#allocation14_spill] sm:$0xff] %v4710_v7  ;;  %2354 = vmatmul.bf16.vlgmr.msrb.gmra.mxu2 %v5309_v9 }
 0x30e   :  { %2443 = vmatmul.bf16.vlgmr.msrb.gmra.mxu3 %v5310_v34 }
 0x310   :  { %v2039_v16 = vpop.f32.mrf.mxu2 }
 0x311   :  { %v2040_v42 = vadd.f32 %v2039_v16, %v1951_v61  ;;  %v2128_v40 = vpop.f32.mrf.mxu3  ;;  %v1863_v51 = vpop.f32.mrf.mxu0  ;;  %v5312_v61 = vld [vmem:[#allocation39_spill] sm:$0xff]  ;;  %v5313_v16 = vld [vmem:[#allocation40_spill] sm:$0xff] }
 0x312   :  { %v1864_v30 = vadd.f32 %v4617_v2, %v1863_v51  ;;  %v1952_v3 = vpop.f32.mrf.mxu1  ;;  %v5314_v51 = vld [vmem:[#allocation41_spill] sm:$0xff] }
 0x313   :  { %v4717_v46 = vadd.f32 %v2128_v40, %v2040_v42 }
 0x314   :  { %v1953_v45 = vadd.f32 %v1952_v3, %v1864_v30 }
 0x318   :  { %v2041_v0 = vpop.f32.mrf.mxu2 }
 0x319   :  { %v2042_v8 = vadd.f32 %v2041_v0, %v1953_v45  ;;  %v2130_v32 = vpop.f32.mrf.mxu3  ;;  %v1866_v22 = vpop.f32.mrf.mxu0 }
 0x31a   :  { %v1867_v57 = vadd.f32 %v4617_v2, %v1866_v22  ;;  %v1955_v7 = vpop.f32.mrf.mxu1 }
 0x31b   :  { %v4720_v9 = vadd.f32 %v2130_v32, %v2042_v8 }
 0x31c   :  { %v1956_v34 = vadd.f32 %v1955_v7, %v1867_v57  ;;  %2181 = vmatmul.bf16.gmra.mxu0 %v4310_v50  ;;  %2270 = vmatmul.bf16.gmra.mxu1 %v5312_v61 }
 0x31d   :  { %5311 = vst [vmem:[#allocation15_spill] sm:$0xff] %v4720_v9  ;;  %2359 = vmatmul.bf16.gmra.mxu2 %v5313_v16 }
 0x31e   :  { %2448 = vmatmul.bf16.gmra.mxu3 %v5314_v51 }
 0x320   :  { %v2044_v42 = vpop.f32.mrf.mxu2 }
 0x321   :  { %v2045_v40 = vadd.f32 %v2044_v42, %v1956_v34  ;;  %v2133_v30 = vpop.f32.mrf.mxu3  ;;  %v1868_v3 = vpop.f32.mrf.mxu0  ;;  %v5316_v34 = vld [vmem:[#allocation42_spill] sm:$0xff]  ;;  %v5317_v42 = vld [vmem:[#allocation43_spill] sm:$0xff] }
 0x322   :  { %v1869_v45 = vadd.f32 %v4617_v2, %v1868_v3  ;;  %v1957_v0 = vpop.f32.mrf.mxu1  ;;  %v5318_v3 = vld [vmem:[#allocation44_spill] sm:$0xff] }
 0x323   :  { %v4727_v22 = vadd.f32 %v2133_v30, %v2045_v40 }
 0x324   :  { %v1958_v8 = vadd.f32 %v1957_v0, %v1869_v45 }
 0x328   :  { %v2046_v32 = vpop.f32.mrf.mxu2 }
 0x329   :  { %v2047_v7 = vadd.f32 %v2046_v32, %v1958_v8  ;;  %v2135_v57 = vpop.f32.mrf.mxu3  ;;  %v1871_v50 = vpop.f32.mrf.mxu0 }
 0x32a   :  { %v1872_v61 = vadd.f32 %v4617_v2, %v1871_v50  ;;  %v1960_v9 = vpop.f32.mrf.mxu1 }
 0x32b   :  { %v4730_v16 = vadd.f32 %v2135_v57, %v2047_v7 }
 0x32c   :  { %v1961_v51 = vadd.f32 %v1960_v9, %v1872_v61  ;;  %2186 = vmatmul.bf16.gmra.mxu0 %v4334_v54  ;;  %2275 = vmatmul.bf16.gmra.mxu1 %v5316_v34 }
 0x32d   :  { %5315 = vst [vmem:[#allocation16_spill] sm:$0xff] %v4730_v16  ;;  %2364 = vmatmul.bf16.gmra.mxu2 %v5317_v42 }
 0x32e   :  { %2453 = vmatmul.bf16.gmra.mxu3 %v5318_v3 }
 0x330   :  { %v2049_v40 = vpop.f32.mrf.mxu2 }
 0x331   :  { %v2050_v30 = vadd.f32 %v2049_v40, %v1961_v51  ;;  %v2138_v45 = vpop.f32.mrf.mxu3  ;;  %v1873_v0 = vpop.f32.mrf.mxu0  ;;  %v5320_v51 = vld [vmem:[#allocation45_spill] sm:$0xff]  ;;  %v5321_v40 = vld [vmem:[#allocation46_spill] sm:$0xff] }
 0x332   :  { %v1874_v8 = vadd.f32 %v4617_v2, %v1873_v0  ;;  %v1962_v32 = vpop.f32.mrf.mxu1  ;;  %v5322_v0 = vld [vmem:[#allocation47_spill] sm:$0xff] }
 0x333   :  { %v4737_v50 = vadd.f32 %v2138_v45, %v2050_v30 }
 0x334   :  { %v1963_v7 = vadd.f32 %v1962_v32, %v1874_v8 }
 0x338   :  { %v2051_v57 = vpop.f32.mrf.mxu2 }
 0x339   :  { %v2052_v9 = vadd.f32 %v2051_v57, %v1963_v7  ;;  %v2140_v61 = vpop.f32.mrf.mxu3  ;;  %v1876_v54 = vpop.f32.mrf.mxu0 }
 0x33a   :  { %v1877_v34 = vadd.f32 %v4617_v2, %v1876_v54  ;;  %v1965_v16 = vpop.f32.mrf.mxu1 }
 0x33b   :  { %v4740_v42 = vadd.f32 %v2140_v61, %v2052_v9 }
 0x33c   :  { %v1966_v3 = vadd.f32 %v1965_v16, %v1877_v34  ;;  %2191 = vmatmul.bf16.gmra.mxu0 %v4358_v20  ;;  %2280 = vmatmul.bf16.gmra.mxu1 %v5320_v51 }
 0x33d   :  { %5319 = vst [vmem:[#allocation17_spill] sm:$0xff] %v4740_v42  ;;  %2369 = vmatmul.bf16.gmra.mxu2 %v5321_v40 }
 0x33e   :  { %2458 = vmatmul.bf16.gmra.mxu3 %v5322_v0 }
 0x340   :  { %v2054_v30 = vpop.f32.mrf.mxu2 }
 0x341   :  { %v2055_v45 = vadd.f32 %v2054_v30, %v1966_v3  ;;  %v2143_v8 = vpop.f32.mrf.mxu3  ;;  %v1878_v32 = vpop.f32.mrf.mxu0  ;;  %v5324_v3 = vld [vmem:[#allocation48_spill] sm:$0xff]  ;;  %v5325_v30 = vld [vmem:[#allocation49_spill] sm:$0xff] }
 0x342   :  { %v1879_v7 = vadd.f32 %v4617_v2, %v1878_v32  ;;  %v1967_v57 = vpop.f32.mrf.mxu1  ;;  %v5326_v32 = vld [vmem:[#allocation50_spill] sm:$0xff] }
 0x343   :  { %v4747_v54 = vadd.f32 %v2143_v8, %v2055_v45 }
 0x344   :  { %v1968_v9 = vadd.f32 %v1967_v57, %v1879_v7 }
 0x348   :  { %v2056_v61 = vpop.f32.mrf.mxu2 }
 0x349   :  { %v2057_v16 = vadd.f32 %v2056_v61, %v1968_v9  ;;  %v2145_v34 = vpop.f32.mrf.mxu3  ;;  %v1881_v20 = vpop.f32.mrf.mxu0 }
 0x34a   :  { %v1882_v51 = vadd.f32 %v4617_v2, %v1881_v20  ;;  %v1970_v42 = vpop.f32.mrf.mxu1 }
 0x34b   :  { %v4750_v40 = vadd.f32 %v2145_v34, %v2057_v16 }
 0x34c   :  { %v1971_v0 = vadd.f32 %v1970_v42, %v1882_v51  ;;  %2196 = vmatmul.bf16.gmra.mxu0 %v4382_v55  ;;  %2285 = vmatmul.bf16.gmra.mxu1 %v5324_v3 }
 0x34d   :  { %5323 = vst [vmem:[#allocation18_spill] sm:$0xff] %v4750_v40  ;;  %2374 = vmatmul.bf16.gmra.mxu2 %v5325_v30 }
 0x34e   :  { %2463 = vmatmul.bf16.gmra.mxu3 %v5326_v32 }
 0x350   :  { %v2059_v45 = vpop.f32.mrf.mxu2 }
 0x351   :  { %v2060_v8 = vadd.f32 %v2059_v45, %v1971_v0  ;;  %v2148_v7 = vpop.f32.mrf.mxu3  ;;  %v1883_v57 = vpop.f32.mrf.mxu0  ;;  %v5328_v0 = vld [vmem:[#allocation51_spill] sm:$0xff]  ;;  %v5329_v45 = vld [vmem:[#allocation52_spill] sm:$0xff] }
 0x352   :  { %v1884_v9 = vadd.f32 %v4617_v2, %v1883_v57  ;;  %v1972_v61 = vpop.f32.mrf.mxu1  ;;  %v5330_v57 = vld [vmem:[#allocation53_spill] sm:$0xff] }
 0x353   :  { %v4757_v20 = vadd.f32 %v2148_v7, %v2060_v8 }
 0x354   :  { %v1973_v16 = vadd.f32 %v1972_v61, %v1884_v9 }
 0x358   :  { %v2061_v34 = vpop.f32.mrf.mxu2 }
 0x359   :  { %v2062_v42 = vadd.f32 %v2061_v34, %v1973_v16  ;;  %v2150_v51 = vpop.f32.mrf.mxu3  ;;  %v1886_v55 = vpop.f32.mrf.mxu0 }
 0x35a   :  { %v1887_v3 = vadd.f32 %v4617_v2, %v1886_v55  ;;  %v1975_v40 = vpop.f32.mrf.mxu1 }
 0x35b   :  { %v4760_v30 = vadd.f32 %v2150_v51, %v2062_v42 }
 0x35c   :  { %v1976_v32 = vadd.f32 %v1975_v40, %v1887_v3  ;;  %2201 = vmatmul.bf16.gmra.mxu0 %v4406_v29  ;;  %2290 = vmatmul.bf16.gmra.mxu1 %v5328_v0 }
 0x35d   :  { %5327 = vst [vmem:[#allocation19_spill] sm:$0xff] %v4760_v30  ;;  %2379 = vmatmul.bf16.gmra.mxu2 %v5329_v45 }
 0x35e   :  { %2468 = vmatmul.bf16.gmra.mxu3 %v5330_v57 }
 0x360   :  { %v2064_v8 = vpop.f32.mrf.mxu2 }
 0x361   :  { %v2065_v7 = vadd.f32 %v2064_v8, %v1976_v32  ;;  %v2153_v9 = vpop.f32.mrf.mxu3  ;;  %v1888_v61 = vpop.f32.mrf.mxu0  ;;  %v5332_v32 = vld [vmem:[#allocation54_spill] sm:$0xff]  ;;  %v5333_v8 = vld [vmem:[#allocation55_spill] sm:$0xff] }
 0x362   :  { %v1889_v16 = vadd.f32 %v4617_v2, %v1888_v61  ;;  %v1977_v34 = vpop.f32.mrf.mxu1  ;;  %v5334_v61 = vld [vmem:[#allocation56_spill] sm:$0xff] }
 0x363   :  { %v4767_v55 = vadd.f32 %v2153_v9, %v2065_v7 }
 0x364   :  { %v1978_v42 = vadd.f32 %v1977_v34, %v1889_v16 }
 0x368   :  { %v2066_v51 = vpop.f32.mrf.mxu2 }
 0x369   :  { %v2067_v40 = vadd.f32 %v2066_v51, %v1978_v42  ;;  %v2155_v3 = vpop.f32.mrf.mxu3  ;;  %v1891_v29 = vpop.f32.mrf.mxu0 }
 0x36a   :  { %v1892_v0 = vadd.f32 %v4617_v2, %v1891_v29  ;;  %v1980_v30 = vpop.f32.mrf.mxu1 }
 0x36b   :  { %v4770_v45 = vadd.f32 %v2155_v3, %v2067_v40 }
 0x36c   :  { %v1981_v57 = vadd.f32 %v1980_v30, %v1892_v0  ;;  %2206 = vmatmul.bf16.gmra.mxu0 %v4430_v62  ;;  %2295 = vmatmul.bf16.gmra.mxu1 %v5332_v32 }
 0x36d   :  { %5331 = vst [vmem:[#allocation20_spill] sm:$0xff] %v4770_v45  ;;  %2384 = vmatmul.bf16.gmra.mxu2 %v5333_v8 }
 0x36e   :  { %2473 = vmatmul.bf16.gmra.mxu3 %v5334_v61 }
 0x370   :  { %v2069_v7 = vpop.f32.mrf.mxu2 }
 0x371   :  { %v2070_v9 = vadd.f32 %v2069_v7, %v1981_v57  ;;  %v2158_v16 = vpop.f32.mrf.mxu3  ;;  %v1893_v34 = vpop.f32.mrf.mxu0 }
 0x372   :  { %v1894_v42 = vadd.f32 %v4617_v2, %v1893_v34  ;;  %v1982_v51 = vpop.f32.mrf.mxu1 }
 0x373   :  { %v4777_v29 = vadd.f32 %v2158_v16, %v2070_v9 }
 0x374   :  { %v1983_v40 = vadd.f32 %v1982_v51, %v1894_v42 }
 0x378   :  { %v2071_v3 = vpop.f32.mrf.mxu2 }
 0x379   :  { %v2072_v30 = vadd.f32 %v2071_v3, %v1983_v40  ;;  %v2160_v0 = vpop.f32.mrf.mxu3  ;;  %v1896_v62 = vpop.f32.mrf.mxu0 }
 0x37a   :  { %v1897_v32 = vadd.f32 %v4617_v2, %v1896_v62  ;;  %v1985_v45 = vpop.f32.mrf.mxu1 }
 0x37b   :  { %v4780_v8 = vadd.f32 %v2160_v0, %v2072_v30 }
 0x37c   :  { %v1986_v61 = vadd.f32 %v1985_v45, %v1897_v32  ;;  %2211 = vmatmul.bf16.gmra.mxu0 %v4454_v43  ;;  %2300 = vmatmul.bf16.gmra.mxu1 %v4457_v19 }
 0x37d   :  { %2389 = vmatmul.bf16.gmra.mxu2 %v4465_v31 }
 0x37e   :  { %2478 = vmatmul.bf16.gmra.mxu3 %v4468_v44 }
 0x380   :  { %v2074_v57 = vpop.f32.mrf.mxu2 }
 0x381   :  { %v2075_v7 = vadd.f32 %v2074_v57, %v1986_v61  ;;  %v2163_v9 = vpop.f32.mrf.mxu3  ;;  %v1898_v16 = vpop.f32.mrf.mxu0 }
 0x382   :  { %v1899_v34 = vadd.f32 %v4617_v2, %v1898_v16  ;;  %v1987_v42 = vpop.f32.mrf.mxu1 }
 0x383   :  { %v4787_v51 = vadd.f32 %v2163_v9, %v2075_v7 }
 0x384   :  { %v1988_v40 = vadd.f32 %v1987_v42, %v1899_v34 }
 0x388   :  { %v2076_v3 = vpop.f32.mrf.mxu2 }
 0x389   :  { %v2077_v45 = vadd.f32 %v2076_v3, %v1988_v40  ;;  %v2165_v30 = vpop.f32.mrf.mxu3  ;;  %v2177_v43 = vpop.f32.mrf.mxu0 }
 0x38a   :  { %v2266_v0 = vpop.f32.mrf.mxu1  ;;  %v2178_v31 = vadd.f32 %v2177_v43, %v4637_v18 }
 0x38b   :  { %v4789_v19 = vadd.f32 %v2165_v30, %v2077_v45 }
 0x38c   :  { %2216 = vmatmul.bf16.gmra.mxu0 %v4474_v13  ;;  %2305 = vmatmul.bf16.gmra.mxu1 %v4477_v28  ;;  %v2267_v44 = vadd.f32 %v2266_v0, %v2178_v31 }
 0x38d   :  { %2394 = vmatmul.bf16.gmra.mxu2 %v4485_v35 }
 0x38e   :  { %2483 = vmatmul.bf16.gmra.mxu3 %v4488_v26 }
 0x390   :  { %v2355_v2 = vpop.f32.mrf.mxu2 }
 0x391   :  { %v2356_v62 = vadd.f32 %v2355_v2, %v2267_v44  ;;  %v2444_v32 = vpop.f32.mrf.mxu3  ;;  %v2179_v61 = vpop.f32.mrf.mxu0 }
 0x392   :  { %v2268_v57 = vpop.f32.mrf.mxu1  ;;  %v2180_v9 = vadd.f32 %v2179_v61, %v4640_v6 }
 0x393   :  { %v4796_v7 = vadd.f32 %v2444_v32, %v2356_v62 }
 0x394   :  { %v2269_v18 = vadd.f32 %v2268_v57, %v2180_v9 }
 0x395   :  { %2524 = vmax.xlane.f32.xlu0 %v4796_v7 }
 0x398   :  { %v2357_v13 = vpop.f32.mrf.mxu2 }
 0x399   :  { %v2358_v16 = vadd.f32 %v2357_v13, %v2269_v18  ;;  %v2446_v28 = vpop.f32.mrf.mxu3  ;;  %v2182_v34 = vpop.f32.mrf.mxu0 }
 0x39a   :  { %v2271_v35 = vpop.f32.mrf.mxu1  ;;  %v2183_v26 = vadd.f32 %v2182_v34, %v4647_v59 }
 0x39b   :  { %v4801_v42 = vadd.f32 %v2446_v28, %v2358_v16 }
 0x39c   :  { %2221 = vmatmul.bf16.gmra.mxu0 %v4494_v52  ;;  %2310 = vmatmul.bf16.gmra.mxu1 %v4497_v56  ;;  %v2272_v6 = vadd.f32 %v2271_v35, %v2183_v26 }
 0x39d   :  { %2399 = vmatmul.bf16.gmra.mxu2 %v4505_v21  ;;  %2526 = vmax.xlane.f32.xlu0 %v4801_v42 }
 0x39e   :  { %2488 = vmatmul.bf16.gmra.mxu3 %v4508_v53 }
 0x3a0   :  { %v2360_v40 = vpop.f32.mrf.mxu2 }
 0x3a1   :  { %v2361_v3 = vadd.f32 %v2360_v40, %v2272_v6  ;;  %v2449_v45 = vpop.f32.mrf.mxu3  ;;  %v2184_v30 = vpop.f32.mrf.mxu0 }
 0x3a2   :  { %v2273_v43 = vpop.f32.mrf.mxu1  ;;  %v2185_v59 = vadd.f32 %v2184_v30, %v4650_v39 }
 0x3a3   :  { %v4808_v0 = vadd.f32 %v2449_v45, %v2361_v3 }
 0x3a4   :  { %v2274_v52 = vadd.f32 %v2273_v43, %v2185_v59 }
 0x3a5   :  { %2528 = vmax.xlane.f32.xlu1 %v4808_v0 }
 0x3a8   :  { %v2362_v56 = vpop.f32.mrf.mxu2 }
 0x3a9   :  { %v2363_v31 = vadd.f32 %v2362_v56, %v2274_v52  ;;  %v2451_v21 = vpop.f32.mrf.mxu3  ;;  %v2187_v44 = vpop.f32.mrf.mxu0 }
 0x3aa   :  { %v2276_v53 = vpop.f32.mrf.mxu1  ;;  %v2188_v2 = vadd.f32 %v2187_v44, %v4657_v58 }
 0x3ab   :  { %v4813_v62 = vadd.f32 %v2451_v21, %v2363_v31 }
 0x3ac   :  { %2226 = vmatmul.bf16.gmra.mxu0 %v4514_v47  ;;  %2315 = vmatmul.bf16.gmra.mxu1 %v4517_v49  ;;  %v2277_v39 = vadd.f32 %v2276_v53, %v2188_v2 }
 0x3ad   :  { %2404 = vmatmul.bf16.gmra.mxu2 %v4525_v4  ;;  %2530 = vmax.xlane.f32.xlu1 %v4813_v62 }
 0x3ae   :  { %2493 = vmatmul.bf16.gmra.mxu3 %v4528_v10 }
 0x3b0   :  { %v2365_v32 = vpop.f32.mrf.mxu2 }
 0x3b1   :  { %v2366_v61 = vadd.f32 %v2365_v32, %v2277_v39  ;;  %v2454_v57 = vpop.f32.mrf.mxu3  ;;  %v2189_v9 = vpop.f32.mrf.mxu0 }
 0x3b2   :  { %v2278_v18 = vpop.f32.mrf.mxu1  ;;  %v2190_v58 = vadd.f32 %v2189_v9, %v4660_v5 }
 0x3b3   :  { %v4820_v13 = vadd.f32 %v2454_v57, %v2366_v61 }
 0x3b4   :  { %v2279_v47 = vadd.f32 %v2278_v18, %v2190_v58  ;;  %v5335_v18 = vld [vmem:[#allocation57_spill] sm:$0xff]  ;;  %v5336_v58 = vld [vmem:[#allocation58_spill] sm:$0xff] }
 0x3b5   :  { %2532 = vmax.xlane.f32.xlu2 %v4820_v13 }
 0x3b8   :  { %v2367_v49 = vpop.f32.mrf.mxu2 }
 0x3b9   :  { %v2368_v16 = vadd.f32 %v2367_v49, %v2279_v47  ;;  %v2456_v4 = vpop.f32.mrf.mxu3  ;;  %v2192_v28 = vpop.f32.mrf.mxu0  ;;  %v5337_v47 = vld [vmem:[#allocation5_spill] sm:$0xff]  ;;  %v5338_v49 = vld [vmem:[#allocation6_spill] sm:$0xff] }
 0x3ba   :  { %v2281_v10 = vpop.f32.mrf.mxu1  ;;  %v2193_v34 = vadd.f32 %v2192_v28, %v4667_v41 }
 0x3bb   :  { %v4825_v35 = vadd.f32 %v2456_v4, %v2368_v16 }
 0x3bc   :  { %2231 = vmatmul.bf16.gmra.mxu0 %v4534_v38  ;;  %2320 = vmatmul.bf16.gmra.mxu1 %v4537_v24  ;;  %v2282_v5 = vadd.f32 %v2281_v10, %v2193_v34 }
 0x3bd   :  { %2409 = vmatmul.bf16.gmra.mxu2 %v4545_v25  ;;  %2534 = vmax.xlane.f32.xlu2 %v4825_v35 }
 0x3be   :  { %2498 = vmatmul.bf16.gmra.mxu3 %v4548_v15 }
 0x3c0   :  { %v2370_v26 = vpop.f32.mrf.mxu2 }
 0x3c1   :  { %v2371_v6 = vadd.f32 %v2370_v26, %v2282_v5  ;;  %v2459_v40 = vpop.f32.mrf.mxu3  ;;  %v2194_v3 = vpop.f32.mrf.mxu0 }
 0x3c2   :  { %v2283_v45 = vpop.f32.mrf.mxu1  ;;  %v2195_v41 = vadd.f32 %v2194_v3, %v4670_v36 }
 0x3c3   :  { %v4832_v30 = vadd.f32 %v2459_v40, %v2371_v6 }
 0x3c4   :  { %v2284_v38 = vadd.f32 %v2283_v45, %v2195_v41 }
 0x3c5   :  { %2536 = vmax.xlane.f32.xlu0 %v4832_v30 }
 0x3c8   :  { %v2372_v24 = vpop.f32.mrf.mxu2 }
 0x3c9   :  { %v2373_v43 = vadd.f32 %v2372_v24, %v2284_v38  ;;  %v2461_v25 = vpop.f32.mrf.mxu3  ;;  %v2197_v59 = vpop.f32.mrf.mxu0 }
 0x3ca   :  { %v2286_v15 = vpop.f32.mrf.mxu1  ;;  %v2198_v52 = vadd.f32 %v2197_v59, %v4677_v60 }
 0x3cb   :  { %v4837_v56 = vadd.f32 %v2461_v25, %v2373_v43  ;;  %v5339_v43 = vld [vmem:[#allocation7_spill] sm:$0xff]  ;;  %v5340_v25 = vld [vmem:[#allocation8_spill] sm:$0xff] }
 0x3cc   :  { %2236 = vmatmul.bf16.gmra.mxu0 %v4554_v63  ;;  %2325 = vmatmul.bf16.gmra.mxu1 %v4557_v14  ;;  %v2287_v36 = vadd.f32 %v2286_v15, %v2198_v52 }
 0x3cd   :  { %2414 = vmatmul.bf16.gmra.mxu2 %v4565_v37  ;;  %2538 = vmax.xlane.f32.xlu1 %v4837_v56 }
 0x3ce   :  { %2503 = vmatmul.bf16.gmra.mxu3 %v4568_v27 }
 0x3d0   :  { %v2375_v31 = vpop.f32.mrf.mxu2 }
 0x3d1   :  { %v2376_v21 = vadd.f32 %v2375_v31, %v2287_v36  ;;  %v2464_v44 = vpop.f32.mrf.mxu3  ;;  %v2199_v53 = vpop.f32.mrf.mxu0 }
 0x3d2   :  { %v2288_v2 = vpop.f32.mrf.mxu1  ;;  %v2200_v60 = vadd.f32 %v2199_v53, %v4680_v48 }
 0x3d3   :  { %v4844_v39 = vadd.f32 %v2464_v44, %v2376_v21  ;;  %v5341_v44 = vld [vmem:[#allocation13_spill] sm:$0xff] }
 0x3d4   :  { %v2289_v63 = vadd.f32 %v2288_v2, %v2200_v60 }
 0x3d5   :  { %2540 = vmax.xlane.f32.xlu2 %v4844_v39 }
 0x3d8   :  { %v2377_v14 = vpop.f32.mrf.mxu2 }
 0x3d9   :  { %v2378_v32 = vadd.f32 %v2377_v14, %v2289_v63  ;;  %v2466_v37 = vpop.f32.mrf.mxu3  ;;  %v2202_v61 = vpop.f32.mrf.mxu0 }
 0x3da   :  { %v2291_v27 = vpop.f32.mrf.mxu1  ;;  %v2203_v9 = vadd.f32 %v2202_v61, %v4687_v23  ;;  %v5343_v61 = vld [vmem:[#allocation10_spill] sm:$0xff] }
 0x3db   :  { %v4848_v57 = vadd.f32 %v2466_v37, %v2378_v32  ;;  %v5342_v37 = vld [vmem:[#allocation9_spill] sm:$0xff] }
 0x3dc   :  { %2241 = vmatmul.bf16.gmra.mxu0 %v5335_v18  ;;  %2330 = vmatmul.bf16.gmra.mxu1 %v5336_v58  ;;  %v2292_v48 = vadd.f32 %v2291_v27, %v2203_v9  ;;  %v5344_v27 = vld [vmem:[#allocation11_spill] sm:$0xff]  ;;  %v5345_v9 = vld [vmem:[#allocation12_spill] sm:$0xff] }
 0x3dd   :  { %2419 = vmatmul.bf16.gmra.mxu2 %v5337_v47  ;;  %2542 = vmax.xlane.f32.xlu0 %v4848_v57 }
 0x3de   :  { %2508 = vmatmul.bf16.gmra.mxu3 %v5338_v49 }
 0x3e0   :  { %v2380_v16 = vpop.f32.mrf.mxu2 }
 0x3e1   :  { %v2381_v4 = vadd.f32 %v2380_v16, %v2292_v48  ;;  %v2469_v28 = vpop.f32.mrf.mxu3  ;;  %v2204_v10 = vpop.f32.mrf.mxu0 }
 0x3e2   :  { %v2293_v34 = vpop.f32.mrf.mxu1  ;;  %v2205_v23 = vadd.f32 %v2204_v10, %v4690_v1 }
 0x3e3   :  { %v4856_v5 = vadd.f32 %v2469_v28, %v2381_v4  ;;  %v5346_v28 = vld [vmem:[#allocation14_spill] sm:$0xff] }
 0x3e4   :  { %v2294_v26 = vadd.f32 %v2293_v34, %v2205_v23 }
 0x3e5   :  { %2544 = vmax.xlane.f32.xlu1 %v4856_v5 }
 0x3e8   :  { %v2382_v6 = vpop.f32.mrf.mxu2 }
 0x3e9   :  { %v2383_v40 = vadd.f32 %v2382_v6, %v2294_v26  ;;  %v2471_v3 = vpop.f32.mrf.mxu3  ;;  %v2207_v45 = vpop.f32.mrf.mxu0 }
 0x3ea   :  { %v2296_v41 = vpop.f32.mrf.mxu1  ;;  %v2208_v24 = vadd.f32 %v2207_v45, %v4697_v11 }
 0x3eb   :  { %v4860_v38 = vadd.f32 %v2471_v3, %v2383_v40 }
 0x3ec   :  { %2246 = vmatmul.bf16.gmra.mxu0 %v4594_v12  ;;  %2335 = vmatmul.bf16.gmra.mxu1 %v4597_v33  ;;  %v2297_v1 = vadd.f32 %v2296_v41, %v2208_v24 }
 0x3ed   :  { %2424 = vmatmul.bf16.gmra.mxu2 %v5339_v43  ;;  %2546 = vmax.xlane.f32.xlu2 %v4860_v38 }
 0x3ee   :  { %2513 = vmatmul.bf16.gmra.mxu3 %v5340_v25 }
 0x3f0   :  { %v2385_v59 = vpop.f32.mrf.mxu2 }
 0x3f1   :  { %v2386_v15 = vadd.f32 %v2385_v59, %v2297_v1  ;;  %v2474_v52 = vpop.f32.mrf.mxu3  ;;  %v2209_v36 = vpop.f32.mrf.mxu0 }
 0x3f2   :  { %v2298_v31 = vpop.f32.mrf.mxu1  ;;  %v2210_v11 = vadd.f32 %v2209_v36, %v5341_v44 }
 0x3f3   :  { %v4868_v21 = vadd.f32 %v2474_v52, %v2386_v15 }
 0x3f4   :  { %v2299_v12 = vadd.f32 %v2298_v31, %v2210_v11 }
 0x3f5   :  { %2548 = vmax.xlane.f32.xlu0 %v4868_v21 }
 0x3f8   :  { %v2387_v33 = vpop.f32.mrf.mxu2 }
 0x3f9   :  { %v2388_v53 = vadd.f32 %v2387_v33, %v2299_v12  ;;  %v2476_v2 = vpop.f32.mrf.mxu3  ;;  %v2212_v60 = vpop.f32.mrf.mxu0  ;;  %v5347_v12 = vld [vmem:[#allocation15_spill] sm:$0xff] }
 0x3fa   :  { %v2301_v63 = vpop.f32.mrf.mxu1  ;;  %v2213_v32 = vadd.f32 %v2212_v60, %v4707_v17 }
 0x3fb   :  { %v4872_v14 = vadd.f32 %v2476_v2, %v2388_v53 }
 0x3fc   :  { %2251 = vmatmul.bf16.gmra.mxu0 %v5342_v37  ;;  %2340 = vmatmul.bf16.gmra.mxu1 %v5343_v61  ;;  %v2302_v18 = vadd.f32 %v2301_v63, %v2213_v32 }
 0x3fd   :  { %2429 = vmatmul.bf16.gmra.mxu2 %v5344_v27  ;;  %2550 = vmax.xlane.f32.xlu1 %v4872_v14 }
 0x3fe   :  { %2518 = vmatmul.bf16.gmra.mxu3 %v5345_v9 }
 0x400   :  { %v2390_v58 = vpop.f32.mrf.mxu2 }
 0x401   :  { %v2391_v47 = vadd.f32 %v2390_v58, %v2302_v18  ;;  %v2479_v49 = vpop.f32.mrf.mxu3  ;;  %v2214_v48 = vpop.f32.mrf.mxu0 }
 0x402   :  { %v2303_v16 = vpop.f32.mrf.mxu1  ;;  %v2215_v17 = vadd.f32 %v2214_v48, %v5346_v28 }
 0x403   :  { %v4880_v4 = vadd.f32 %v2479_v49, %v2391_v47 }
 0x404   :  { %v2304_v10 = vadd.f32 %v2303_v16, %v2215_v17 }
 0x405   :  { %2552 = vmax.xlane.f32.xlu2 %v4880_v4 }
 0x408   :  { %v2392_v34 = vpop.f32.mrf.mxu2  ;;  %v2525_v23 = vpop.xlane.xlu0 %2524 }
 0x409   :  { %v2393_v26 = vadd.f32 %v2392_v34, %v2304_v10  ;;  %v2481_v6 = vpop.f32.mrf.mxu3  ;;  %v2588_v40 = vsub.f32 %v4796_v7, %v2525_v23  ;;  %v2217_v3 = vpop.f32.mrf.mxu0 }
 0x40a   :  { %v2306_v45 = vpop.f32.mrf.mxu1  ;;  %v2218_v43 = vadd.f32 %v2217_v3, %v4717_v46 }
 0x40b   :  { %v4885_v41 = vadd.f32 %v2481_v6, %v2393_v26  ;;  %v2620_v24 = vmul.f32 1.442695, %v2588_v40 }
 0x40c   :  { %v2307_v25 = vadd.f32 %v2306_v45, %v2218_v43 }
 0x40d   :  { %3437 = vpow2.f32 %v2620_v24  ;;  %2554 = vmax.xlane.f32.xlu0 %v4885_v41 }
 0x410   :  { %v2395_v1 = vpop.f32.mrf.mxu2  ;;  %v2527_v52 = vpop.xlane.xlu0 %2526 }
 0x411   :  { %v2396_v59 = vadd.f32 %v2395_v1, %v2307_v25  ;;  %v2484_v15 = vpop.f32.mrf.mxu3  ;;  %v2589_v36 = vsub.f32 %v4801_v42, %v2527_v52  ;;  %v2219_v31 = vpop.f32.mrf.mxu0 }
 0x412   :  { %v2308_v44 = vpop.f32.mrf.mxu1  ;;  %v2220_v33 = vadd.f32 %v2219_v31, %v5347_v12 }
 0x413   :  { %v4890_v7 = vpop.eup %3437  ;;  %v4892_v11 = vadd.f32 %v2484_v15, %v2396_v59  ;;  %v2622_v53 = vmul.f32 1.442695, %v2589_v36 }
 0x414   :  { %2684 = vadd.xlane.f32.xlu2 %v4890_v7  ;;  %v2309_v46 = vadd.f32 %v2308_v44, %v2220_v33 }
 0x415   :  { %2556 = vmax.xlane.f32.xlu1 %v4892_v11  ;;  %3439 = vpow2.f32 %v2622_v53 }
 0x418   :  { %v2397_v2 = vpop.f32.mrf.mxu2  ;;  %v2529_v60 = vpop.xlane.xlu1 %2528 }
 0x419   :  { %v2398_v63 = vadd.f32 %v2397_v2, %v2309_v46  ;;  %v2486_v32 = vpop.f32.mrf.mxu3  ;;  %v2590_v42 = vsub.f32 %v4808_v0, %v2529_v60  ;;  %v2222_v37 = vpop.f32.mrf.mxu0 }
 0x41a   :  { %v2311_v61 = vpop.f32.mrf.mxu1  ;;  %v2223_v18 = vadd.f32 %v2222_v37, %v4727_v22  ;;  %v5348_v22 = vld [vmem:[#allocation16_spill] sm:$0xff] }
 0x41b   :  { %v4898_v27 = vadd.f32 %v2486_v32, %v2398_v63  ;;  %v2624_v9 = vmul.f32 1.442695, %v2590_v42  ;;  %v4901_v58 = vpop.eup %3439 }
 0x41c   :  { %2686 = vadd.xlane.f32.xlu0 %v4901_v58  ;;  %v2312_v47 = vadd.f32 %v2311_v61, %v2223_v18 }
 0x41d   :  { %3441 = vpow2.f32 %v2624_v9  ;;  %2558 = vmax.xlane.f32.xlu2 %v4898_v27 }
 0x420   :  { %v2400_v49 = vpop.f32.mrf.mxu2  ;;  %v2531_v28 = vpop.xlane.xlu1 %2530 }
 0x421   :  { %v2401_v48 = vadd.f32 %v2400_v49, %v2312_v47  ;;  %v2489_v16 = vpop.f32.mrf.mxu3  ;;  %v2591_v0 = vsub.f32 %v4813_v62, %v2531_v28  ;;  %v2224_v17 = vpop.f32.mrf.mxu0 }
 0x422   :  { %v2313_v10 = vpop.f32.mrf.mxu1  ;;  %v2225_v26 = vadd.f32 %v2224_v17, %v5348_v22 }
 0x423   :  { %v4906_v34 = vpop.eup %3441  ;;  %v4908_v23 = vadd.f32 %v2489_v16, %v2401_v48  ;;  %v2626_v6 = vmul.f32 1.442695, %v2591_v0 }
 0x424   :  { %2688 = vadd.xlane.f32.xlu1 %v4906_v34  ;;  %v2314_v40 = vadd.f32 %v2313_v10, %v2225_v26 }
 0x425   :  { %2560 = vmax.xlane.f32.xlu0 %v4908_v23  ;;  %3443 = vpow2.f32 %v2626_v6 }
 0x428   :  { %v2402_v3 = vpop.f32.mrf.mxu2  ;;  %v2533_v45 = vpop.xlane.xlu2 %2532 }
 0x429   :  { %v2403_v24 = vadd.f32 %v2402_v3, %v2314_v40  ;;  %v2491_v43 = vpop.f32.mrf.mxu3  ;;  %v2592_v62 = vsub.f32 %v4820_v13, %v2533_v45  ;;  %v2227_v25 = vpop.f32.mrf.mxu0 }
 0x42a   :  { %v2316_v1 = vpop.f32.mrf.mxu1  ;;  %v2228_v52 = vadd.f32 %v2227_v25, %v4737_v50  ;;  %v5349_v50 = vld [vmem:[#allocation17_spill] sm:$0xff] }
 0x42b   :  { %v4914_v59 = vadd.f32 %v2491_v43, %v2403_v24  ;;  %v2628_v15 = vmul.f32 1.442695, %v2592_v62  ;;  %v4917_v36 = vpop.eup %3443 }
 0x42c   :  { %2690 = vadd.xlane.f32.xlu2 %v4917_v36  ;;  %v2317_v31 = vadd.f32 %v2316_v1, %v2228_v52 }
 0x42d   :  { %3445 = vpow2.f32 %v2628_v15  ;;  %2562 = vmax.xlane.f32.xlu1 %v4914_v59 }
 0x430   :  { %v2405_v44 = vpop.f32.mrf.mxu2  ;;  %v2535_v53 = vpop.xlane.xlu2 %2534 }
 0x431   :  { %v2406_v12 = vadd.f32 %v2405_v44, %v2317_v31  ;;  %v2494_v33 = vpop.f32.mrf.mxu3  ;;  %v2593_v13 = vsub.f32 %v4825_v35, %v2535_v53  ;;  %v2229_v46 = vpop.f32.mrf.mxu0 }
 0x432   :  { %v2318_v2 = vpop.f32.mrf.mxu1  ;;  %v2230_v32 = vadd.f32 %v2229_v46, %v5349_v50 }
 0x433   :  { %v4922_v60 = vpop.eup %3445  ;;  %v4924_v63 = vadd.f32 %v2494_v33, %v2406_v12  ;;  %v2630_v42 = vmul.f32 1.442695, %v2593_v13 }
 0x434   :  { %2692 = vadd.xlane.f32.xlu0 %v4922_v60  ;;  %v2319_v37 = vadd.f32 %v2318_v2, %v2230_v32 }
 0x435   :  { %2564 = vmax.xlane.f32.xlu2 %v4924_v63  ;;  %3447 = vpow2.f32 %v2630_v42 }
 0x438   :  { %v2407_v61 = vpop.f32.mrf.mxu2  ;;  %v2537_v9 = vpop.xlane.xlu0 %2536 }
 0x439   :  { %v2408_v18 = vadd.f32 %v2407_v61, %v2319_v37  ;;  %v2496_v47 = vpop.f32.mrf.mxu3  ;;  %v2594_v35 = vsub.f32 %v4832_v30, %v2537_v9  ;;  %v2232_v49 = vpop.f32.mrf.mxu0 }
 0x43a   :  { %v2321_v48 = vpop.f32.mrf.mxu1  ;;  %v2233_v0 = vadd.f32 %v2232_v49, %v4747_v54  ;;  %v5350_v54 = vld [vmem:[#allocation18_spill] sm:$0xff] }
 0x43b   :  { %v4930_v16 = vadd.f32 %v2496_v47, %v2408_v18  ;;  %v2632_v28 = vmul.f32 1.442695, %v2594_v35  ;;  %v4933_v17 = vpop.eup %3447 }
 0x43c   :  { %2694 = vadd.xlane.f32.xlu1 %v4933_v17  ;;  %v2322_v10 = vadd.f32 %v2321_v48, %v2233_v0 }
 0x43d   :  { %3449 = vpow2.f32 %v2632_v28  ;;  %2566 = vmax.xlane.f32.xlu0 %v4930_v16 }
 0x440   :  { %v2410_v22 = vpop.f32.mrf.mxu2  ;;  %v2539_v40 = vpop.xlane.xlu1 %2538 }
 0x441   :  { %v2411_v26 = vadd.f32 %v2410_v22, %v2322_v10  ;;  %v2499_v6 = vpop.f32.mrf.mxu3  ;;  %v2595_v30 = vsub.f32 %v4837_v56, %v2539_v40  ;;  %v2234_v3 = vpop.f32.mrf.mxu0 }
 0x442   :  { %v2323_v45 = vpop.f32.mrf.mxu1  ;;  %v2235_v62 = vadd.f32 %v2234_v3, %v5350_v54 }
 0x443   :  { %v4938_v24 = vpop.eup %3449  ;;  %v4940_v43 = vadd.f32 %v2499_v6, %v2411_v26  ;;  %v2634_v25 = vmul.f32 1.442695, %v2595_v30 }
 0x444   :  { %2696 = vadd.xlane.f32.xlu2 %v4938_v24  ;;  %v2324_v1 = vadd.f32 %v2323_v45, %v2235_v62 }
 0x445   :  { %2568 = vmax.xlane.f32.xlu1 %v4940_v43  ;;  %3451 = vpow2.f32 %v2634_v25 }
 0x448   :  { %v2412_v15 = vpop.f32.mrf.mxu2  ;;  %v2541_v52 = vpop.xlane.xlu2 %2540 }
 0x449   :  { %v2413_v31 = vadd.f32 %v2412_v15, %v2324_v1  ;;  %v2501_v44 = vpop.f32.mrf.mxu3  ;;  %v2596_v56 = vsub.f32 %v4844_v39, %v2541_v52  ;;  %v2237_v12 = vpop.f32.mrf.mxu0 }
 0x44a   :  { %v2326_v33 = vpop.f32.mrf.mxu1  ;;  %v2238_v46 = vadd.f32 %v2237_v12, %v4757_v20  ;;  %v5351_v20 = vld [vmem:[#allocation19_spill] sm:$0xff] }
 0x44b   :  { %v4946_v53 = vadd.f32 %v2501_v44, %v2413_v31  ;;  %v2636_v13 = vmul.f32 1.442695, %v2596_v56  ;;  %v4949_v2 = vpop.eup %3451  ;;  %v5352_v56 = vld [vmem:[#allocation20_spill] sm:$0xff] }
 0x44c   :  { %2698 = vadd.xlane.f32.xlu0 %v4949_v2  ;;  %v2327_v50 = vadd.f32 %v2326_v33, %v2238_v46 }
 0x44d   :  { %3453 = vpow2.f32 %v2636_v13  ;;  %2570 = vmax.xlane.f32.xlu2 %v4946_v53 }
 0x450   :  { %v2415_v32 = vpop.f32.mrf.mxu2  ;;  %v2543_v61 = vpop.xlane.xlu0 %2542 }
 0x451   :  { %v2416_v42 = vadd.f32 %v2415_v32, %v2327_v50  ;;  %v2504_v37 = vpop.f32.mrf.mxu3  ;;  %v2597_v39 = vsub.f32 %v4848_v57, %v2543_v61  ;;  %v2239_v9 = vpop.f32.mrf.mxu0 }
 0x452   :  { %v2328_v18 = vpop.f32.mrf.mxu1  ;;  %v2240_v49 = vadd.f32 %v2239_v9, %v5351_v20 }
 0x453   :  { %v4954_v47 = vpop.eup %3453  ;;  %v4956_v35 = vadd.f32 %v2504_v37, %v2416_v42  ;;  %v2638_v48 = vmul.f32 1.442695, %v2597_v39 }
 0x454   :  { %2700 = vadd.xlane.f32.xlu1 %v4954_v47  ;;  %v2329_v28 = vadd.f32 %v2328_v18, %v2240_v49 }
 0x455   :  { %2572 = vmax.xlane.f32.xlu0 %v4956_v35  ;;  %3455 = vpow2.f32 %v2638_v48 }
 0x458   :  { %v2417_v0 = vpop.f32.mrf.mxu2  ;;  %v2545_v10 = vpop.xlane.xlu1 %2544 }
 0x459   :  { %v2418_v22 = vadd.f32 %v2417_v0, %v2329_v28  ;;  %v2506_v26 = vpop.f32.mrf.mxu3  ;;  %v2598_v57 = vsub.f32 %v4856_v5, %v2545_v10  ;;  %v2242_v6 = vpop.f32.mrf.mxu0 }
 0x45a   :  { %v2331_v40 = vpop.f32.mrf.mxu1  ;;  %v2243_v45 = vadd.f32 %v2242_v6, %v4767_v55 }
 0x45b   :  { %v4962_v30 = vadd.f32 %v2506_v26, %v2418_v22  ;;  %v2640_v3 = vmul.f32 1.442695, %v2598_v57  ;;  %v4965_v54 = vpop.eup %3455 }
 0x45c   :  { %2702 = vadd.xlane.f32.xlu2 %v4965_v54  ;;  %v2332_v62 = vadd.f32 %v2331_v40, %v2243_v45 }
 0x45d   :  { %3457 = vpow2.f32 %v2640_v3  ;;  %2574 = vmax.xlane.f32.xlu1 %v4962_v30 }
 0x460   :  { %v2420_v25 = vpop.f32.mrf.mxu2  ;;  %v2547_v22 = vpop.xlane.xlu2 %2546 }
 0x461   :  { %v2421_v1 = vadd.f32 %v2420_v25, %v2332_v62  ;;  %v2509_v15 = vpop.f32.mrf.mxu3  ;;  %v2244_v52 = vpop.f32.mrf.mxu0 }
 0x462   :  { %v2333_v5 = vpop.f32.mrf.mxu1  ;;  %v2245_v12 = vadd.f32 %v2244_v52, %v5352_v56 }
 0x463   :  { %v4969_v31 = vpop.eup %3457  ;;  %v4971_v44 = vadd.f32 %v2509_v15, %v2421_v1 }
 0x464   :  { %2704 = vadd.xlane.f32.xlu0 %v4969_v31  ;;  %v2334_v55 = vadd.f32 %v2333_v5, %v2245_v12 }
 0x465   :  { %2576 = vmax.xlane.f32.xlu2 %v4971_v44 }
 0x468   :  { %v2422_v33 = vpop.f32.mrf.mxu2  ;;  %v2549_v48 = vpop.xlane.xlu0 %2548 }
 0x469   :  { %v2423_v13 = vadd.f32 %v2422_v33, %v2334_v55  ;;  %v2511_v46 = vpop.f32.mrf.mxu3  ;;  %v2247_v50 = vpop.f32.mrf.mxu0  ;;  %v2600_v10 = vsub.f32 %v4868_v21, %v2549_v48 }
 0x46a   :  { %v2336_v32 = vpop.f32.mrf.mxu1  ;;  %v2248_v37 = vadd.f32 %v2247_v50, %v4777_v29 }
 0x46b   :  { %v4976_v42 = vadd.f32 %v2511_v46, %v2423_v13  ;;  %v2644_v40 = vmul.f32 1.442695, %v2600_v10 }
 0x46c   :  { %v2337_v61 = vadd.f32 %v2336_v32, %v2248_v37 }
 0x46d   :  { %2578 = vmax.xlane.f32.xlu0 %v4976_v42  ;;  %3459 = vpow2.f32 %v2644_v40 }
 0x470   :  { %v2425_v39 = vpop.f32.mrf.mxu2  ;;  %v2551_v45 = vpop.xlane.xlu1 %2550 }
 0x471   :  { %v2426_v9 = vadd.f32 %v2425_v39, %v2337_v61  ;;  %v2514_v18 = vpop.f32.mrf.mxu3  ;;  %v2249_v20 = vpop.f32.mrf.mxu0 }
 0x472   :  { %v2338_v49 = vpop.f32.mrf.mxu1  ;;  %v2250_v0 = vadd.f32 %v2249_v20, %v4780_v8  ;;  %v2601_v8 = vsub.f32 %v4872_v14, %v2551_v45  ;;  %v2599_v14 = vsub.f32 %v4860_v38, %v2547_v22 }
 0x473   :  { %v4980_v28 = vadd.f32 %v2514_v18, %v2426_v9  ;;  %v4994_v32 = vpop.eup %3459 }
 0x474   :  { %v2339_v26 = vadd.f32 %v2338_v49, %v2250_v0  ;;  %v2646_v33 = vmul.f32 1.442695, %v2601_v8 }
 0x475   :  { %2580 = vmax.xlane.f32.xlu1 %v4980_v28 }
 0x478   :  { %v2427_v29 = vpop.f32.mrf.mxu2  ;;  %v2553_v15 = vpop.xlane.xlu2 %2552 }
 0x479   :  { %v2428_v57 = vadd.f32 %v2427_v29, %v2339_v26  ;;  %v2516_v6 = vpop.f32.mrf.mxu3  ;;  %v2252_v3 = vpop.f32.mrf.mxu0  ;;  %v2602_v22 = vsub.f32 %v4880_v4, %v2553_v15 }
 0x47a   :  { %v2253_v25 = vadd.f32 %v2252_v3, %v4787_v51  ;;  %v2341_v1 = vpop.f32.mrf.mxu1 }
 0x47b   :  { %v4985_v62 = vadd.f32 %v2516_v6, %v2428_v57  ;;  %v2648_v6 = vmul.f32 1.442695, %v2602_v22 }
 0x47c   :  { %v2342_v21 = vadd.f32 %v2341_v1, %v2253_v25 }
 0x47d   :  { %2582 = vmax.xlane.f32.xlu2 %v4985_v62 }
 0x480   :  { %v2430_v52 = vpop.f32.mrf.mxu2  ;;  %v2555_v5 = vpop.xlane.xlu0 %2554 }
 0x481   :  { %v2431_v56 = vadd.f32 %v2430_v52, %v2342_v21  ;;  %v2519_v12 = vpop.f32.mrf.mxu3  ;;  %v2603_v55 = vsub.f32 %v4885_v41, %v2555_v5  ;;  %v2254_v13 = vpop.f32.mrf.mxu0 }
 0x482   :  { %v2255_v51 = vadd.f32 %v2254_v13, %v4789_v19  ;;  %v2343_v37 = vpop.f32.mrf.mxu1  ;;  %v2642_v19 = vmul.f32 1.442695, %v2599_v14 }
 0x483   :  { %v4991_v46 = vadd.f32 %v2519_v12, %v2431_v56  ;;  %v2650_v50 = vmul.f32 1.442695, %v2603_v55 }
 0x484   :  { %v2344_v61 = vadd.f32 %v2343_v37, %v2255_v51 }
 0x485   :  { %3461 = vpow2.f32 %v2650_v50  ;;  %2584 = vmax.xlane.f32.xlu0 %v4991_v46  ;;  %2708 = vadd.xlane.f32.xlu2 %v4994_v32 }
 0x486   :  { %3463 = vpow2.f32 %v2646_v33 }
 0x487   :  { %v2685_v41 = vpop.xlane.xlu2 %2684 }
 0x488   :  { %3465 = vrcp.f32 %v2685_v41  ;;  %v2432_v39 = vpop.f32.mrf.mxu2  ;;  %v2557_v9 = vpop.xlane.xlu1 %2556 }
 0x489   :  { %v2433_v18 = vadd.f32 %v2432_v39, %v2344_v61  ;;  %v2604_v20 = vsub.f32 %v4892_v11, %v2557_v9  ;;  %v2521_v49 = vpop.f32.mrf.mxu3 }
 0x48b   :  { %v5000_v48 = vpop.eup %3461  ;;  %v5002_v0 = vadd.f32 %v2521_v49, %v2433_v18  ;;  %v2652_v10 = vmul.f32 1.442695, %v2604_v20 }
 0x48c   :  { %v5004_v26 = vpop.eup %3463 }
 0x48d   :  { %3467 = vpow2.f32 %v2652_v10  ;;  %2586 = vmax.xlane.f32.xlu1 %v5002_v0  ;;  %2710 = vadd.xlane.f32.xlu0 %v5004_v26 }
 0x48e   :  { %v3466_v38 = vpop.eup %3465  ;;  %3469 = vpow2.f32 %v2642_v19  ;;  %2714 = vadd.xlane.f32.xlu2 %v5000_v48 }
 0x48f   :  { %v2780_v11 = vmul.f32 %v3466_v38, %v2685_v41  ;;  %v2687_v29 = vpop.xlane.xlu0 %2686 }
 0x490   :  { %3471 = vrcp.f32 %v2687_v29  ;;  %v2559_v45 = vpop.xlane.xlu2 %2558 }
 0x491   :  { %v2812_v57 = vsub.f32 2.0, %v2780_v11  ;;  %3473 = vpow2.f32 %v2648_v6  ;;  %v2605_v4 = vsub.f32 %v4898_v27, %v2559_v45 }
 0x493   :  { %v5010_v40 = vpop.eup %3467  ;;  %v2844_v3 = vmul.f32 %v3466_v38, %v2812_v57 }
 0x494   :  { %v5012_v25 = vpop.eup %3469 }
 0x495   :  { %v2876_v1 = vmul.f32 %v4890_v7, %v2844_v3  ;;  %2706 = vadd.xlane.f32.xlu1 %v5012_v25  ;;  %2716 = vadd.xlane.f32.xlu0 %v5010_v40  ;;  %v2654_v7 = vmul.f32 1.442695, %v2605_v4 }
 0x496   :  { %v3472_v8 = vpop.eup %3471 }
 0x497   :  { %2908 = vst [vmem:[%s5212_s5] sm:$0xff] %v2876_v1  ;;  %v2689_v15 = vpop.xlane.xlu1 %2688  ;;  %v2781_v21 = vmul.f32 %v3472_v8, %v2687_v29  ;;  %v5022_v55 = vpop.eup %3473 }
 0x498   :  { %3475 = vrcp.f32 %v2689_v15  ;;  %v2561_v52 = vpop.xlane.xlu0 %2560 }
 0x499   :  { %v2606_v5 = vsub.f32 %v4908_v23, %v2561_v52  ;;  %v2813_v56 = vsub.f32 2.0, %v2781_v21 }
 0x49b   :  { %v2656_v12 = vmul.f32 1.442695, %v2606_v5  ;;  %v2845_v33 = vmul.f32 %v3472_v8, %v2813_v56 }
 0x49d   :  { %3477 = vpow2.f32 %v2656_v12  ;;  %2712 = vadd.xlane.f32.xlu1 %v5022_v55  ;;  %v2877_v13 = vmul.f32 %v4901_v58, %v2845_v33 }
 0x49e   :  { %v3476_v27 = vpop.eup %3475  ;;  %3479 = vpow2.f32 %v2654_v7 }
 0x49f   :  { %v2782_v50 = vmul.f32 %v3476_v27, %v2689_v15  ;;  %2909 = vst [vmem:[%s5212_s5 + $0x8] sm:$0xff] %v2877_v13  ;;  %v2691_v51 = vpop.xlane.xlu2 %2690 }
 0x4a0   :  { %v2563_v23 = vpop.xlane.xlu1 %2562  ;;  %3481 = vrcp.f32 %v2691_v51 }
 0x4a1   :  { %v2814_v14 = vsub.f32 2.0, %v2782_v50  ;;  %v2607_v37 = vsub.f32 %v4914_v59, %v2563_v23 }
 0x4a3   :  { %v5030_v61 = vpop.eup %3477  ;;  %v2846_v41 = vmul.f32 %v3476_v27, %v2814_v14  ;;  %v2658_v39 = vmul.f32 1.442695, %v2607_v37 }
 0x4a4   :  { %v5032_v9 = vpop.eup %3479  ;;  %2720 = vadd.xlane.f32.xlu2 %v5030_v61 }
 0x4a5   :  { %v2878_v58 = vmul.f32 %v4906_v34, %v2846_v41  ;;  %3483 = vpow2.f32 %v2658_v39  ;;  %2718 = vadd.xlane.f32.xlu1 %v5032_v9 }
 0x4a6   :  { %v3482_v18 = vpop.eup %3481 }
 0x4a7   :  { %2910 = vst [vmem:[%s5212_s5 + $0x10] sm:$0xff] %v2878_v58  ;;  %v2693_v20 = vpop.xlane.xlu0 %2692  ;;  %v2783_v59 = vmul.f32 %v3482_v18, %v2691_v51 }
 0x4a8   :  { %3485 = vrcp.f32 %v2693_v20  ;;  %v2565_v19 = vpop.xlane.xlu2 %2564 }
 0x4a9   :  { %v2608_v49 = vsub.f32 %v4924_v63, %v2565_v19  ;;  %v2815_v10 = vsub.f32 2.0, %v2783_v59 }
 0x4ab   :  { %v5041_v38 = vpop.eup %3483  ;;  %v2660_v22 = vmul.f32 1.442695, %v2608_v49  ;;  %v2847_v11 = vmul.f32 %v3482_v18, %v2815_v10 }
 0x4ac   :  { %2722 = vadd.xlane.f32.xlu0 %v5041_v38 }
 0x4ad   :  { %3487 = vpow2.f32 %v2660_v22  ;;  %v2879_v29 = vmul.f32 %v4917_v36, %v2847_v11 }
 0x4ae   :  { %v3486_v34 = vpop.eup %3485 }
 0x4af   :  { %v2784_v57 = vmul.f32 %v3486_v34, %v2693_v20  ;;  %2911 = vst [vmem:[%s5212_s5 + $0x18] sm:$0xff] %v2879_v29  ;;  %v2695_v6 = vpop.xlane.xlu1 %2694 }
 0x4b0   :  { %v2567_v3 = vpop.xlane.xlu0 %2566  ;;  %3489 = vrcp.f32 %v2695_v6 }
 0x4b1   :  { %v2816_v45 = vsub.f32 2.0, %v2784_v57  ;;  %v2609_v63 = vsub.f32 %v4930_v16, %v2567_v3 }
 0x4b3   :  { %v5049_v1 = vpop.eup %3487  ;;  %v2848_v4 = vmul.f32 %v3486_v34, %v2816_v45  ;;  %v2662_v8 = vmul.f32 1.442695, %v2609_v63 }
 0x4b4   :  { %2724 = vadd.xlane.f32.xlu1 %v5049_v1 }
 0x4b5   :  { %v2880_v15 = vmul.f32 %v4922_v60, %v2848_v4  ;;  %3491 = vpow2.f32 %v2662_v8 }
 0x4b6   :  { %v3490_v36 = vpop.eup %3489 }
 0x4b7   :  { %2912 = vst [vmem:[%s5212_s5 + $0x20] sm:$0xff] %v2880_v15  ;;  %v2697_v21 = vpop.xlane.xlu2 %2696  ;;  %v2785_v52 = vmul.f32 %v3490_v36, %v2695_v6 }
 0x4b8   :  { %3493 = vrcp.f32 %v2697_v21  ;;  %v2569_v5 = vpop.xlane.xlu1 %2568 }
 0x4b9   :  { %v2610_v16 = vsub.f32 %v4940_v43, %v2569_v5  ;;  %v2817_v56 = vsub.f32 2.0, %v2785_v52 }
 0x4bb   :  { %v5057_v7 = vpop.eup %3491  ;;  %v2664_v12 = vmul.f32 1.442695, %v2610_v16  ;;  %v2849_v33 = vmul.f32 %v3490_v36, %v2817_v56 }
 0x4bc   :  { %2726 = vadd.xlane.f32.xlu2 %v5057_v7 }
 0x4bd   :  { %3495 = vpow2.f32 %v2664_v12  ;;  %v2881_v27 = vmul.f32 %v4933_v17, %v2849_v33 }
 0x4be   :  { %v3494_v60 = vpop.eup %3493 }
 0x4bf   :  { %v2786_v13 = vmul.f32 %v3494_v60, %v2697_v21  ;;  %2913 = vst [vmem:[%s5212_s5 + $0x28] sm:$0xff] %v2881_v27  ;;  %v2699_v50 = vpop.xlane.xlu0 %2698 }
 0x4c0   :  { %v2571_v51 = vpop.xlane.xlu2 %2570  ;;  %3497 = vrcp.f32 %v2699_v50 }
 0x4c1   :  { %v2818_v23 = vsub.f32 2.0, %v2786_v13  ;;  %v2611_v43 = vsub.f32 %v4946_v53, %v2571_v51 }
 0x4c3   :  { %v5065_v14 = vpop.eup %3495  ;;  %v2850_v37 = vmul.f32 %v3494_v60, %v2818_v23  ;;  %v2666_v41 = vmul.f32 1.442695, %v2611_v43 }
 0x4c4   :  { %2728 = vadd.xlane.f32.xlu0 %v5065_v14 }
 0x4c5   :  { %v2882_v39 = vmul.f32 %v4938_v24, %v2850_v37  ;;  %3499 = vpow2.f32 %v2666_v41 }
 0x4c6   :  { %v3498_v17 = vpop.eup %3497 }
 0x4c7   :  { %2914 = vst [vmem:[%s5212_s5 + $0x30] sm:$0xff] %v2882_v39  ;;  %v2701_v58 = vpop.xlane.xlu1 %2700  ;;  %v2787_v18 = vmul.f32 %v3498_v17, %v2699_v50 }
 0x4c8   :  { %3501 = vrcp.f32 %v2701_v58  ;;  %v2573_v20 = vpop.xlane.xlu0 %2572 }
 0x4c9   :  { %v2612_v53 = vsub.f32 %v4956_v35, %v2573_v20  ;;  %v2819_v59 = vsub.f32 2.0, %v2787_v18 }
 0x4cb   :  { %v5073_v19 = vpop.eup %3499  ;;  %v2668_v49 = vmul.f32 1.442695, %v2612_v53  ;;  %v2851_v10 = vmul.f32 %v3498_v17, %v2819_v59 }
 0x4cc   :  { %2730 = vadd.xlane.f32.xlu1 %v5073_v19 }
 0x4cd   :  { %3503 = vpow2.f32 %v2668_v49  ;;  %v2883_v22 = vmul.f32 %v4949_v2, %v2851_v10 }
 0x4ce   :  { %v3502_v24 = vpop.eup %3501 }
 0x4cf   :  { %v2788_v11 = vmul.f32 %v3502_v24, %v2701_v58  ;;  %2915 = vst [vmem:[%s5212_s5 + $0x38] sm:$0xff] %v2883_v22  ;;  %v2703_v34 = vpop.xlane.xlu2 %2702 }
 0x4d0   :  { %v2575_v29 = vpop.xlane.xlu1 %2574  ;;  %3505 = vrcp.f32 %v2703_v34 }
 0x4d1   :  { %v2820_v57 = vsub.f32 2.0, %v2788_v11  ;;  %v2613_v35 = vsub.f32 %v4962_v30, %v2575_v29 }
 0x4d3   :  { %v5081_v6 = vpop.eup %3503  ;;  %v2852_v3 = vmul.f32 %v3502_v24, %v2820_v57  ;;  %v2670_v45 = vmul.f32 1.442695, %v2613_v35 }
 0x4d4   :  { %2732 = vadd.xlane.f32.xlu2 %v5081_v6 }
 0x4d5   :  { %v2884_v63 = vmul.f32 %v4954_v47, %v2852_v3  ;;  %3507 = vpow2.f32 %v2670_v45 }
 0x4d6   :  { %v3506_v2 = vpop.eup %3505 }
 0x4d7   :  { %2916 = vst [vmem:[%s5212_s5 + $0x40] sm:$0xff] %v2884_v63  ;;  %v2705_v4 = vpop.xlane.xlu0 %2704  ;;  %v2789_v8 = vmul.f32 %v3506_v2, %v2703_v34 }
 0x4d8   :  { %3509 = vrcp.f32 %v2705_v4  ;;  %v2577_v15 = vpop.xlane.xlu2 %2576 }
 0x4d9   :  { %v2614_v30 = vsub.f32 %v4971_v44, %v2577_v15  ;;  %v2821_v36 = vsub.f32 2.0, %v2789_v8 }
 0x4db   :  { %v5089_v21 = vpop.eup %3507  ;;  %v2672_v52 = vmul.f32 1.442695, %v2614_v30  ;;  %v2853_v5 = vmul.f32 %v3506_v2, %v2821_v36 }
 0x4dc   :  { %2734 = vadd.xlane.f32.xlu0 %v5089_v21 }
 0x4dd   :  { %3511 = vpow2.f32 %v2672_v52  ;;  %v2885_v16 = vmul.f32 %v4965_v54, %v2853_v5 }
 0x4de   :  { %v3510_v47 = vpop.eup %3509 }
 0x4df   :  { %v2790_v56 = vmul.f32 %v3510_v47, %v2705_v4  ;;  %2917 = vst [vmem:[%s5212_s5 + $0x48] sm:$0xff] %v2885_v16 }
 0x4e0   :  { %v2579_v12 = vpop.xlane.xlu0 %2578 }
 0x4e1   :  { %v2822_v33 = vsub.f32 2.0, %v2790_v56  ;;  %v2615_v44 = vsub.f32 %v4976_v42, %v2579_v12 }
 0x4e3   :  { %v5097_v60 = vpop.eup %3511  ;;  %v2854_v27 = vmul.f32 %v3510_v47, %v2822_v33  ;;  %v2674_v13 = vmul.f32 1.442695, %v2615_v44 }
 0x4e4   :  { %2736 = vadd.xlane.f32.xlu1 %v5097_v60 }
 0x4e5   :  { %v2886_v50 = vmul.f32 %v4969_v31, %v2854_v27  ;;  %3513 = vpow2.f32 %v2674_v13 }
 0x4e7   :  { %2918 = vst [vmem:[%s5212_s5 + $0x50] sm:$0xff] %v2886_v50 }
 0x4e8   :  { %v2581_v54 = vpop.xlane.xlu1 %2580 }
 0x4e9   :  { %v2616_v51 = vsub.f32 %v4980_v28, %v2581_v54 }
 0x4eb   :  { %v5105_v23 = vpop.eup %3513  ;;  %v2676_v43 = vmul.f32 1.442695, %v2616_v51 }
 0x4ec   :  { %2738 = vadd.xlane.f32.xlu2 %v5105_v23 }
 0x4ed   :  { %3515 = vpow2.f32 %v2676_v43 }
 0x4f0   :  { %v2583_v42 = vpop.xlane.xlu2 %2582 }
 0x4f1   :  { %v2617_v37 = vsub.f32 %v4985_v62, %v2583_v42 }
 0x4f3   :  { %v5109_v41 = vpop.eup %3515  ;;  %v2678_v31 = vmul.f32 1.442695, %v2617_v37 }
 0x4f4   :  { %2740 = vadd.xlane.f32.xlu0 %v5109_v41 }
 0x4f5   :  { %3517 = vpow2.f32 %v2678_v31 }
 0x4f8   :  { %v2709_v39 = vpop.xlane.xlu2 %2708  ;;  %v2585_v17 = vpop.xlane.xlu0 %2584 }
 0x4f9   :  { %3519 = vrcp.f32 %v2709_v39  ;;  %v2618_v28 = vsub.f32 %v4991_v46, %v2585_v17 }
 0x4fb   :  { %v5113_v58 = vpop.eup %3517  ;;  %v2680_v18 = vmul.f32 1.442695, %v2618_v28 }
 0x4fc   :  { %2742 = vadd.xlane.f32.xlu1 %v5113_v58 }
 0x4fd   :  { %3521 = vpow2.f32 %v2680_v18 }
 0x4ff   :  { %v3520_v20 = vpop.eup %3519 }
 0x500   :  { %v2792_v53 = vmul.f32 %v3520_v20, %v2709_v39  ;;  %v2587_v62 = vpop.xlane.xlu1 %2586  ;;  %v2711_v59 = vpop.xlane.xlu0 %2710 }
 0x501   :  { %v2619_v49 = vsub.f32 %v5002_v0, %v2587_v62  ;;  %v2715_v10 = vpop.xlane.xlu2 %2714  ;;  %3523 = vrcp.f32 %v2711_v59 }
 0x502   :  { %v2824_v24 = vsub.f32 2.0, %v2792_v53  ;;  %3525 = vrcp.f32 %v2715_v10 }
 0x503   :  { %v5117_v22 = vpop.eup %3521  ;;  %v2682_v11 = vmul.f32 1.442695, %v2619_v49 }
 0x504   :  { %v2856_v46 = vmul.f32 %v3520_v20, %v2824_v24  ;;  %2744 = vadd.xlane.f32.xlu2 %v5117_v22 }
 0x505   :  { %3527 = vpow2.f32 %v2682_v11 }
 0x506   :  { %v2888_v34 = vmul.f32 %v4994_v32, %v2856_v46 }
 0x507   :  { %v3524_v29 = vpop.eup %3523 }
 0x508   :  { %v3526_v57 = vpop.eup %3525  ;;  %2920 = vst [vmem:[%s5212_s5 + $0x60] sm:$0xff] %v2888_v34  ;;  %v2793_v0 = vmul.f32 %v3524_v29, %v2711_v59  ;;  %v2707_v35 = vpop.xlane.xlu1 %2706 }
 0x509   :  { %v2717_v3 = vpop.xlane.xlu0 %2716  ;;  %v2795_v45 = vmul.f32 %v3526_v57, %v2715_v10  ;;  %3529 = vrcp.f32 %v2707_v35 }
 0x50a   :  { %v2825_v63 = vsub.f32 2.0, %v2793_v0  ;;  %3531 = vrcp.f32 %v2717_v3 }
 0x50b   :  { %v5124_v2 = vpop.eup %3527  ;;  %v2827_v4 = vsub.f32 2.0, %v2795_v45 }
 0x50c   :  { %v2857_v8 = vmul.f32 %v3524_v29, %v2825_v63  ;;  %2746 = vadd.xlane.f32.xlu0 %v5124_v2 }
 0x50d   :  { %v2859_v32 = vmul.f32 %v3526_v57, %v2827_v4 }
 0x50e   :  { %v2889_v15 = vmul.f32 %v5004_v26, %v2857_v8 }
 0x50f   :  { %v3530_v30 = vpop.eup %3529  ;;  %v2891_v36 = vmul.f32 %v5000_v48, %v2859_v32 }
 0x510   :  { %v3532_v52 = vpop.eup %3531  ;;  %2921 = vst [vmem:[%s5212_s5 + $0x68] sm:$0xff] %v2889_v15  ;;  %v2791_v5 = vmul.f32 %v3530_v30, %v2707_v35  ;;  %v2713_v47 = vpop.xlane.xlu1 %2712 }
 0x511   :  { %2923 = vst [vmem:[%s5212_s5 + $0x78] sm:$0xff] %v2891_v36  ;;  %v2796_v16 = vmul.f32 %v3532_v52, %v2717_v3  ;;  %3533 = vrcp.f32 %v2713_v47 }
 0x512   :  { %v2823_v56 = vsub.f32 2.0, %v2791_v5 }
 0x513   :  { %v2828_v12 = vsub.f32 2.0, %v2796_v16 }
 0x514   :  { %v2855_v33 = vmul.f32 %v3530_v30, %v2823_v56 }
 0x515   :  { %v2860_v26 = vmul.f32 %v3532_v52, %v2828_v12 }
 0x516   :  { %v2887_v44 = vmul.f32 %v5012_v25, %v2855_v33 }
 0x517   :  { %v3534_v48 = vpop.eup %3533  ;;  %v2892_v27 = vmul.f32 %v5010_v40, %v2860_v26  ;;  %v2721_v13 = vpop.xlane.xlu2 %2720 }
 0x518   :  { %2919 = vst [vmem:[%s5212_s5 + $0x58] sm:$0xff] %v2887_v44  ;;  %v2794_v50 = vmul.f32 %v3534_v48, %v2713_v47  ;;  %3535 = vrcp.f32 %v2721_v13  ;;  %v2719_v54 = vpop.xlane.xlu1 %2718 }
 0x519   :  { %2924 = vst [vmem:[%s5212_s5 + $0x80] sm:$0xff] %v2892_v27  ;;  %3537 = vrcp.f32 %v2719_v54 }
 0x51a   :  { %v2826_v51 = vsub.f32 2.0, %v2794_v50 }
 0x51c   :  { %v2858_v43 = vmul.f32 %v3534_v48, %v2826_v51 }
 0x51e   :  { %v3536_v42 = vpop.eup %3535  ;;  %v2890_v25 = vmul.f32 %v5022_v55, %v2858_v43 }
 0x51f   :  { %v3538_v37 = vpop.eup %3537  ;;  %v2798_v40 = vmul.f32 %v3536_v42, %v2721_v13  ;;  %v2723_v31 = vpop.xlane.xlu0 %2722 }
 0x520   :  { %2922 = vst [vmem:[%s5212_s5 + $0x70] sm:$0xff] %v2890_v25  ;;  %v2797_v39 = vmul.f32 %v3538_v37, %v2719_v54  ;;  %3539 = vrcp.f32 %v2723_v31 }
 0x521   :  { %v2830_v17 = vsub.f32 2.0, %v2798_v40 }
 0x522   :  { %v2829_v28 = vsub.f32 2.0, %v2797_v39 }
 0x523   :  { %v2862_v18 = vmul.f32 %v3536_v42, %v2830_v17 }
 0x524   :  { %v2861_v20 = vmul.f32 %v3538_v37, %v2829_v28 }
 0x525   :  { %v2894_v53 = vmul.f32 %v5030_v61, %v2862_v18 }
 0x526   :  { %v3540_v62 = vpop.eup %3539  ;;  %v2893_v59 = vmul.f32 %v5032_v9, %v2861_v20 }
 0x527   :  { %2926 = vst [vmem:[%s5212_s5 + $0x90] sm:$0xff] %v2894_v53  ;;  %v2799_v55 = vmul.f32 %v3540_v62, %v2723_v31  ;;  %v2725_v49 = vpop.xlane.xlu1 %2724 }
 0x528   :  { %2925 = vst [vmem:[%s5212_s5 + $0x88] sm:$0xff] %v2893_v59  ;;  %3541 = vrcp.f32 %v2725_v49 }
 0x529   :  { %v2831_v10 = vsub.f32 2.0, %v2799_v55 }
 0x52b   :  { %v2863_v24 = vmul.f32 %v3540_v62, %v2831_v10 }
 0x52d   :  { %v2895_v11 = vmul.f32 %v5041_v38, %v2863_v24 }
 0x52e   :  { %v3542_v46 = vpop.eup %3541 }
 0x52f   :  { %2927 = vst [vmem:[%s5212_s5 + $0x98] sm:$0xff] %v2895_v11  ;;  %v2800_v61 = vmul.f32 %v3542_v46, %v2725_v49  ;;  %v2727_v9 = vpop.xlane.xlu2 %2726 }
 0x530   :  { %3543 = vrcp.f32 %v2727_v9 }
 0x531   :  { %v2832_v34 = vsub.f32 2.0, %v2800_v61 }
 0x533   :  { %v2864_v29 = vmul.f32 %v3542_v46, %v2832_v34 }
 0x535   :  { %v2896_v57 = vmul.f32 %v5049_v1, %v2864_v29 }
 0x536   :  { %v3544_v0 = vpop.eup %3543 }
 0x537   :  { %2928 = vst [vmem:[%s5212_s5 + $0xa0] sm:$0xff] %v2896_v57  ;;  %v2801_v35 = vmul.f32 %v3544_v0, %v2727_v9  ;;  %v2729_v3 = vpop.xlane.xlu0 %2728 }
 0x538   :  { %3545 = vrcp.f32 %v2729_v3 }
 0x539   :  { %v2833_v38 = vsub.f32 2.0, %v2801_v35 }
 0x53b   :  { %v2865_v45 = vmul.f32 %v3544_v0, %v2833_v38 }
 0x53d   :  { %v2897_v63 = vmul.f32 %v5057_v7, %v2865_v45 }
 0x53e   :  { %v3546_v4 = vpop.eup %3545 }
 0x53f   :  { %2929 = vst [vmem:[%s5212_s5 + $0xa8] sm:$0xff] %v2897_v63  ;;  %v2802_v8 = vmul.f32 %v3546_v4, %v2729_v3  ;;  %v2731_v32 = vpop.xlane.xlu1 %2730 }
 0x540   :  { %3547 = vrcp.f32 %v2731_v32 }
 0x541   :  { %v2834_v1 = vsub.f32 2.0, %v2802_v8 }
 0x543   :  { %v2866_v15 = vmul.f32 %v3546_v4, %v2834_v1 }
 0x545   :  { %v2898_v30 = vmul.f32 %v5065_v14, %v2866_v15 }
 0x546   :  { %v3548_v36 = vpop.eup %3547 }
 0x547   :  { %2930 = vst [vmem:[%s5212_s5 + $0xb0] sm:$0xff] %v2898_v30  ;;  %v2803_v52 = vmul.f32 %v3548_v36, %v2731_v32  ;;  %v2733_v5 = vpop.xlane.xlu2 %2732 }
 0x548   :  { %3549 = vrcp.f32 %v2733_v5 }
 0x549   :  { %v2835_v7 = vsub.f32 2.0, %v2803_v52 }
 0x54b   :  { %v2867_v47 = vmul.f32 %v3548_v36, %v2835_v7 }
 0x54d   :  { %v2899_v16 = vmul.f32 %v5073_v19, %v2867_v47 }
 0x54e   :  { %v3550_v56 = vpop.eup %3549 }
 0x54f   :  { %2931 = vst [vmem:[%s5212_s5 + $0xb8] sm:$0xff] %v2899_v16  ;;  %v2804_v12 = vmul.f32 %v3550_v56, %v2733_v5  ;;  %v2735_v33 = vpop.xlane.xlu0 %2734 }
 0x550   :  { %3551 = vrcp.f32 %v2735_v33 }
 0x551   :  { %v2836_v14 = vsub.f32 2.0, %v2804_v12 }
 0x553   :  { %v2868_v26 = vmul.f32 %v3550_v56, %v2836_v14 }
 0x555   :  { %v2900_v44 = vmul.f32 %v5081_v6, %v2868_v26 }
 0x556   :  { %v3552_v48 = vpop.eup %3551 }
 0x557   :  { %2932 = vst [vmem:[%s5212_s5 + $0xc0] sm:$0xff] %v2900_v44  ;;  %v2805_v27 = vmul.f32 %v3552_v48, %v2735_v33  ;;  %v2737_v13 = vpop.xlane.xlu1 %2736 }
 0x558   :  { %3553 = vrcp.f32 %v2737_v13 }
 0x559   :  { %v2837_v19 = vsub.f32 2.0, %v2805_v27 }
 0x55b   :  { %v2869_v50 = vmul.f32 %v3552_v48, %v2837_v19 }
 0x55d   :  { %v2901_v54 = vmul.f32 %v5089_v21, %v2869_v50 }
 0x55e   :  { %v3554_v51 = vpop.eup %3553 }
 0x55f   :  { %2933 = vst [vmem:[%s5212_s5 + $0xc8] sm:$0xff] %v2901_v54  ;;  %v2806_v43 = vmul.f32 %v3554_v51, %v2737_v13  ;;  %v2739_v42 = vpop.xlane.xlu2 %2738 }
 0x560   :  { %3555 = vrcp.f32 %v2739_v42 }
 0x561   :  { %v2838_v6 = vsub.f32 2.0, %v2806_v43 }
 0x563   :  { %v2870_v25 = vmul.f32 %v3554_v51, %v2838_v6 }
 0x565   :  { %v2902_v37 = vmul.f32 %v5097_v60, %v2870_v25 }
 0x566   :  { %v3556_v40 = vpop.eup %3555 }
 0x567   :  { %2934 = vst [vmem:[%s5212_s5 + $0xd0] sm:$0xff] %v2902_v37  ;;  %v2807_v31 = vmul.f32 %v3556_v40, %v2739_v42  ;;  %v2741_v39 = vpop.xlane.xlu0 %2740 }
 0x568   :  { %3557 = vrcp.f32 %v2741_v39 }
 0x569   :  { %v2839_v21 = vsub.f32 2.0, %v2807_v31 }
 0x56b   :  { %v2871_v17 = vmul.f32 %v3556_v40, %v2839_v21 }
 0x56d   :  { %v2903_v28 = vmul.f32 %v5105_v23, %v2871_v17 }
 0x56e   :  { %v3558_v18 = vpop.eup %3557 }
 0x56f   :  { %2935 = vst [vmem:[%s5212_s5 + $0xd8] sm:$0xff] %v2903_v28  ;;  %v2808_v20 = vmul.f32 %v3558_v18, %v2741_v39  ;;  %v2743_v53 = vpop.xlane.xlu1 %2742 }
 0x570   :  { %3559 = vrcp.f32 %v2743_v53 }
 0x571   :  { %v2840_v60 = vsub.f32 2.0, %v2808_v20 }
 0x573   :  { %v2872_v62 = vmul.f32 %v3558_v18, %v2840_v60 }
 0x575   :  { %v2904_v59 = vmul.f32 %v5109_v41, %v2872_v62 }
 0x576   :  { %v3560_v55 = vpop.eup %3559 }
 0x577   :  { %2936 = vst [vmem:[%s5212_s5 + $0xe0] sm:$0xff] %v2904_v59  ;;  %v2809_v49 = vmul.f32 %v3560_v55, %v2743_v53  ;;  %v2745_v10 = vpop.xlane.xlu2 %2744 }
 0x578   :  { %3561 = vrcp.f32 %v2745_v10 }
 0x579   :  { %v2841_v23 = vsub.f32 2.0, %v2809_v49 }
 0x57b   :  { %v2873_v24 = vmul.f32 %v3560_v55, %v2841_v23 }
 0x57d   :  { %v2905_v11 = vmul.f32 %v5113_v58, %v2873_v24 }
 0x57e   :  { %v3562_v46 = vpop.eup %3561 }
 0x57f   :  { %2937 = vst [vmem:[%s5212_s5 + $0xe8] sm:$0xff] %v2905_v11  ;;  %v2810_v61 = vmul.f32 %v3562_v46, %v2745_v10  ;;  %v2747_v9 = vpop.xlane.xlu0 %2746 }
 0x580   :  { %3563 = vrcp.f32 %v2747_v9 }
 0x581   :  { %v2842_v41 = vsub.f32 2.0, %v2810_v61 }
 0x583   :  { %v2874_v34 = vmul.f32 %v3562_v46, %v2842_v41 }
 0x585   :  { %v2906_v29 = vmul.f32 %v5117_v22, %v2874_v34 }
 0x586   :  { %v3564_v57 = vpop.eup %3563 }
 0x587   :  { %2938 = vst [vmem:[%s5212_s5 + $0xf0] sm:$0xff] %v2906_v29  ;;  %v2811_v0 = vmul.f32 %v3564_v57, %v2747_v9 }
 0x589   :  { %v2843_v35 = vsub.f32 2.0, %v2811_v0 }
 0x58b   :  { %v2875_v58 = vmul.f32 %v3564_v57, %v2843_v35 }
 0x58d   :  { %v2907_v3 = vmul.f32 %v5124_v2, %v2875_v58 }
 0x58f   :  { %2939 = vst [vmem:[%s5212_s5 + $0xf8] sm:$0xff] %v2907_v3 }
 0x590   :  { %2944 = vsyncpa [#allocation3], 1 }

</bundles_post_ra>
